<compile_context>
chip_gen: v6e
topology: v6e:2x2x1
jax: 0.10.0
libtpu: 0.0.40
codegen_flags: <defaults>
</compile_context>

<pallas_src>
import functools

import jax
import jax.numpy as jnp
import numpy as np
from jax import lax
from jax.experimental import pallas as pl
from jax.experimental.pallas import tpu as pltpu


# ---------------------------------------------------------------------------
# Fused kernel: [Conv3x3(pad=1) + BN(eval) + ReLU] x 2 for one image.
# Each conv = one im2col matmul on the MXU.
# ---------------------------------------------------------------------------
def _double_conv_kernel(
    x_ref, w1_ref, s1_ref, b1_ref, w2_ref, s2_ref, b2_ref,   # inputs
    o_ref,                                                    # output
    pad1_ref, pad2_ref,                                       # VMEM scratch (halo tiles)
    *, H, W, Cin, Cout,
):
    # x_ref:  (1, H, W, Cin)
    # w1_ref: (9*Cin, Cout)   w2_ref: (9*Cout, Cout)      (host pre-reshaped, HWIO tap order)
    # s*_ref / b*_ref: (1, Cout) fused BN scale / shift
    # o_ref:  (1, H*W, Cout)
    # pad1_ref: (H+2, W+2, Cin)  pad2_ref: (H+2, W+2, Cout)

    # ---- layer 1: in-kernel halo padding ----
    pad1_ref[...] = jnp.zeros_like(pad1_ref)
    pad1_ref[1:H + 1, 1:W + 1, :] = x_ref[0].astype(pad1_ref.dtype)

    # im2col: 9 shifted taps concatenated on the channel (lane) axis -> one matmul, K = 9*Cin.
    taps1 = [pad1_ref[dy:dy + H, dx:dx + W, :] for dy in range(3) for dx in range(3)]
    patches1 = jnp.concatenate(taps1, axis=-1).reshape(H * W, 9 * Cin)
    y1 = jnp.dot(patches1, w1_ref[...], preferred_element_type=jnp.float32)
    y1 = jnp.maximum(y1 * s1_ref[...] + b1_ref[...], 0.0)            # (H*W, Cout), f32

    # ---- layer 2: intermediate activation stays in VMEM ----
    pad2_ref[...] = jnp.zeros_like(pad2_ref)
    pad2_ref[1:H + 1, 1:W + 1, :] = y1.reshape(H, W, Cout)

    taps2 = [pad2_ref[dy:dy + H, dx:dx + W, :] for dy in range(3) for dx in range(3)]
    patches2 = jnp.concatenate(taps2, axis=-1).reshape(H * W, 9 * Cout)
    y2 = jnp.dot(patches2, w2_ref[...], preferred_element_type=jnp.float32)
    y2 = jnp.maximum(y2 * s2_ref[...] + b2_ref[...], 0.0)            # (H*W, Cout)

    o_ref[0] = y2.astype(o_ref.dtype)


def double_conv_nhwc(x_nhwc, params):
    """x_nhwc: (N, H, W, Cin); params: [(w_mat, scale, shift)] x 2 with w_mat = (9*Cin, Cout)."""
    N, H, W, Cin = x_nhwc.shape
    (w1, s1, b1), (w2, s2, b2) = params
    Cout = w1.shape[-1]
    assert w1.shape == (9 * Cin, Cout) and w2.shape == (9 * Cout, Cout)

    kernel = functools.partial(_double_conv_kernel, H=H, W=W, Cin=Cin, Cout=Cout)
    out = pl.pallas_call(
        kernel,
        out_shape=jax.ShapeDtypeStruct((N, H * W, Cout), x_nhwc.dtype),
        grid=(N,),
        in_specs=[
            pl.BlockSpec((1, H, W, Cin), lambda n: (n, 0, 0, 0)),
            pl.BlockSpec((9 * Cin, Cout), lambda n: (0, 0)),
            pl.BlockSpec((1, Cout), lambda n: (0, 0)),
            pl.BlockSpec((1, Cout), lambda n: (0, 0)),
            pl.BlockSpec((9 * Cout, Cout), lambda n: (0, 0)),
            pl.BlockSpec((1, Cout), lambda n: (0, 0)),
            pl.BlockSpec((1, Cout), lambda n: (0, 0)),
        ],
        out_specs=pl.BlockSpec((1, H * W, Cout), lambda n: (n, 0, 0)),
        scratch_shapes=[
            pltpu.VMEM((H + 2, W + 2, Cin), jnp.float32),
            pltpu.VMEM((H + 2, W + 2, Cout), jnp.float32),
        ],
        compiler_params=pltpu.CompilerParams(dimension_semantics=("parallel",)),
    )(x_nhwc, w1, s1, b1, w2, s2, b2)
    return out.reshape(N, H, W, Cout)


# ---------------------------------------------------------------------------
# Parameter construction (deterministic, in-script) and the `inconv` forward.
# ---------------------------------------------------------------------------
def make_inconv_params(key, in_ch, out_ch, eps=1e-5):
    kernel_params = []   # weights pre-reshaped on host to (9*Cin, Cout)
    ref_params = []      # HWIO weights for the pure-JAX reference
    cin = in_ch
    for _ in range(2):
        key, kw, kb, kg, kbeta = jax.random.split(key, 5)
        w = 0.1 * jax.random.normal(kw, (3, 3, cin, out_ch), jnp.float32)   # HWIO
        b = 0.1 * jax.random.normal(kb, (out_ch,), jnp.float32)
        gamma = 1.0 + 0.1 * jax.random.normal(kg, (out_ch,), jnp.float32)
        beta = 0.1 * jax.random.normal(kbeta, (out_ch,), jnp.float32)
        running_mean = jnp.zeros((out_ch,), jnp.float32)
        running_var = jnp.ones((out_ch,), jnp.float32)
        scale = gamma / jnp.sqrt(running_var + eps)
        shift = beta + scale * (b - running_mean)
        kernel_params.append(
            (w.reshape(9 * cin, out_ch), scale.reshape(1, out_ch), shift.reshape(1, out_ch))
        )
        ref_params.append((w, scale.reshape(1, out_ch), shift.reshape(1, out_ch)))
        cin = out_ch
    return kernel_params, ref_params


def inconv_forward(x_nchw, kernel_params):
    x = jnp.transpose(x_nchw, (0, 2, 3, 1))       # NCHW -> NHWC
    y = double_conv_nhwc(x, kernel_params)
    return jnp.transpose(y, (0, 3, 1, 2))          # NHWC -> NCHW


# Pure-JAX reference for verification.
def inconv_reference(x_nchw, ref_params):
    x = jnp.transpose(x_nchw, (0, 2, 3, 1))
    for (w, scale, shift) in ref_params:
        y = lax.conv_general_dilated(
            x, w, (1, 1), "SAME", dimension_numbers=("NHWC", "HWIO", "NHWC")
        )
        x = jnp.maximum(y * scale + shift, 0.0)
    return jnp.transpose(x, (0, 3, 1, 2))


if __name__ == "__main__":
    key = jax.random.PRNGKey(0)
    kx, kp = jax.random.split(key)

    N, in_ch, out_ch, H, W = 2, 4, 8, 16, 16
    x = jax.random.normal(kx, (N, in_ch, H, W), jnp.float32)
    kparams, rparams = make_inconv_params(kp, in_ch, out_ch)

    out = jax.block_until_ready(inconv_forward(x, kparams))
    ref = jax.block_until_ready(inconv_reference(x, rparams))

    assert out.shape == (N, out_ch, H, W), out.shape
    assert np.allclose(np.asarray(out), np.asarray(ref), atol=1e-4, rtol=1e-4)

    print("KERNEL_OK")
</pallas_src>

<mosaic_0001>
module attributes {stable_mosaic.version = 11 : i64} {
  func.func @_double_conv_kernel(%arg0: i32, %arg1: memref<1x16x16x4xf32, #tpu.memory_space<vmem>>, %arg2: memref<36x8xf32, #tpu.memory_space<vmem>>, %arg3: memref<1x8xf32, #tpu.memory_space<vmem>>, %arg4: memref<1x8xf32, #tpu.memory_space<vmem>>, %arg5: memref<72x8xf32, #tpu.memory_space<vmem>>, %arg6: memref<1x8xf32, #tpu.memory_space<vmem>>, %arg7: memref<1x8xf32, #tpu.memory_space<vmem>>, %arg8: memref<1x256x8xf32, #tpu.memory_space<vmem>>, %arg9: memref<18x18x4xf32, #tpu.memory_space<vmem>>, %arg10: memref<18x18x8xf32, #tpu.memory_space<vmem>>) attributes {dimension_semantics = [#tpu.dimension_semantics<parallel>], iteration_bounds = array<i64: 2>, scalar_prefetch = 0 : i64, scratch_operands = 2 : i64, tpu.core_type = #tpu.core_type<tc>, window_params = [{transform_indices = @transform_0, window_bounds = array<i64: 1, 16, 16, 4>}, {pipeline_mode = #tpu.pipeline_mode<synchronous>, transform_indices = @transform_1, window_bounds = array<i64: 36, 8>}, {pipeline_mode = #tpu.pipeline_mode<synchronous>, transform_indices = @transform_2, window_bounds = array<i64: 1, 8>}, {pipeline_mode = #tpu.pipeline_mode<synchronous>, transform_indices = @transform_3, window_bounds = array<i64: 1, 8>}, {pipeline_mode = #tpu.pipeline_mode<synchronous>, transform_indices = @transform_4, window_bounds = array<i64: 72, 8>}, {pipeline_mode = #tpu.pipeline_mode<synchronous>, transform_indices = @transform_5, window_bounds = array<i64: 1, 8>}, {pipeline_mode = #tpu.pipeline_mode<synchronous>, transform_indices = @transform_6, window_bounds = array<i64: 1, 8>}, {transform_indices = @transform_7, window_bounds = array<i64: 1, 256, 8>}]} {
    %cst = arith.constant 0.000000e+00 : f32
    %0 = vector.broadcast %cst : f32 to vector<18x18x4xf32>
    %c0 = arith.constant 0 : index
    %c0_0 = arith.constant 0 : index
    %c0_1 = arith.constant 0 : index
    %1 = vector.load %arg9[%c0, %c0_0, %c0_1] : memref<18x18x4xf32, #tpu.memory_space<vmem>>, vector<18x18x4xf32>
    tpu.vector_store %arg9[%c0, %c0_0, %c0_1], %0 {strides = array<i32>} : memref<18x18x4xf32, #tpu.memory_space<vmem>>, vector<18x18x4xf32>,
    %c0_2 = arith.constant 0 : index
    %c0_3 = arith.constant 0 : index
    %c0_4 = arith.constant 0 : index
    %c0_5 = arith.constant 0 : index
    %2 = vector.load %arg1[%c0_2, %c0_3, %c0_4, %c0_5] : memref<1x16x16x4xf32, #tpu.memory_space<vmem>>, vector<1x16x16x4xf32>
    %3 = vector.shape_cast %2 : vector<1x16x16x4xf32> to vector<16x16x4xf32>
    %c1 = arith.constant 1 : index
    %c1_6 = arith.constant 1 : index
    %c0_7 = arith.constant 0 : index
    %4 = vector.load %arg9[%c1, %c1_6, %c0_7] : memref<18x18x4xf32, #tpu.memory_space<vmem>>, vector<16x16x4xf32>
    tpu.vector_store %arg9[%c1, %c1_6, %c0_7], %3 {strides = array<i32>} : memref<18x18x4xf32, #tpu.memory_space<vmem>>, vector<16x16x4xf32>,
    %c0_8 = arith.constant 0 : index
    %c0_9 = arith.constant 0 : index
    %c0_10 = arith.constant 0 : index
    %5 = vector.load %arg9[%c0_8, %c0_9, %c0_10] : memref<18x18x4xf32, #tpu.memory_space<vmem>>, vector<16x16x4xf32>
    %c0_11 = arith.constant 0 : index
    %c1_12 = arith.constant 1 : index
    %c0_13 = arith.constant 0 : index
    %6 = vector.load %arg9[%c0_11, %c1_12, %c0_13] : memref<18x18x4xf32, #tpu.memory_space<vmem>>, vector<16x16x4xf32>
    %c0_14 = arith.constant 0 : index
    %c2 = arith.constant 2 : index
    %c0_15 = arith.constant 0 : index
    %7 = vector.load %arg9[%c0_14, %c2, %c0_15] : memref<18x18x4xf32, #tpu.memory_space<vmem>>, vector<16x16x4xf32>
    %c1_16 = arith.constant 1 : index
    %c0_17 = arith.constant 0 : index
    %c0_18 = arith.constant 0 : index
    %8 = vector.load %arg9[%c1_16, %c0_17, %c0_18] : memref<18x18x4xf32, #tpu.memory_space<vmem>>, vector<16x16x4xf32>
    %c1_19 = arith.constant 1 : index
    %c1_20 = arith.constant 1 : index
    %c0_21 = arith.constant 0 : index
    %9 = vector.load %arg9[%c1_19, %c1_20, %c0_21] : memref<18x18x4xf32, #tpu.memory_space<vmem>>, vector<16x16x4xf32>
    %c1_22 = arith.constant 1 : index
    %c2_23 = arith.constant 2 : index
    %c0_24 = arith.constant 0 : index
    %10 = vector.load %arg9[%c1_22, %c2_23, %c0_24] : memref<18x18x4xf32, #tpu.memory_space<vmem>>, vector<16x16x4xf32>
    %c2_25 = arith.constant 2 : index
    %c0_26 = arith.constant 0 : index
    %c0_27 = arith.constant 0 : index
    %11 = vector.load %arg9[%c2_25, %c0_26, %c0_27] : memref<18x18x4xf32, #tpu.memory_space<vmem>>, vector<16x16x4xf32>
    %c2_28 = arith.constant 2 : index
    %c1_29 = arith.constant 1 : index
    %c0_30 = arith.constant 0 : index
    %12 = vector.load %arg9[%c2_28, %c1_29, %c0_30] : memref<18x18x4xf32, #tpu.memory_space<vmem>>, vector<16x16x4xf32>
    %c2_31 = arith.constant 2 : index
    %c2_32 = arith.constant 2 : index
    %c0_33 = arith.constant 0 : index
    %13 = vector.load %arg9[%c2_31, %c2_32, %c0_33] : memref<18x18x4xf32, #tpu.memory_space<vmem>>, vector<16x16x4xf32>
    %14 = tpu.concatenate %5, %6, %7, %8, %9, %10, %11, %12, %13 in 2 : vector<16x16x4xf32>, vector<16x16x4xf32>, vector<16x16x4xf32>, vector<16x16x4xf32>, vector<16x16x4xf32>, vector<16x16x4xf32>, vector<16x16x4xf32>, vector<16x16x4xf32>, vector<16x16x4xf32> -> vector<16x16x36xf32>
    %15 = vector.shape_cast %14 : vector<16x16x36xf32> to vector<256x36xf32>
    %c0_34 = arith.constant 0 : index
    %c0_35 = arith.constant 0 : index
    %16 = vector.load %arg2[%c0_34, %c0_35] : memref<36x8xf32, #tpu.memory_space<vmem>>, vector<36x8xf32>
    %cst_36 = arith.constant dense<0.000000e+00> : vector<256x8xf32>
    %17 = tpu.matmul %15, %16, %cst_36 {dimension_numbers = #tpu.dot_dimension_numbers<[1], [0], [0], [1], [0, 0, 1, 1], [], []>} : vector<256x36xf32>, vector<36x8xf32>, vector<256x8xf32> -> vector<256x8xf32>
    %c0_37 = arith.constant 0 : index
    %c0_38 = arith.constant 0 : index
    %18 = vector.load %arg3[%c0_37, %c0_38] : memref<1x8xf32, #tpu.memory_space<vmem>>, vector<1x8xf32>
    %19 = vector.broadcast %18 : vector<1x8xf32> to vector<256x8xf32>
    %20 = arith.mulf %17, %19 : vector<256x8xf32>
    %c0_39 = arith.constant 0 : index
    %c0_40 = arith.constant 0 : index
    %21 = vector.load %arg4[%c0_39, %c0_40] : memref<1x8xf32, #tpu.memory_space<vmem>>, vector<1x8xf32>
    %22 = vector.broadcast %21 : vector<1x8xf32> to vector<256x8xf32>
    %23 = arith.addf %20, %22 : vector<256x8xf32>
    %cst_41 = arith.constant 0.000000e+00 : f32
    %24 = vector.broadcast %cst_41 : f32 to vector<256x8xf32>
    %25 = arith.maximumf %23, %24 : vector<256x8xf32>
    %cst_42 = arith.constant 0.000000e+00 : f32
    %26 = vector.broadcast %cst_42 : f32 to vector<18x18x8xf32>
    %c0_43 = arith.constant 0 : index
    %c0_44 = arith.constant 0 : index
    %c0_45 = arith.constant 0 : index
    %27 = vector.load %arg10[%c0_43, %c0_44, %c0_45] : memref<18x18x8xf32, #tpu.memory_space<vmem>>, vector<18x18x8xf32>
    tpu.vector_store %arg10[%c0_43, %c0_44, %c0_45], %26 {strides = array<i32>} : memref<18x18x8xf32, #tpu.memory_space<vmem>>, vector<18x18x8xf32>,
    %28 = vector.shape_cast %25 : vector<256x8xf32> to vector<16x16x8xf32>
    %c1_46 = arith.constant 1 : index
    %c1_47 = arith.constant 1 : index
    %c0_48 = arith.constant 0 : index
    %29 = vector.load %arg10[%c1_46, %c1_47, %c0_48] : memref<18x18x8xf32, #tpu.memory_space<vmem>>, vector<16x16x8xf32>
    tpu.vector_store %arg10[%c1_46, %c1_47, %c0_48], %28 {strides = array<i32>} : memref<18x18x8xf32, #tpu.memory_space<vmem>>, vector<16x16x8xf32>,
    %c0_49 = arith.constant 0 : index
    %c0_50 = arith.constant 0 : index
    %c0_51 = arith.constant 0 : index
    %30 = vector.load %arg10[%c0_49, %c0_50, %c0_51] : memref<18x18x8xf32, #tpu.memory_space<vmem>>, vector<16x16x8xf32>
    %c0_52 = arith.constant 0 : index
    %c1_53 = arith.constant 1 : index
    %c0_54 = arith.constant 0 : index
    %31 = vector.load %arg10[%c0_52, %c1_53, %c0_54] : memref<18x18x8xf32, #tpu.memory_space<vmem>>, vector<16x16x8xf32>
    %c0_55 = arith.constant 0 : index
    %c2_56 = arith.constant 2 : index
    %c0_57 = arith.constant 0 : index
    %32 = vector.load %arg10[%c0_55, %c2_56, %c0_57] : memref<18x18x8xf32, #tpu.memory_space<vmem>>, vector<16x16x8xf32>
    %c1_58 = arith.constant 1 : index
    %c0_59 = arith.constant 0 : index
    %c0_60 = arith.constant 0 : index
    %33 = vector.load %arg10[%c1_58, %c0_59, %c0_60] : memref<18x18x8xf32, #tpu.memory_space<vmem>>, vector<16x16x8xf32>
    %c1_61 = arith.constant 1 : index
    %c1_62 = arith.constant 1 : index
    %c0_63 = arith.constant 0 : index
    %34 = vector.load %arg10[%c1_61, %c1_62, %c0_63] : memref<18x18x8xf32, #tpu.memory_space<vmem>>, vector<16x16x8xf32>
    %c1_64 = arith.constant 1 : index
    %c2_65 = arith.constant 2 : index
    %c0_66 = arith.constant 0 : index
    %35 = vector.load %arg10[%c1_64, %c2_65, %c0_66] : memref<18x18x8xf32, #tpu.memory_space<vmem>>, vector<16x16x8xf32>
    %c2_67 = arith.constant 2 : index
    %c0_68 = arith.constant 0 : index
    %c0_69 = arith.constant 0 : index
    %36 = vector.load %arg10[%c2_67, %c0_68, %c0_69] : memref<18x18x8xf32, #tpu.memory_space<vmem>>, vector<16x16x8xf32>
    %c2_70 = arith.constant 2 : index
    %c1_71 = arith.constant 1 : index
    %c0_72 = arith.constant 0 : index
    %37 = vector.load %arg10[%c2_70, %c1_71, %c0_72] : memref<18x18x8xf32, #tpu.memory_space<vmem>>, vector<16x16x8xf32>
    %c2_73 = arith.constant 2 : index
    %c2_74 = arith.constant 2 : index
    %c0_75 = arith.constant 0 : index
    %38 = vector.load %arg10[%c2_73, %c2_74, %c0_75] : memref<18x18x8xf32, #tpu.memory_space<vmem>>, vector<16x16x8xf32>
    %39 = tpu.concatenate %30, %31, %32, %33, %34, %35, %36, %37, %38 in 2 : vector<16x16x8xf32>, vector<16x16x8xf32>, vector<16x16x8xf32>, vector<16x16x8xf32>, vector<16x16x8xf32>, vector<16x16x8xf32>, vector<16x16x8xf32>, vector<16x16x8xf32>, vector<16x16x8xf32> -> vector<16x16x72xf32>
    %40 = vector.shape_cast %39 : vector<16x16x72xf32> to vector<256x72xf32>
    %c0_76 = arith.constant 0 : index
    %c0_77 = arith.constant 0 : index
    %41 = vector.load %arg5[%c0_76, %c0_77] : memref<72x8xf32, #tpu.memory_space<vmem>>, vector<72x8xf32>
    %cst_78 = arith.constant dense<0.000000e+00> : vector<256x8xf32>
    %42 = tpu.matmul %40, %41, %cst_78 {dimension_numbers = #tpu.dot_dimension_numbers<[1], [0], [0], [1], [0, 0, 1, 1], [], []>} : vector<256x72xf32>, vector<72x8xf32>, vector<256x8xf32> -> vector<256x8xf32>
    %c0_79 = arith.constant 0 : index
    %c0_80 = arith.constant 0 : index
    %43 = vector.load %arg6[%c0_79, %c0_80] : memref<1x8xf32, #tpu.memory_space<vmem>>, vector<1x8xf32>
    %44 = vector.broadcast %43 : vector<1x8xf32> to vector<256x8xf32>
    %45 = arith.mulf %42, %44 : vector<256x8xf32>
    %c0_81 = arith.constant 0 : index
    %c0_82 = arith.constant 0 : index
    %46 = vector.load %arg7[%c0_81, %c0_82] : memref<1x8xf32, #tpu.memory_space<vmem>>, vector<1x8xf32>
    %47 = vector.broadcast %46 : vector<1x8xf32> to vector<256x8xf32>
    %48 = arith.addf %45, %47 : vector<256x8xf32>
    %cst_83 = arith.constant 0.000000e+00 : f32
    %49 = vector.broadcast %cst_83 : f32 to vector<256x8xf32>
    %50 = arith.maximumf %48, %49 : vector<256x8xf32>
    %c0_84 = arith.constant 0 : index
    %c0_85 = arith.constant 0 : index
    %c0_86 = arith.constant 0 : index
    %51 = vector.load %arg8[%c0_84, %c0_85, %c0_86] : memref<1x256x8xf32, #tpu.memory_space<vmem>>, vector<1x256x8xf32>
    %52 = vector.shape_cast %51 : vector<1x256x8xf32> to vector<256x8xf32>
    %53 = vector.shape_cast %50 : vector<256x8xf32> to vector<1x256x8xf32>
    tpu.vector_store %arg8[%c0_84, %c0_85, %c0_86], %53 {strides = array<i32>} : memref<1x256x8xf32, #tpu.memory_space<vmem>>, vector<1x256x8xf32>,
    return
  }
  func.func @transform_0(%arg0: i32) -> (i32, i32, i32, i32) {
    %c0_i32 = arith.constant 0 : i32
    %c0_i32_0 = arith.constant 0 : i32
    %c0_i32_1 = arith.constant 0 : i32
    %c0_i32_2 = arith.constant 0 : i32
    return %arg0, %c0_i32, %c0_i32_0, %c0_i32_1 : i32, i32, i32, i32
  }
  func.func @transform_1(%arg0: i32) -> (i32, i32) {
    %c0_i32 = arith.constant 0 : i32
    %c0_i32_0 = arith.constant 0 : i32
    %c0_i32_1 = arith.constant 0 : i32
    return %c0_i32, %c0_i32_0 : i32, i32
  }
  func.func @transform_2(%arg0: i32) -> (i32, i32) {
    %c0_i32 = arith.constant 0 : i32
    %c0_i32_0 = arith.constant 0 : i32
    %c0_i32_1 = arith.constant 0 : i32
    return %c0_i32, %c0_i32_0 : i32, i32
  }
  func.func @transform_3(%arg0: i32) -> (i32, i32) {
    %c0_i32 = arith.constant 0 : i32
    %c0_i32_0 = arith.constant 0 : i32
    %c0_i32_1 = arith.constant 0 : i32
    return %c0_i32, %c0_i32_0 : i32, i32
  }
  func.func @transform_4(%arg0: i32) -> (i32, i32) {
    %c0_i32 = arith.constant 0 : i32
    %c0_i32_0 = arith.constant 0 : i32
    %c0_i32_1 = arith.constant 0 : i32
    return %c0_i32, %c0_i32_0 : i32, i32
  }
  func.func @transform_5(%arg0: i32) -> (i32, i32) {
    %c0_i32 = arith.constant 0 : i32
    %c0_i32_0 = arith.constant 0 : i32
    %c0_i32_1 = arith.constant 0 : i32
    return %c0_i32, %c0_i32_0 : i32, i32
  }
  func.func @transform_6(%arg0: i32) -> (i32, i32) {
    %c0_i32 = arith.constant 0 : i32
    %c0_i32_0 = arith.constant 0 : i32
    %c0_i32_1 = arith.constant 0 : i32
    return %c0_i32, %c0_i32_0 : i32, i32
  }
  func.func @transform_7(%arg0: i32) -> (i32, i32, i32) {
    %c0_i32 = arith.constant 0 : i32
    %c0_i32_0 = arith.constant 0 : i32
    %c0_i32_1 = arith.constant 0 : i32
    return %arg0, %c0_i32, %c0_i32_0 : i32, i32, i32
  }
}

</mosaic_0001>

<bundles_post_ra>
// kernel: tpu_custom_call.1
= control target key start
LH: loop header
LB: loop body
LE: loop exit
PB: predicated region body
PF: predicated region fallthrough
CT: control target
= control target key end

     0   :  { %s5037_s24 = smov 0   ;;  %s8263_s0 = inlined_call_operand.vmem [shape: f32[2,16,16,4], index: 0, kind: input, shape index: {}]   ;;  %s8264_s1 = inlined_call_operand.vmem [shape: f32[36,8], index: 1, kind: input, shape index: {}]   ;;  %s8265_s2 = inlined_call_operand.vmem [shape: f32[1,8], index: 2, kind: input, shape index: {}]   ;;  %s8266_s3 = inlined_call_operand.vmem [shape: f32[1,8], index: 3, kind: input, shape index: {}]   ;;  %s8267_s4 = inlined_call_operand.vmem [shape: f32[72,8], index: 4, kind: input, shape index: {}]   ;;  %s8268_s5 = inlined_call_operand.vmem [shape: f32[1,8], index: 5, kind: input, shape index: {}]   ;;  %s8269_s6 = inlined_call_operand.vmem [shape: f32[1,8], index: 6, kind: input, shape index: {}]   ;;  %s8270_s7 = inlined_call_operand.vmem [shape: f32[2,256,8], index: 7, kind: output, shape index: {}]  }
   0x1 LB: > { %s4606_s25 = sadd.s32 4294967295, %s4982_s24   ;;  %p4610_p0 = scmp.ge.s32.totalorder %s4982_s24, 1  ;;  %s4982_s24 = sphi %s5037_s24, %s17_s24  }
   0x2   : > { %p237_p1 = scmp.lt.s32.totalorder %s4982_s24, 3 }
   0x4   : > { %p238_p2 = pnand %p4610_p0, %p237_p1 }
   0x6   : > { %241 = sbr.rel (%p238_p2) target bundleno = 1638 (0x666), region = 48 }
   0xb   : > { %vm279_vm0 = vcmask 31744   ;;  %vm282_vm1 = vcmask 25600   ;;  %p5047_p3 = scmp.lt.s32.totalorder %s4606_s25, 1  ;;  %v8271_v0 = vmov 0.0   ;;  %s4985_s8 = smov 4   ;;  %vm1745_vm2 = vcmask 64512  }
   0xc   : > { %280 = vst.msk [vmem:[#allocation2] sm:$0xff] %vm279_vm0, %v8271_v0  ;;  %281 = vst.msk [vmem:[#allocation2 + $0x8] sm:$0xff] %vm279_vm0, %v8271_v0  ;;  %s4986_s9 = smov 8   ;;  %s4987_s10 = smov 12   ;;  %vm2078_vm3 = vcmask 1043456   ;;  %vm1778_vm4 = vcmask 97280  }
   0xd   : > { %284 = vst.msk [vmem:[#allocation2 + $0x18] sm:$0xff] %vm279_vm0, %v8271_v0  ;;  %285 = vst.msk [vmem:[#allocation2 + $0x20] sm:$0xff] %vm279_vm0, %v8271_v0  ;;  %s8824_s25 = smov (!%p5047_p3, %s4606_s25), 1  ;;  %s4988_s11 = smov 16   ;;  %vm1811_vm5 = vcmask 130048   ;;  %vm1844_vm6 = vcmask 162816  }
   0xe   : > { %287 = vst.msk [vmem:[#allocation2 + $0x30] sm:$0xff] %vm279_vm0, %v8271_v0  ;;  %288 = vst.msk [vmem:[#allocation2 + $0x38] sm:$0xff] %vm279_vm0, %v8271_v0  ;;  %s4686_s27 = sshll.u32 %s8824_s25, 8  ;;  %s4989_s12 = smov 20   ;;  %vm1877_vm7 = vcmask 195584   ;;  %vm1910_vm8 = vcmask 228352  }
   0xf   : > { %290 = vst.msk [vmem:[#allocation2 + $0x48] sm:$0xff] %vm279_vm0, %v8271_v0  ;;  %291 = vst.msk [vmem:[#allocation2 + $0x50] sm:$0xff] %vm279_vm0, %v8271_v0  ;;  %s5171_s30 = scalar_lea.vmem %s8263_s0, %s4686_s27  ;;  %s4990_s13 = smov 24   ;;  %vm1943_vm9 = vcmask 261120   ;;  %vm1981_vm10 = vcmask 293888   ;;  %vm2419_vm11 = vcmask 58368  }
  0x10   : > { %293 = vst.msk [vmem:[#allocation2 + $0x60] sm:$0xff] %vm279_vm0, %v8271_v0  ;;  %294 = vst.msk [vmem:[#allocation2 + $0x68] sm:$0xff] %vm279_vm0, %v8271_v0  ;;  %v335_v1 = vld [vmem:[%s5171_s30] sm:$0xff]  ;;  %v337_v2 = vld [vmem:[%s5171_s30 + $0x10] sm:$0xff]  ;;  %s4991_s14 = smov 28   ;;  %s4992_s28 = smov 32  }
  0x11   : > { %296 = vst.msk [vmem:[#allocation2 + $0x78] sm:$0xff] %vm279_vm0, %v8271_v0  ;;  %297 = vst.msk [vmem:[#allocation2 + $0x80] sm:$0xff] %vm279_vm0, %v8271_v0  ;;  %v336_v3 = vld [vmem:[%s5171_s30 + $0x8] sm:$0xff]  ;;  %v339_v4 = vld [vmem:[%s5171_s30 + $0x20] sm:$0xff]  ;;  %s4993_s20 = smov 40   ;;  %s4994_s29 = smov 48  }
  0x12   : > { %299 = vst.msk [vmem:[#allocation2 + $0x90] sm:$0xff] %vm279_vm0, %v8271_v0  ;;  %300 = vst.msk [vmem:[#allocation2 + $0x98] sm:$0xff] %vm279_vm0, %v8271_v0  ;;  %v338_v5 = vld [vmem:[%s5171_s30 + $0x18] sm:$0xff]  ;;  %v341_v6 = vld [vmem:[%s5171_s30 + $0x30] sm:$0xff]  ;;  %vm3946_vm12 = vcmask 326656   ;;  %vm4012_vm13 = vcmask 457728  }
  0x13   : > { %302 = vst.msk [vmem:[#allocation2 + $0xa8] sm:$0xff] %vm279_vm0, %v8271_v0  ;;  %303 = vst.msk [vmem:[#allocation2 + $0xb0] sm:$0xff] %vm279_vm0, %v8271_v0  ;;  %v432_v7 = vld [vmem:[#allocation2 + $0x1] sm:$0xff]  ;;  %v342_v11 = vld [vmem:[%s5171_s30 + $0x38] sm:$0xff]  ;;  %vm3979_vm14 = vcmask 392192   ;;  %vm4045_vm15 = vcmask 523264  }
  0x14   : > { %305 = vst.msk [vmem:[#allocation2 + $0xc0] sm:$0xff] %vm279_vm0, %v8271_v0  ;;  %306 = vst.msk [vmem:[#allocation2 + $0xc8] sm:$0xff] %vm279_vm0, %v8271_v0  ;;  %v340_v9 = vld [vmem:[%s5171_s30 + $0x28] sm:$0xff]  ;;  %721 = vrot.lane.b32.xlu0 %v432_v7, %s4985_s8  ;;  %v343_v10 = vld [vmem:[%s5171_s30 + $0x40] sm:$0xff] }
  0x15   : > { %308 = vst.msk [vmem:[#allocation2 + $0xd8] sm:$0xff] %vm279_vm0, %v8271_v0  ;;  %309 = vst.msk [vmem:[#allocation2 + $0xe0] sm:$0xff] %vm279_vm0, %v8271_v0  ;;  %v345_v12 = vld [vmem:[%s5171_s30 + $0x50] sm:$0xff]  ;;  %v344_v13 = vld [vmem:[%s5171_s30 + $0x48] sm:$0xff] }
  0x16   : > { %311 = vst.msk [vmem:[#allocation2 + $0xf0] sm:$0xff] %vm279_vm0, %v8271_v0  ;;  %312 = vst.msk [vmem:[#allocation2 + $0xf8] sm:$0xff] %vm279_vm0, %v8271_v0  ;;  %v347_v14 = vld [vmem:[%s5171_s30 + $0x60] sm:$0xff]  ;;  %v346_v15 = vld [vmem:[%s5171_s30 + $0x58] sm:$0xff] }
  0x17   : > { %314 = vst.msk [vmem:[#allocation2 + $0x108] sm:$0xff] %vm279_vm0, %v8271_v0  ;;  %315 = vst.msk [vmem:[#allocation2 + $0x110] sm:$0xff] %vm279_vm0, %v8271_v0  ;;  %v349_v16 = vld [vmem:[%s5171_s30 + $0x70] sm:$0xff]  ;;  %v348_v17 = vld [vmem:[%s5171_s30 + $0x68] sm:$0xff] }
  0x18   : > { %317 = vst.msk [vmem:[#allocation2 + $0x120] sm:$0xff] %vm279_vm0, %v8271_v0  ;;  %318 = vst.msk [vmem:[#allocation2 + $0x128] sm:$0xff] %vm279_vm0, %v8271_v0  ;;  %v351_v18 = vld [vmem:[%s5171_s30 + $0x80] sm:$0xff]  ;;  %v350_v19 = vld [vmem:[%s5171_s30 + $0x78] sm:$0xff] }
  0x19   : > { %320 = vst.msk [vmem:[#allocation2 + $0x138] sm:$0xff] %vm279_vm0, %v8271_v0  ;;  %321 = vst.msk [vmem:[#allocation2 + $0x140] sm:$0xff] %vm279_vm0, %v8271_v0  ;;  %v353_v20 = vld [vmem:[%s5171_s30 + $0x90] sm:$0xff]  ;;  %v352_v21 = vld [vmem:[%s5171_s30 + $0x88] sm:$0xff] }
  0x1a   : > { %323 = vst.msk [vmem:[#allocation2 + $0x150] sm:$0xff] %vm279_vm0, %v8271_v0  ;;  %324 = vst.msk [vmem:[#allocation2 + $0x158] sm:$0xff] %vm279_vm0, %v8271_v0  ;;  %v355_v22 = vld [vmem:[%s5171_s30 + $0xa0] sm:$0xff]  ;;  %v354_v23 = vld [vmem:[%s5171_s30 + $0x98] sm:$0xff] }
  0x1b   : > { %326 = vst.msk [vmem:[#allocation2 + $0x168] sm:$0xff] %vm279_vm0, %v8271_v0  ;;  %327 = vst.msk [vmem:[#allocation2 + $0x170] sm:$0xff] %vm279_vm0, %v8271_v0  ;;  %v357_v24 = vld [vmem:[%s5171_s30 + $0xb0] sm:$0xff]  ;;  %v356_v28 = vld [vmem:[%s5171_s30 + $0xa8] sm:$0xff] }
  0x1c   : > { %329 = vst.msk [vmem:[#allocation2 + $0x180] sm:$0xff] %vm279_vm0, %v8271_v0  ;;  %330 = vst.msk [vmem:[#allocation2 + $0x188] sm:$0xff] %vm279_vm0, %v8271_v0  ;;  %v359_v29 = vld [vmem:[%s5171_s30 + $0xc0] sm:$0xff]  ;;  %v358_v33 = vld [vmem:[%s5171_s30 + $0xb8] sm:$0xff] }
  0x1d   : > { %332 = vst.msk [vmem:[#allocation2 + $0x198] sm:$0xff] %vm279_vm0, %v8271_v0  ;;  %333 = vst.msk [vmem:[#allocation2 + $0x1a0] sm:$0xff] %vm279_vm0, %v8271_v0  ;;  %v361_v34 = vld [vmem:[%s5171_s30 + $0xd0] sm:$0xff]  ;;  %v360_v35 = vld [vmem:[%s5171_s30 + $0xc8] sm:$0xff] }
  0x1e   : > { %283 = vst.msk [vmem:[#allocation2 + $0x10] sm:$0x3] %vm282_vm1, %v8271_v0  ;;  %286 = vst.msk [vmem:[#allocation2 + $0x28] sm:$0x3] %vm282_vm1, %v8271_v0  ;;  %v363_v36 = vld [vmem:[%s5171_s30 + $0xe0] sm:$0xff]  ;;  %v362_v37 = vld [vmem:[%s5171_s30 + $0xd8] sm:$0xff] }
  0x1f   : > { %289 = vst.msk [vmem:[#allocation2 + $0x40] sm:$0x3] %vm282_vm1, %v8271_v0  ;;  %292 = vst.msk [vmem:[#allocation2 + $0x58] sm:$0x3] %vm282_vm1, %v8271_v0  ;;  %v364_v39 = vld [vmem:[%s5171_s30 + $0xe8] sm:$0xff]  ;;  %v365_v58 = vld [vmem:[%s5171_s30 + $0xf0] sm:$0xff] }
  0x20   : > { %295 = vst.msk [vmem:[#allocation2 + $0x70] sm:$0x3] %vm282_vm1, %v8271_v0  ;;  %298 = vst.msk [vmem:[#allocation2 + $0x88] sm:$0x3] %vm282_vm1, %v8271_v0  ;;  %v366_v62 = vld [vmem:[%s5171_s30 + $0xf8] sm:$0xff] }
  0x21   : > { %301 = vst.msk [vmem:[#allocation2 + $0xa0] sm:$0x3] %vm282_vm1, %v8271_v0  ;;  %304 = vst.msk [vmem:[#allocation2 + $0xb8] sm:$0x3] %vm282_vm1, %v8271_v0 }
  0x22   : > { %307 = vst.msk [vmem:[#allocation2 + $0xd0] sm:$0x3] %vm282_vm1, %v8271_v0  ;;  %310 = vst.msk [vmem:[#allocation2 + $0xe8] sm:$0x3] %vm282_vm1, %v8271_v0 }
  0x23   : > { %313 = vst.msk [vmem:[#allocation2 + $0x100] sm:$0x3] %vm282_vm1, %v8271_v0  ;;  %316 = vst.msk [vmem:[#allocation2 + $0x118] sm:$0x3] %vm282_vm1, %v8271_v0 }
  0x24   : > { %319 = vst.msk [vmem:[#allocation2 + $0x130] sm:$0x3] %vm282_vm1, %v8271_v0  ;;  %322 = vst.msk [vmem:[#allocation2 + $0x148] sm:$0x3] %vm282_vm1, %v8271_v0 }
  0x25   : > { %325 = vst.msk [vmem:[#allocation2 + $0x160] sm:$0x3] %vm282_vm1, %v8271_v0  ;;  %328 = vst.msk [vmem:[#allocation2 + $0x178] sm:$0x3] %vm282_vm1, %v8271_v0  ;;  %v433_v8 = vld [vmem:[#allocation2 + $0x9] sm:$0xff] }
  0x26   : > { %331 = vst.msk [vmem:[#allocation2 + $0x190] sm:$0x3] %vm282_vm1, %v8271_v0  ;;  %334 = vst.msk [vmem:[#allocation2 + $0x1a8] sm:$0x3] %vm282_vm1, %v8271_v0  ;;  %723 = vrot.lane.b32.xlu0 %v433_v8, %s4985_s8 }
  0x27   : > { %368 = vst.msk [vmem:[#allocation2 + $0x19] sm:$0xff] %vm279_vm0, %v335_v1  ;;  %370 = vst.msk [vmem:[#allocation2 + $0x31] sm:$0xff] %vm279_vm0, %v337_v2  ;;  %v464_v1 = vld [vmem:[#allocation2 + $0x2] sm:$0xff] }
  0x28   : > { %369 = vst.msk [vmem:[#allocation2 + $0x21] sm:$0xff] %vm279_vm0, %v336_v3  ;;  %372 = vst.msk [vmem:[#allocation2 + $0x49] sm:$0xff] %vm279_vm0, %v339_v4  ;;  %v465_v4 = vld [vmem:[#allocation2 + $0xa] sm:$0xff] }
  0x29   : > { %371 = vst.msk [vmem:[#allocation2 + $0x39] sm:$0xff] %vm279_vm0, %v338_v5  ;;  %374 = vst.msk [vmem:[#allocation2 + $0x61] sm:$0xff] %vm279_vm0, %v341_v6 }
  0x2a   : > { %373 = vst.msk [vmem:[#allocation2 + $0x51] sm:$0xff] %vm279_vm0, %v340_v9  ;;  %376 = vst.msk [vmem:[#allocation2 + $0x79] sm:$0xff] %vm279_vm0, %v343_v10 }
  0x2b   : > { %375 = vst.msk [vmem:[#allocation2 + $0x69] sm:$0xff] %vm279_vm0, %v342_v11  ;;  %378 = vst.msk [vmem:[#allocation2 + $0x91] sm:$0xff] %vm279_vm0, %v345_v12 }
  0x2c   : > { %377 = vst.msk [vmem:[#allocation2 + $0x81] sm:$0xff] %vm279_vm0, %v344_v13  ;;  %380 = vst.msk [vmem:[#allocation2 + $0xa9] sm:$0xff] %vm279_vm0, %v347_v14 }
  0x2d   : > { %379 = vst.msk [vmem:[#allocation2 + $0x99] sm:$0xff] %vm279_vm0, %v346_v15  ;;  %382 = vst.msk [vmem:[#allocation2 + $0xc1] sm:$0xff] %vm279_vm0, %v349_v16 }
  0x2e   : > { %381 = vst.msk [vmem:[#allocation2 + $0xb1] sm:$0xff] %vm279_vm0, %v348_v17  ;;  %384 = vst.msk [vmem:[#allocation2 + $0xd9] sm:$0xff] %vm279_vm0, %v351_v18  ;;  %v5216_v25 = vld [vmem:[#allocation2 + $0x19] sm:$0xff]  ;;  %v5218_v26 = vld [vmem:[#allocation2 + $0x31] sm:$0xff] }
  0x2f   : > { %383 = vst.msk [vmem:[#allocation2 + $0xc9] sm:$0xff] %vm279_vm0, %v350_v19  ;;  %386 = vst.msk [vmem:[#allocation2 + $0xf1] sm:$0xff] %vm279_vm0, %v353_v20  ;;  %725 = vrot.lane.b32.xlu1 %v5216_v25, %s4985_s8  ;;  %v5225_v27 = vld [vmem:[#allocation2 + $0x21] sm:$0xff]  ;;  %729 = vrot.lane.b32.xlu0 %v5218_v26, %s4985_s8  ;;  %v5233_v30 = vld [vmem:[#allocation2 + $0x49] sm:$0xff] }
  0x30   : > { %385 = vst.msk [vmem:[#allocation2 + $0xe1] sm:$0xff] %vm279_vm0, %v352_v21  ;;  %388 = vst.msk [vmem:[#allocation2 + $0x109] sm:$0xff] %vm279_vm0, %v355_v22  ;;  %v5237_v31 = vld [vmem:[#allocation2 + $0x39] sm:$0xff]  ;;  %v5241_v32 = vld [vmem:[#allocation2 + $0x61] sm:$0xff] }
  0x31   : > { %387 = vst.msk [vmem:[#allocation2 + $0xf9] sm:$0xff] %vm279_vm0, %v354_v23  ;;  %390 = vst.msk [vmem:[#allocation2 + $0x121] sm:$0xff] %vm279_vm0, %v357_v24  ;;  %v5253_v38 = vld [vmem:[#allocation2 + $0x51] sm:$0xff]  ;;  %v5261_v40 = vld [vmem:[#allocation2 + $0x79] sm:$0xff] }
  0x32   : > { %389 = vst.msk [vmem:[#allocation2 + $0x111] sm:$0xff] %vm279_vm0, %v356_v28  ;;  %392 = vst.msk [vmem:[#allocation2 + $0x139] sm:$0xff] %vm279_vm0, %v359_v29  ;;  %v5265_v41 = vld [vmem:[#allocation2 + $0x69] sm:$0xff]  ;;  %v5269_v42 = vld [vmem:[#allocation2 + $0x91] sm:$0xff] }
  0x33   : > { %727 = vrot.lane.b32.xlu1 %v5225_v27, %s4985_s8  ;;  %733 = vrot.lane.b32.xlu0 %v5233_v30, %s4985_s8  ;;  %391 = vst.msk [vmem:[#allocation2 + $0x129] sm:$0xff] %vm279_vm0, %v358_v33  ;;  %394 = vst.msk [vmem:[#allocation2 + $0x151] sm:$0xff] %vm279_vm0, %v361_v34  ;;  %v5273_v43 = vld [vmem:[#allocation2 + $0x81] sm:$0xff]  ;;  %v5277_v44 = vld [vmem:[#allocation2 + $0xa9] sm:$0xff] }
  0x34   : > { %393 = vst.msk [vmem:[#allocation2 + $0x141] sm:$0xff] %vm279_vm0, %v360_v35  ;;  %396 = vst.msk [vmem:[#allocation2 + $0x169] sm:$0xff] %vm279_vm0, %v363_v36  ;;  %v5281_v45 = vld [vmem:[#allocation2 + $0x99] sm:$0xff]  ;;  %v5285_v46 = vld [vmem:[#allocation2 + $0xc1] sm:$0xff] }
  0x35   : > { %395 = vst.msk [vmem:[#allocation2 + $0x159] sm:$0xff] %vm279_vm0, %v362_v37  ;;  %397 = vst.msk [vmem:[#allocation2 + $0x171] sm:$0xff] %vm279_vm0, %v364_v39  ;;  %v5289_v47 = vld [vmem:[#allocation2 + $0xb1] sm:$0xff]  ;;  %v5293_v48 = vld [vmem:[#allocation2 + $0xd9] sm:$0xff] }
  0x36   : > { %v5297_v49 = vld [vmem:[#allocation2 + $0xc9] sm:$0xff]  ;;  %v5301_v50 = vld [vmem:[#allocation2 + $0xf1] sm:$0xff]  ;;  %2417 = vst.msk [vmem:[#allocation3] sm:$0xff] %vm1745_vm2, %v8271_v0  ;;  %2418 = vst.msk [vmem:[#allocation3 + $0x8] sm:$0xff] %vm1745_vm2, %v8271_v0 }
  0x37   : > { %731 = vrot.lane.b32.xlu1 %v5237_v31, %s4985_s8  ;;  %737 = vrot.lane.b32.xlu0 %v5241_v32, %s4985_s8  ;;  %v5305_v51 = vld [vmem:[#allocation2 + $0xe1] sm:$0xff]  ;;  %v5309_v52 = vld [vmem:[#allocation2 + $0x109] sm:$0xff]  ;;  %2421 = vst.msk [vmem:[#allocation3 + $0x18] sm:$0xff] %vm1745_vm2, %v8271_v0  ;;  %2422 = vst.msk [vmem:[#allocation3 + $0x20] sm:$0xff] %vm1745_vm2, %v8271_v0 }
  0x38   : > { %v5313_v53 = vld [vmem:[#allocation2 + $0xf9] sm:$0xff]  ;;  %v5317_v54 = vld [vmem:[#allocation2 + $0x121] sm:$0xff]  ;;  %2424 = vst.msk [vmem:[#allocation3 + $0x30] sm:$0xff] %vm1745_vm2, %v8271_v0  ;;  %2425 = vst.msk [vmem:[#allocation3 + $0x38] sm:$0xff] %vm1745_vm2, %v8271_v0 }
  0x39   : > { %v5321_v55 = vld [vmem:[#allocation2 + $0x111] sm:$0xff]  ;;  %v5325_v56 = vld [vmem:[#allocation2 + $0x139] sm:$0xff]  ;;  %2427 = vst.msk [vmem:[#allocation3 + $0x48] sm:$0xff] %vm1745_vm2, %v8271_v0  ;;  %2428 = vst.msk [vmem:[#allocation3 + $0x50] sm:$0xff] %vm1745_vm2, %v8271_v0 }
  0x3a   : > { %2430 = vst.msk [vmem:[#allocation3 + $0x60] sm:$0xff] %vm1745_vm2, %v8271_v0  ;;  %2431 = vst.msk [vmem:[#allocation3 + $0x68] sm:$0xff] %vm1745_vm2, %v8271_v0  ;;  %v5401_v57 = vld [vmem:[#allocation2 + $0x129] sm:$0xff]  ;;  %v5407_v59 = vld [vmem:[#allocation2 + $0x151] sm:$0xff] }
  0x3b   : > { %735 = vrot.lane.b32.xlu1 %v5253_v38, %s4985_s8  ;;  %741 = vrot.lane.b32.xlu0 %v5261_v40, %s4985_s8  ;;  %2433 = vst.msk [vmem:[#allocation3 + $0x78] sm:$0xff] %vm1745_vm2, %v8271_v0  ;;  %2434 = vst.msk [vmem:[#allocation3 + $0x80] sm:$0xff] %vm1745_vm2, %v8271_v0  ;;  %v5411_v60 = vld [vmem:[#allocation2 + $0x141] sm:$0xff]  ;;  %v5415_v61 = vld [vmem:[#allocation2 + $0x169] sm:$0xff] }
  0x3c   : > { %2436 = vst.msk [vmem:[#allocation3 + $0x90] sm:$0xff] %vm1745_vm2, %v8271_v0  ;;  %2437 = vst.msk [vmem:[#allocation3 + $0x98] sm:$0xff] %vm1745_vm2, %v8271_v0  ;;  %v5421_v63 = vld [vmem:[#allocation2 + $0x159] sm:$0xff]  ;;  %v5427_v2 = vld [vmem:[#allocation2 + $0x171] sm:$0xff] }
  0x3d   : > { %2439 = vst.msk [vmem:[#allocation3 + $0xa8] sm:$0xff] %vm1745_vm2, %v8271_v0  ;;  %2440 = vst.msk [vmem:[#allocation3 + $0xb0] sm:$0xff] %vm1745_vm2, %v8271_v0  ;;  %v5430_v3 = vld [vmem:[#allocation2 + $0x1a] sm:$0xff]  ;;  %v5436_v5 = vld [vmem:[#allocation2 + $0x32] sm:$0xff] }
  0x3e   : > { %2442 = vst.msk [vmem:[#allocation3 + $0xc0] sm:$0xff] %vm1745_vm2, %v8271_v0  ;;  %2443 = vst.msk [vmem:[#allocation3 + $0xc8] sm:$0xff] %vm1745_vm2, %v8271_v0  ;;  %v5439_v6 = vld [vmem:[#allocation2 + $0x22] sm:$0xff]  ;;  %v5443_v7 = vld [vmem:[#allocation2 + $0x4a] sm:$0xff] }
  0x3f   : > { %739 = vrot.lane.b32.xlu1 %v5265_v41, %s4985_s8  ;;  %745 = vrot.lane.b32.xlu0 %v5269_v42, %s4985_s8  ;;  %2445 = vst.msk [vmem:[#allocation3 + $0xd8] sm:$0xff] %vm1745_vm2, %v8271_v0  ;;  %2446 = vst.msk [vmem:[#allocation3 + $0xe0] sm:$0xff] %vm1745_vm2, %v8271_v0  ;;  %v5447_v8 = vld [vmem:[#allocation2 + $0x3a] sm:$0xff]  ;;  %v5451_v9 = vld [vmem:[#allocation2 + $0x62] sm:$0xff] }
  0x40   : > { %2448 = vst.msk [vmem:[#allocation3 + $0xf0] sm:$0xff] %vm1745_vm2, %v8271_v0  ;;  %2449 = vst.msk [vmem:[#allocation3 + $0xf8] sm:$0xff] %vm1745_vm2, %v8271_v0  ;;  %v5455_v10 = vld [vmem:[#allocation2 + $0x52] sm:$0xff]  ;;  %v5459_v11 = vld [vmem:[#allocation2 + $0x7a] sm:$0xff] }
  0x41   : > { %2451 = vst.msk [vmem:[#allocation3 + $0x108] sm:$0xff] %vm1745_vm2, %v8271_v0  ;;  %2452 = vst.msk [vmem:[#allocation3 + $0x110] sm:$0xff] %vm1745_vm2, %v8271_v0  ;;  %v5463_v12 = vld [vmem:[#allocation2 + $0x6a] sm:$0xff]  ;;  %v5467_v13 = vld [vmem:[#allocation2 + $0x92] sm:$0xff] }
  0x42   : > { %2454 = vst.msk [vmem:[#allocation3 + $0x120] sm:$0xff] %vm1745_vm2, %v8271_v0  ;;  %2455 = vst.msk [vmem:[#allocation3 + $0x128] sm:$0xff] %vm1745_vm2, %v8271_v0  ;;  %v5471_v14 = vld [vmem:[#allocation2 + $0x82] sm:$0xff]  ;;  %v5475_v15 = vld [vmem:[#allocation2 + $0xaa] sm:$0xff] }
  0x43   : > { %743 = vrot.lane.b32.xlu1 %v5273_v43, %s4985_s8  ;;  %749 = vrot.lane.b32.xlu0 %v5277_v44, %s4985_s8  ;;  %2457 = vst.msk [vmem:[#allocation3 + $0x138] sm:$0xff] %vm1745_vm2, %v8271_v0  ;;  %2458 = vst.msk [vmem:[#allocation3 + $0x140] sm:$0xff] %vm1745_vm2, %v8271_v0  ;;  %v5479_v16 = vld [vmem:[#allocation2 + $0x9a] sm:$0xff]  ;;  %v5483_v17 = vld [vmem:[#allocation2 + $0xc2] sm:$0xff] }
  0x44   : > { %2460 = vst.msk [vmem:[#allocation3 + $0x150] sm:$0xff] %vm1745_vm2, %v8271_v0  ;;  %2461 = vst.msk [vmem:[#allocation3 + $0x158] sm:$0xff] %vm1745_vm2, %v8271_v0  ;;  %v5487_v18 = vld [vmem:[#allocation2 + $0xb2] sm:$0xff]  ;;  %v5491_v19 = vld [vmem:[#allocation2 + $0xda] sm:$0xff] }
  0x45   : > { %2463 = vst.msk [vmem:[#allocation3 + $0x168] sm:$0xff] %vm1745_vm2, %v8271_v0  ;;  %2464 = vst.msk [vmem:[#allocation3 + $0x170] sm:$0xff] %vm1745_vm2, %v8271_v0  ;;  %v5495_v20 = vld [vmem:[#allocation2 + $0xca] sm:$0xff]  ;;  %v5499_v21 = vld [vmem:[#allocation2 + $0xf2] sm:$0xff] }
  0x46   : > { %2466 = vst.msk [vmem:[#allocation3 + $0x180] sm:$0xff] %vm1745_vm2, %v8271_v0  ;;  %2467 = vst.msk [vmem:[#allocation3 + $0x188] sm:$0xff] %vm1745_vm2, %v8271_v0  ;;  %v5503_v22 = vld [vmem:[#allocation2 + $0xe2] sm:$0xff]  ;;  %v5507_v23 = vld [vmem:[#allocation2 + $0x10a] sm:$0xff] }
  0x47   : > { %747 = vrot.lane.b32.xlu1 %v5281_v45, %s4985_s8  ;;  %753 = vrot.lane.b32.xlu0 %v5285_v46, %s4985_s8  ;;  %2469 = vst.msk [vmem:[#allocation3 + $0x198] sm:$0xff] %vm1745_vm2, %v8271_v0  ;;  %2470 = vst.msk [vmem:[#allocation3 + $0x1a0] sm:$0xff] %vm1745_vm2, %v8271_v0  ;;  %v5511_v24 = vld [vmem:[#allocation2 + $0xfa] sm:$0xff]  ;;  %v5515_v28 = vld [vmem:[#allocation2 + $0x122] sm:$0xff] }
  0x48   : > { %398 = vst.msk [vmem:[#allocation2 + $0x181] sm:$0xff] %vm279_vm0, %v365_v58  ;;  %399 = vst.msk [vmem:[#allocation2 + $0x189] sm:$0xff] %vm279_vm0, %v366_v62  ;;  %v5519_v29 = vld [vmem:[#allocation2 + $0x112] sm:$0xff]  ;;  %v5523_v33 = vld [vmem:[#allocation2 + $0x13a] sm:$0xff] }
  0x49   : > { %v5529_v35 = vld [vmem:[#allocation2 + $0x12a] sm:$0xff]  ;;  %v5533_v36 = vld [vmem:[#allocation2 + $0x152] sm:$0xff]  ;;  %v5539_v39 = vld [vmem:[#allocation2 + $0x142] sm:$0xff] }
  0x4a   : > { %8308 = vst [vmem:[#allocation6_spill] sm:$0xff] %v5539_v39  ;;  %v5545_v62 = vld [vmem:[#allocation2 + $0x16a] sm:$0xff] }
  0x4b   : > { %751 = vrot.lane.b32.xlu1 %v5289_v47, %s4985_s8  ;;  %757 = vrot.lane.b32.xlu0 %v5293_v48, %s4985_s8  ;;  %8310 = vst [vmem:[#allocation8_spill] sm:$0xff] %v5545_v62 }
  0x4f   : > { %755 = vrot.lane.b32.xlu1 %v5297_v49, %s4985_s8  ;;  %761 = vrot.lane.b32.xlu0 %v5301_v50, %s4985_s8 }
  0x53   : > { %759 = vrot.lane.b32.xlu1 %v5305_v51, %s4985_s8  ;;  %765 = vrot.lane.b32.xlu0 %v5309_v52, %s4985_s8 }
  0x57   : > { %763 = vrot.lane.b32.xlu1 %v5313_v53, %s4985_s8  ;;  %769 = vrot.lane.b32.xlu0 %v5317_v54, %s4985_s8 }
  0x5b   : > { %767 = vrot.lane.b32.xlu1 %v5321_v55, %s4985_s8  ;;  %773 = vrot.lane.b32.xlu0 %v5325_v56, %s4985_s8 }
  0x5f   : > { %771 = vrot.lane.b32.xlu1 %v5401_v57, %s4985_s8  ;;  %777 = vrot.lane.b32.xlu0 %v5407_v59, %s4985_s8 }
  0x63   : > { %775 = vrot.lane.b32.xlu1 %v5411_v60, %s4985_s8  ;;  %781 = vrot.lane.b32.xlu0 %v5415_v61, %s4985_s8 }
  0x67   : > { %779 = vrot.lane.b32.xlu1 %v5421_v63, %s4985_s8  ;;  %849 = vrot.lane.b32.xlu0 %v464_v1, %s4986_s9 }
  0x6b   : > { %783 = vrot.lane.b32.xlu1 %v5427_v2, %s4985_s8  ;;  %853 = vrot.lane.b32.xlu0 %v5430_v3, %s4986_s9 }
  0x6f   : > { %851 = vrot.lane.b32.xlu1 %v465_v4, %s4986_s9  ;;  %857 = vrot.lane.b32.xlu0 %v5436_v5, %s4986_s9  ;;  %v5551_v4 = vld [vmem:[#allocation2 + $0x15a] sm:$0xff] }
  0x70   : > { %8312 = vst [vmem:[#allocation10_spill] sm:$0xff] %v5551_v4 }
  0x73   : > { %855 = vrot.lane.b32.xlu1 %v5439_v6, %s4986_s9  ;;  %861 = vrot.lane.b32.xlu0 %v5443_v7, %s4986_s9 }
  0x77   : > { %859 = vrot.lane.b32.xlu1 %v5447_v8, %s4986_s9  ;;  %865 = vrot.lane.b32.xlu0 %v5451_v9, %s4986_s9 }
  0x7b   : > { %863 = vrot.lane.b32.xlu1 %v5455_v10, %s4986_s9  ;;  %869 = vrot.lane.b32.xlu0 %v5459_v11, %s4986_s9 }
  0x7f   : > { %867 = vrot.lane.b32.xlu1 %v5463_v12, %s4986_s9  ;;  %873 = vrot.lane.b32.xlu0 %v5467_v13, %s4986_s9 }
  0x83   : > { %871 = vrot.lane.b32.xlu1 %v5471_v14, %s4986_s9  ;;  %877 = vrot.lane.b32.xlu0 %v5475_v15, %s4986_s9 }
  0x86   : > { %v5525_v34 = vpop.permute.xlu0 %721 }
  0x87   : > { %875 = vrot.lane.b32.xlu1 %v5479_v16, %s4986_s9  ;;  %881 = vrot.lane.b32.xlu0 %v5483_v17, %s4986_s9  ;;  %8306 = vst [vmem:[#allocation4_spill] sm:$0xff] %v5525_v34  ;;  %v5561_v34 = vld [vmem:[#allocation2 + $0x172] sm:$0xff] }
  0x88   : > { %8315 = vst [vmem:[#allocation13_spill] sm:$0xff] %v5561_v34 }
  0x8b   : > { %879 = vrot.lane.b32.xlu1 %v5487_v18, %s4986_s9  ;;  %885 = vrot.lane.b32.xlu0 %v5491_v19, %s4986_s9 }
  0x8f   : > { %883 = vrot.lane.b32.xlu1 %v5495_v20, %s4986_s9  ;;  %889 = vrot.lane.b32.xlu0 %v5499_v21, %s4986_s9 }
  0x93   : > { %887 = vrot.lane.b32.xlu1 %v5503_v22, %s4986_s9  ;;  %893 = vrot.lane.b32.xlu0 %v5507_v23, %s4986_s9 }
  0x97   : > { %891 = vrot.lane.b32.xlu1 %v5511_v24, %s4986_s9  ;;  %897 = vrot.lane.b32.xlu0 %v5515_v28, %s4986_s9 }
  0x98   : > { %v5535_v37 = vpop.permute.xlu0 %723 }
  0x99   : > { %8307 = vst [vmem:[#allocation5_spill] sm:$0xff] %v5535_v37 }
  0x9b   : > { %895 = vrot.lane.b32.xlu1 %v5519_v29, %s4986_s9  ;;  %901 = vrot.lane.b32.xlu0 %v5523_v33, %s4986_s9 }
  0x9f   : > { %899 = vrot.lane.b32.xlu1 %v5529_v35, %s4986_s9  ;;  %905 = vrot.lane.b32.xlu0 %v5533_v36, %s4986_s9 }
  0xa1   : > { %v5543_v58 = vpop.permute.xlu1 %725  ;;  %v5547_v1 = vpop.permute.xlu0 %729 }
  0xa2   : > { %8309 = vst [vmem:[#allocation7_spill] sm:$0xff] %v5543_v58  ;;  %8311 = vst [vmem:[#allocation9_spill] sm:$0xff] %v5547_v1  ;;  %v402_v58 = vld [vmem:[#allocation2 + $0x18] sm:$0xff] }
  0xa3   : > { %903 = vrot.lane.b32.xlu1 %v5539_v39, %s4986_s9  ;;  %909 = vrot.lane.b32.xlu0 %v5545_v62, %s4986_s9  ;;  %v5570_v62 = vld [vmem:[#allocation2 + $0x30] sm:$0xff] }
  0xa4   : > { %8318 = vst [vmem:[#allocation16_spill] sm:$0xff] %v5570_v62 }
  0xa5   : > { %v5555_v0 = vpop.permute.xlu1 %727  ;;  %v5557_v37 = vpop.permute.xlu0 %733 }
  0xa6   : > { %8313 = vst [vmem:[#allocation11_spill] sm:$0xff] %v5555_v0  ;;  %8314 = vst [vmem:[#allocation12_spill] sm:$0xff] %v5557_v37  ;;  %v403_v0 = vld [vmem:[#allocation2 + $0x20] sm:$0xff] }
  0xa7   : > { %907 = vrot.lane.b32.xlu1 %v5551_v4, %s4986_s9  ;;  %977 = vrot.lane.b32.xlu0 %v402_v58, %s4987_s10  ;;  %v5579_v58 = vld [vmem:[#allocation2 + $0x48] sm:$0xff] }
  0xa8   : > { %8321 = vst [vmem:[#allocation19_spill] sm:$0xff] %v5579_v58 }
  0xa9   : > { %v5564_v1 = vpop.permute.xlu1 %731  ;;  %v5566_v39 = vpop.permute.xlu0 %737 }
  0xaa   : > { %8316 = vst [vmem:[#allocation14_spill] sm:$0xff] %v5564_v1  ;;  %8317 = vst [vmem:[#allocation15_spill] sm:$0xff] %v5566_v39  ;;  %v5585_v1 = vld [vmem:[#allocation2 + $0x38] sm:$0xff] }
  0xab   : > { %911 = vrot.lane.b32.xlu1 %v5561_v34, %s4986_s9  ;;  %981 = vrot.lane.b32.xlu0 %v5570_v62, %s4987_s10  ;;  %8323 = vst [vmem:[#allocation21_spill] sm:$0xff] %v5585_v1 }
  0xad   : > { %v5574_v37 = vpop.permute.xlu1 %735  ;;  %v5576_v4 = vpop.permute.xlu0 %741 }
  0xae   : > { %8319 = vst [vmem:[#allocation17_spill] sm:$0xff] %v5574_v37  ;;  %8320 = vst [vmem:[#allocation18_spill] sm:$0xff] %v5576_v4  ;;  %v5591_v37 = vld [vmem:[#allocation2 + $0x60] sm:$0xff]  ;;  %v5597_v4 = vld [vmem:[#allocation2 + $0x50] sm:$0xff] }
  0xaf   : > { %979 = vrot.lane.b32.xlu1 %v403_v0, %s4987_s10  ;;  %985 = vrot.lane.b32.xlu0 %v5579_v58, %s4987_s10  ;;  %8325 = vst [vmem:[#allocation23_spill] sm:$0xff] %v5591_v37  ;;  %8327 = vst [vmem:[#allocation25_spill] sm:$0xff] %v5597_v4 }
  0xb1   : > { %v5583_v39 = vpop.permute.xlu1 %739  ;;  %v5587_v34 = vpop.permute.xlu0 %745 }
  0xb2   : > { %8322 = vst [vmem:[#allocation20_spill] sm:$0xff] %v5583_v39  ;;  %8324 = vst [vmem:[#allocation22_spill] sm:$0xff] %v5587_v34  ;;  %v5603_v39 = vld [vmem:[#allocation2 + $0x78] sm:$0xff] }
  0xb3   : > { %983 = vrot.lane.b32.xlu1 %v5585_v1, %s4987_s10  ;;  %989 = vrot.lane.b32.xlu0 %v5591_v37, %s4987_s10  ;;  %8329 = vst [vmem:[#allocation27_spill] sm:$0xff] %v5603_v39  ;;  %v5609_v1 = vld [vmem:[#allocation2 + $0x68] sm:$0xff] }
  0xb4   : > { %8331 = vst [vmem:[#allocation29_spill] sm:$0xff] %v5609_v1 }
  0xb5   : > { %v5595_v0 = vpop.permute.xlu1 %743  ;;  %v5599_v62 = vpop.permute.xlu0 %749 }
  0xb6   : > { %8326 = vst [vmem:[#allocation24_spill] sm:$0xff] %v5595_v0  ;;  %8328 = vst [vmem:[#allocation26_spill] sm:$0xff] %v5599_v62  ;;  %v5615_v0 = vld [vmem:[#allocation2 + $0x90] sm:$0xff] }
  0xb7   : > { %987 = vrot.lane.b32.xlu1 %v5597_v4, %s4987_s10  ;;  %993 = vrot.lane.b32.xlu0 %v5603_v39, %s4987_s10  ;;  %8333 = vst [vmem:[#allocation31_spill] sm:$0xff] %v5615_v0  ;;  %v5621_v4 = vld [vmem:[#allocation2 + $0x80] sm:$0xff] }
  0xb8   : > { %8335 = vst [vmem:[#allocation33_spill] sm:$0xff] %v5621_v4 }
  0xb9   : > { %v5607_v34 = vpop.permute.xlu1 %747  ;;  %v5611_v58 = vpop.permute.xlu0 %753 }
  0xba   : > { %8330 = vst [vmem:[#allocation28_spill] sm:$0xff] %v5607_v34  ;;  %8332 = vst [vmem:[#allocation30_spill] sm:$0xff] %v5611_v58  ;;  %v5627_v34 = vld [vmem:[#allocation2 + $0xa8] sm:$0xff] }
  0xbb   : > { %991 = vrot.lane.b32.xlu1 %v5609_v1, %s4987_s10  ;;  %997 = vrot.lane.b32.xlu0 %v5615_v0, %s4987_s10  ;;  %8337 = vst [vmem:[#allocation35_spill] sm:$0xff] %v5627_v34  ;;  %v5633_v1 = vld [vmem:[#allocation2 + $0x98] sm:$0xff] }
  0xbc   : > { %8339 = vst [vmem:[#allocation37_spill] sm:$0xff] %v5633_v1 }
  0xbd   : > { %v5619_v62 = vpop.permute.xlu1 %751  ;;  %v5623_v37 = vpop.permute.xlu0 %757 }
  0xbe   : > { %8334 = vst [vmem:[#allocation32_spill] sm:$0xff] %v5619_v62  ;;  %8336 = vst [vmem:[#allocation34_spill] sm:$0xff] %v5623_v37  ;;  %v5639_v62 = vld [vmem:[#allocation2 + $0xc0] sm:$0xff] }
  0xbf   : > { %995 = vrot.lane.b32.xlu1 %v5621_v4, %s4987_s10  ;;  %1001 = vrot.lane.b32.xlu0 %v5627_v34, %s4987_s10  ;;  %8341 = vst [vmem:[#allocation39_spill] sm:$0xff] %v5639_v62  ;;  %v5645_v4 = vld [vmem:[#allocation2 + $0xb0] sm:$0xff] }
  0xc0   : > { %8343 = vst [vmem:[#allocation41_spill] sm:$0xff] %v5645_v4 }
  0xc1   : > { %v5631_v58 = vpop.permute.xlu1 %755  ;;  %v5635_v39 = vpop.permute.xlu0 %761 }
  0xc2   : > { %8338 = vst [vmem:[#allocation36_spill] sm:$0xff] %v5631_v58  ;;  %8340 = vst [vmem:[#allocation38_spill] sm:$0xff] %v5635_v39  ;;  %v5651_v58 = vld [vmem:[#allocation2 + $0xd8] sm:$0xff] }
  0xc3   : > { %999 = vrot.lane.b32.xlu1 %v5633_v1, %s4987_s10  ;;  %1005 = vrot.lane.b32.xlu0 %v5639_v62, %s4987_s10  ;;  %8345 = vst [vmem:[#allocation43_spill] sm:$0xff] %v5651_v58  ;;  %v5657_v1 = vld [vmem:[#allocation2 + $0xc8] sm:$0xff] }
  0xc4   : > { %8347 = vst [vmem:[#allocation45_spill] sm:$0xff] %v5657_v1 }
  0xc5   : > { %v5643_v37 = vpop.permute.xlu1 %759  ;;  %v5647_v0 = vpop.permute.xlu0 %765 }
  0xc6   : > { %8342 = vst [vmem:[#allocation40_spill] sm:$0xff] %v5643_v37  ;;  %8344 = vst [vmem:[#allocation42_spill] sm:$0xff] %v5647_v0  ;;  %v5663_v37 = vld [vmem:[#allocation2 + $0xf0] sm:$0xff] }
  0xc7   : > { %1003 = vrot.lane.b32.xlu1 %v5645_v4, %s4987_s10  ;;  %1009 = vrot.lane.b32.xlu0 %v5651_v58, %s4987_s10  ;;  %8349 = vst [vmem:[#allocation47_spill] sm:$0xff] %v5663_v37  ;;  %v5669_v4 = vld [vmem:[#allocation2 + $0xe0] sm:$0xff] }
  0xc8   : > { %8351 = vst [vmem:[#allocation49_spill] sm:$0xff] %v5669_v4 }
  0xc9   : > { %v5655_v39 = vpop.permute.xlu1 %763  ;;  %v5659_v34 = vpop.permute.xlu0 %769 }
  0xca   : > { %8346 = vst [vmem:[#allocation44_spill] sm:$0xff] %v5655_v39  ;;  %8348 = vst [vmem:[#allocation46_spill] sm:$0xff] %v5659_v34  ;;  %v5675_v39 = vld [vmem:[#allocation2 + $0x108] sm:$0xff] }
  0xcb   : > { %1007 = vrot.lane.b32.xlu1 %v5657_v1, %s4987_s10  ;;  %1013 = vrot.lane.b32.xlu0 %v5663_v37, %s4987_s10  ;;  %8353 = vst [vmem:[#allocation51_spill] sm:$0xff] %v5675_v39  ;;  %v5681_v1 = vld [vmem:[#allocation2 + $0xf8] sm:$0xff] }
  0xcc   : > { %8355 = vst [vmem:[#allocation53_spill] sm:$0xff] %v5681_v1 }
  0xcd   : > { %v5667_v0 = vpop.permute.xlu1 %767  ;;  %v5671_v62 = vpop.permute.xlu0 %773 }
  0xce   : > { %8350 = vst [vmem:[#allocation48_spill] sm:$0xff] %v5667_v0  ;;  %8352 = vst [vmem:[#allocation50_spill] sm:$0xff] %v5671_v62  ;;  %v5687_v0 = vld [vmem:[#allocation2 + $0x120] sm:$0xff] }
  0xcf   : > { %1011 = vrot.lane.b32.xlu1 %v5669_v4, %s4987_s10  ;;  %1017 = vrot.lane.b32.xlu0 %v5675_v39, %s4987_s10  ;;  %8357 = vst [vmem:[#allocation55_spill] sm:$0xff] %v5687_v0  ;;  %v5693_v4 = vld [vmem:[#allocation2 + $0x110] sm:$0xff] }
  0xd0   : > { %8359 = vst [vmem:[#allocation57_spill] sm:$0xff] %v5693_v4 }
  0xd1   : > { %v5679_v34 = vpop.permute.xlu1 %771  ;;  %v5683_v58 = vpop.permute.xlu0 %777 }
  0xd2   : > { %8354 = vst [vmem:[#allocation52_spill] sm:$0xff] %v5679_v34  ;;  %8356 = vst [vmem:[#allocation54_spill] sm:$0xff] %v5683_v58  ;;  %v5699_v34 = vld [vmem:[#allocation2 + $0x138] sm:$0xff] }
  0xd3   : > { %1015 = vrot.lane.b32.xlu1 %v5681_v1, %s4987_s10  ;;  %1021 = vrot.lane.b32.xlu0 %v5687_v0, %s4987_s10  ;;  %8361 = vst [vmem:[#allocation59_spill] sm:$0xff] %v5699_v34  ;;  %v5705_v1 = vld [vmem:[#allocation2 + $0x128] sm:$0xff] }
  0xd4   : > { %8363 = vst [vmem:[#allocation61_spill] sm:$0xff] %v5705_v1 }
  0xd5   : > { %v5691_v62 = vpop.permute.xlu1 %775  ;;  %v5695_v37 = vpop.permute.xlu0 %781 }
  0xd6   : > { %8358 = vst [vmem:[#allocation56_spill] sm:$0xff] %v5691_v62  ;;  %8360 = vst [vmem:[#allocation58_spill] sm:$0xff] %v5695_v37  ;;  %v5711_v62 = vld [vmem:[#allocation2 + $0x150] sm:$0xff] }
  0xd7   : > { %1019 = vrot.lane.b32.xlu1 %v5693_v4, %s4987_s10  ;;  %1025 = vrot.lane.b32.xlu0 %v5699_v34, %s4987_s10  ;;  %8365 = vst [vmem:[#allocation63_spill] sm:$0xff] %v5711_v62  ;;  %v5717_v4 = vld [vmem:[#allocation2 + $0x140] sm:$0xff] }
  0xd8   : > { %8367 = vst [vmem:[#allocation65_spill] sm:$0xff] %v5717_v4  ;;  %v5731_v34 = vld [vmem:[#allocation2 + $0x180] sm:$0xff] }
  0xd9   : > { %v5703_v58 = vpop.permute.xlu1 %779  ;;  %v5707_v39 = vpop.permute.xlu0 %849 }
  0xda   : > { %8362 = vst [vmem:[#allocation60_spill] sm:$0xff] %v5703_v58  ;;  %8364 = vst [vmem:[#allocation62_spill] sm:$0xff] %v5707_v39  ;;  %v5723_v58 = vld [vmem:[#allocation2 + $0x168] sm:$0xff] }
  0xdb   : > { %1023 = vrot.lane.b32.xlu1 %v5705_v1, %s4987_s10  ;;  %1029 = vrot.lane.b32.xlu0 %v5711_v62, %s4987_s10  ;;  %v5729_v1 = vld [vmem:[#allocation2 + $0x158] sm:$0xff] }
  0xdc   : > { %8370 = vst [vmem:[#allocation68_spill] sm:$0xff] %v5729_v1 }
  0xdd   : > { %v5715_v37 = vpop.permute.xlu1 %783  ;;  %v5719_v0 = vpop.permute.xlu0 %853 }
  0xde   : > { %8366 = vst [vmem:[#allocation64_spill] sm:$0xff] %v5715_v37  ;;  %8368 = vst [vmem:[#allocation66_spill] sm:$0xff] %v5719_v0  ;;  %v5741_v0 = vld [vmem:[#allocation2 + $0x170] sm:$0xff] }
  0xdf   : > { %1027 = vrot.lane.b32.xlu1 %v5717_v4, %s4987_s10  ;;  %1033 = vrot.lane.b32.xlu0 %v5723_v58, %s4987_s10 }
  0xe1   : > { %v5727_v39 = vpop.permute.xlu1 %851  ;;  %v5733_v62 = vpop.permute.xlu0 %857 }
  0xe2   : > { %8369 = vst [vmem:[#allocation67_spill] sm:$0xff] %v5727_v39  ;;  %8371 = vst [vmem:[#allocation69_spill] sm:$0xff] %v5733_v62  ;;  %v5747_v39 = vld [vmem:[#allocation2 + $0x188] sm:$0xff] }
  0xe3   : > { %1031 = vrot.lane.b32.xlu1 %v5729_v1, %s4987_s10  ;;  %1037 = vrot.lane.b32.xlu0 %v5731_v34, %s4987_s10 }
  0xe5   : > { %v5739_v37 = vpop.permute.xlu1 %855  ;;  %v5743_v4 = vpop.permute.xlu0 %861 }
  0xe6   : > { %8372 = vst [vmem:[#allocation70_spill] sm:$0xff] %v5739_v37  ;;  %8373 = vst [vmem:[#allocation71_spill] sm:$0xff] %v5743_v4 }
  0xe7   : > { %1035 = vrot.lane.b32.xlu1 %v5741_v0, %s4987_s10  ;;  %1105 = vrot.lane.b32.xlu0 %v5216_v25, %s4988_s11 }
  0xe9   : > { %v5751_v62 = vpop.permute.xlu1 %859  ;;  %v5753_v1 = vpop.permute.xlu0 %865 }
  0xea   : > { %8374 = vst [vmem:[#allocation72_spill] sm:$0xff] %v5751_v62  ;;  %8375 = vst [vmem:[#allocation73_spill] sm:$0xff] %v5753_v1 }
  0xeb   : > { %1039 = vrot.lane.b32.xlu1 %v5747_v39, %s4987_s10  ;;  %1109 = vrot.lane.b32.xlu0 %v5218_v26, %s4988_s11 }
  0xed   : > { %v5759_v4 = vpop.permute.xlu1 %863  ;;  %v5761_v37 = vpop.permute.xlu0 %869 }
  0xef   : > { %1107 = vrot.lane.b32.xlu1 %v5225_v27, %s4988_s11  ;;  %1113 = vrot.lane.b32.xlu0 %v5233_v30, %s4988_s11 }
  0xf1   : > { %v5767_v25 = vpop.permute.xlu1 %867  ;;  %v5769_v62 = vpop.permute.xlu0 %873 }
  0xf2   : > { %8376 = vst [vmem:[#allocation74_spill] sm:$0xff] %v5769_v62 }
  0xf3   : > { %1111 = vrot.lane.b32.xlu1 %v5237_v31, %s4988_s11  ;;  %1117 = vrot.lane.b32.xlu0 %v5241_v32, %s4988_s11 }
  0xf5   : > { %v5775_v26 = vpop.permute.xlu1 %871  ;;  %v5777_v1 = vpop.permute.xlu0 %877 }
  0xf6   : > { %8377 = vst [vmem:[#allocation75_spill] sm:$0xff] %v5775_v26  ;;  %8378 = vst [vmem:[#allocation76_spill] sm:$0xff] %v5777_v1  ;;  %v671_v1 = vld [vmem:[#allocation2 + $0xda] sm:$0xff] }
  0xf7   : > { %1115 = vrot.lane.b32.xlu1 %v5253_v38, %s4988_s11  ;;  %1121 = vrot.lane.b32.xlu0 %v5261_v40, %s4988_s11  ;;  %v8524_v26 = vld [vmem:[#allocation4_spill] sm:$0xff] }
  0xf9   : > { %v5783_v27 = vpop.permute.xlu1 %875  ;;  %v5785_v30 = vpop.permute.xlu0 %881 }
  0xfa   : > { %8379 = vst [vmem:[#allocation77_spill] sm:$0xff] %v5783_v27  ;;  %8380 = vst [vmem:[#allocation78_spill] sm:$0xff] %v5785_v30  ;;  %v673_v27 = vld [vmem:[#allocation2 + $0xf2] sm:$0xff] }
  0xfb   : > { %1119 = vrot.lane.b32.xlu1 %v5265_v41, %s4988_s11  ;;  %1125 = vrot.lane.b32.xlu0 %v5269_v42, %s4988_s11 }
  0xfd   : > { %v5791_v31 = vpop.permute.xlu1 %879  ;;  %v5793_v32 = vpop.permute.xlu0 %885 }
  0xfe   : > { %8381 = vst [vmem:[#allocation79_spill] sm:$0xff] %v5791_v31  ;;  %8382 = vst [vmem:[#allocation80_spill] sm:$0xff] %v5793_v32  ;;  %v637_v31 = vld [vmem:[#allocation2 + $0xc1] sm:$0xff] }
  0xff   : > { %1123 = vrot.lane.b32.xlu1 %v5273_v43, %s4988_s11  ;;  %1129 = vrot.lane.b32.xlu0 %v5277_v44, %s4988_s11 }
 0x101   : > { %v5799_v38 = vpop.permute.xlu1 %883  ;;  %v5801_v40 = vpop.permute.xlu0 %889 }
 0x102   : > { %8383 = vst [vmem:[#allocation81_spill] sm:$0xff] %v5799_v38  ;;  %8384 = vst [vmem:[#allocation82_spill] sm:$0xff] %v5801_v40  ;;  %v8443_v40 = vld [vmem:[#allocation41_spill] sm:$0xff]  ;;  %v631_v38 = vld [vmem:[#allocation2 + $0x79] sm:$0xff] }
 0x103   : > { %1127 = vrot.lane.b32.xlu1 %v5281_v45, %s4988_s11  ;;  %1133 = vrot.lane.b32.xlu0 %v5285_v46, %s4988_s11 }
 0x105   : > { %v5807_v41 = vpop.permute.xlu1 %887  ;;  %v5809_v42 = vpop.permute.xlu0 %893 }
 0x106   : > { %8385 = vst [vmem:[#allocation83_spill] sm:$0xff] %v5807_v41  ;;  %8386 = vst [vmem:[#allocation84_spill] sm:$0xff] %v5809_v42 }
 0x107   : > { %1131 = vrot.lane.b32.xlu1 %v5289_v47, %s4988_s11  ;;  %1137 = vrot.lane.b32.xlu0 %v5293_v48, %s4988_s11 }
 0x109   : > { %v5815_v43 = vpop.permute.xlu1 %891  ;;  %v5817_v44 = vpop.permute.xlu0 %897 }
 0x10a   : > { %8387 = vst [vmem:[#allocation85_spill] sm:$0xff] %v5815_v43  ;;  %8388 = vst [vmem:[#allocation86_spill] sm:$0xff] %v5817_v44  ;;  %v8427_v44 = vld [vmem:[#allocation25_spill] sm:$0xff] }
 0x10b   : > { %1135 = vrot.lane.b32.xlu1 %v5297_v49, %s4988_s11  ;;  %1141 = vrot.lane.b32.xlu0 %v5301_v50, %s4988_s11 }
 0x10d   : > { %v5823_v45 = vpop.permute.xlu1 %895  ;;  %v5825_v46 = vpop.permute.xlu0 %901 }
 0x10e   : > { %8389 = vst [vmem:[#allocation87_spill] sm:$0xff] %v5823_v45  ;;  %8390 = vst [vmem:[#allocation88_spill] sm:$0xff] %v5825_v46 }
 0x10f   : > { %1139 = vrot.lane.b32.xlu1 %v5305_v51, %s4988_s11  ;;  %1145 = vrot.lane.b32.xlu0 %v5309_v52, %s4988_s11 }
 0x111   : > { %v5831_v47 = vpop.permute.xlu1 %899  ;;  %v5833_v48 = vpop.permute.xlu0 %905 }
 0x112   : > { %8391 = vst [vmem:[#allocation89_spill] sm:$0xff] %v5831_v47  ;;  %8392 = vst [vmem:[#allocation90_spill] sm:$0xff] %v5833_v48  ;;  %v8425_v47 = vld [vmem:[#allocation23_spill] sm:$0xff] }
 0x113   : > { %1143 = vrot.lane.b32.xlu1 %v5313_v53, %s4988_s11  ;;  %1149 = vrot.lane.b32.xlu0 %v5317_v54, %s4988_s11 }
 0x115   : > { %v5839_v49 = vpop.permute.xlu1 %903  ;;  %v5841_v50 = vpop.permute.xlu0 %909 }
 0x116   : > { %8393 = vst [vmem:[#allocation91_spill] sm:$0xff] %v5839_v49  ;;  %8394 = vst [vmem:[#allocation92_spill] sm:$0xff] %v5841_v50 }
 0x117   : > { %1147 = vrot.lane.b32.xlu1 %v5321_v55, %s4988_s11  ;;  %1153 = vrot.lane.b32.xlu0 %v5325_v56, %s4988_s11  ;;  %v5865_v56 = vld [vmem:[#allocation2 + $0x181] sm:$0xff] }
 0x119   : > { %v5847_v51 = vpop.permute.xlu1 %907  ;;  %v5849_v52 = vpop.permute.xlu0 %977 }
 0x11a   : > { %8395 = vst [vmem:[#allocation93_spill] sm:$0xff] %v5847_v51 }
 0x11b   : > { %1151 = vrot.lane.b32.xlu1 %v5401_v57, %s4988_s11  ;;  %1157 = vrot.lane.b32.xlu0 %v5407_v59, %s4988_s11 }
 0x11d   : > { %v5855_v53 = vpop.permute.xlu1 %911  ;;  %v5857_v54 = vpop.permute.xlu0 %981 }
 0x11e   : > { %8396 = vst [vmem:[#allocation94_spill] sm:$0xff] %v5855_v53 }
 0x11f   : > { %1155 = vrot.lane.b32.xlu1 %v5411_v60, %s4988_s11  ;;  %1161 = vrot.lane.b32.xlu0 %v5415_v61, %s4988_s11  ;;  %v5879_v60 = vld [vmem:[#allocation2 + $0x189] sm:$0xff] }
 0x121   : > { %v5863_v55 = vpop.permute.xlu1 %979  ;;  %v5867_v50 = vpop.permute.xlu0 %985 }
 0x123   : > { %1159 = vrot.lane.b32.xlu1 %v5421_v63, %s4988_s11  ;;  %1165 = vrot.lane.b32.xlu0 %v5865_v56, %s4988_s11 }
 0x125   : > { %v5873_v57 = vpop.permute.xlu1 %983  ;;  %v5875_v59 = vpop.permute.xlu0 %989 }
 0x127   : > { %1163 = vrot.lane.b32.xlu1 %v5427_v2, %s4988_s11  ;;  %1233 = vrot.lane.b32.xlu0 %v5430_v3, %s4989_s12 }
 0x129   : > { %v5883_v61 = vpop.permute.xlu1 %987  ;;  %v5885_v53 = vpop.permute.xlu0 %993 }
 0x12b   : > { %1167 = vrot.lane.b32.xlu1 %v5879_v60, %s4988_s11  ;;  %1237 = vrot.lane.b32.xlu0 %v5436_v5, %s4989_s12 }
 0x12d   : > { %v5891_v63 = vpop.permute.xlu1 %991  ;;  %v5893_v51 = vpop.permute.xlu0 %997 }
 0x12f   : > { %1235 = vrot.lane.b32.xlu1 %v5439_v6, %s4989_s12  ;;  %1241 = vrot.lane.b32.xlu0 %v5443_v7, %s4989_s12 }
 0x131   : > { %v5899_v2 = vpop.permute.xlu1 %995  ;;  %v5901_v3 = vpop.permute.xlu0 %1001 }
 0x132   : > { %8397 = vst [vmem:[#allocation95_spill] sm:$0xff] %v5901_v3  ;;  %v677_v3 = vld [vmem:[#allocation2 + $0x122] sm:$0xff] }
 0x133   : > { %1239 = vrot.lane.b32.xlu1 %v5447_v8, %s4989_s12  ;;  %1245 = vrot.lane.b32.xlu0 %v5451_v9, %s4989_s12 }
 0x135   : > { %v5907_v5 = vpop.permute.xlu1 %999  ;;  %v5909_v48 = vpop.permute.xlu0 %1005 }
 0x136   : > { %8398 = vst [vmem:[#allocation96_spill] sm:$0xff] %v5907_v5  ;;  %8399 = vst [vmem:[#allocation97_spill] sm:$0xff] %v5909_v48  ;;  %v669_v48 = vld [vmem:[#allocation2 + $0xc2] sm:$0xff] }
 0x137   : > { %1243 = vrot.lane.b32.xlu1 %v5455_v10, %s4989_s12  ;;  %1249 = vrot.lane.b32.xlu0 %v5459_v11, %s4989_s12 }
 0x139   : > { %v5915_v6 = vpop.permute.xlu1 %1003  ;;  %v5917_v7 = vpop.permute.xlu0 %1009 }
 0x13a   : > { %8400 = vst [vmem:[#allocation98_spill] sm:$0xff] %v5915_v6  ;;  %8401 = vst [vmem:[#allocation99_spill] sm:$0xff] %v5917_v7 }
 0x13b   : > { %1247 = vrot.lane.b32.xlu1 %v5463_v12, %s4989_s12  ;;  %1253 = vrot.lane.b32.xlu0 %v5467_v13, %s4989_s12 }
 0x13d   : > { %v5923_v8 = vpop.permute.xlu1 %1007  ;;  %v5925_v9 = vpop.permute.xlu0 %1013 }
 0x13e   : > { %8402 = vst [vmem:[#allocation100_spill] sm:$0xff] %v5923_v8  ;;  %8403 = vst [vmem:[#allocation101_spill] sm:$0xff] %v5925_v9  ;;  %v635_v8 = vld [vmem:[#allocation2 + $0xa9] sm:$0xff] }
 0x13f   : > { %1251 = vrot.lane.b32.xlu1 %v5471_v14, %s4989_s12  ;;  %1257 = vrot.lane.b32.xlu0 %v5475_v15, %s4989_s12 }
 0x141   : > { %v5931_v10 = vpop.permute.xlu1 %1011  ;;  %v5933_v11 = vpop.permute.xlu0 %1017 }
 0x142   : > { %8404 = vst [vmem:[#allocation102_spill] sm:$0xff] %v5931_v10  ;;  %8405 = vst [vmem:[#allocation103_spill] sm:$0xff] %v5933_v11  ;;  %v8439_v11 = vld [vmem:[#allocation37_spill] sm:$0xff] }
 0x143   : > { %1255 = vrot.lane.b32.xlu1 %v5479_v16, %s4989_s12  ;;  %1261 = vrot.lane.b32.xlu0 %v5483_v17, %s4989_s12  ;;  %v629_v10 = vld [vmem:[#allocation2 + $0x61] sm:$0xff] }
 0x145   : > { %v5939_v12 = vpop.permute.xlu1 %1015  ;;  %v5941_v13 = vpop.permute.xlu0 %1021 }
 0x146   : > { %8406 = vst [vmem:[#allocation104_spill] sm:$0xff] %v5939_v12  ;;  %8407 = vst [vmem:[#allocation105_spill] sm:$0xff] %v5941_v13  ;;  %v8431_v13 = vld [vmem:[#allocation29_spill] sm:$0xff] }
 0x147   : > { %1259 = vrot.lane.b32.xlu1 %v5487_v18, %s4989_s12  ;;  %1265 = vrot.lane.b32.xlu0 %v5491_v19, %s4989_s12 }
 0x149   : > { %v5947_v14 = vpop.permute.xlu1 %1019  ;;  %v5949_v15 = vpop.permute.xlu0 %1025 }
 0x14a   : > { %8408 = vst [vmem:[#allocation106_spill] sm:$0xff] %v5947_v14  ;;  %8409 = vst [vmem:[#allocation107_spill] sm:$0xff] %v5949_v15  ;;  %v8435_v14 = vld [vmem:[#allocation33_spill] sm:$0xff] }
 0x14b   : > { %1263 = vrot.lane.b32.xlu1 %v5495_v20, %s4989_s12  ;;  %1269 = vrot.lane.b32.xlu0 %v5499_v21, %s4989_s12 }
 0x14d   : > { %v5955_v16 = vpop.permute.xlu1 %1023  ;;  %v5957_v17 = vpop.permute.xlu0 %1029 }
 0x14e   : > { %8410 = vst [vmem:[#allocation108_spill] sm:$0xff] %v5955_v16  ;;  %8411 = vst [vmem:[#allocation109_spill] sm:$0xff] %v5957_v17  ;;  %v8428_v16 = vld [vmem:[#allocation27_spill] sm:$0xff] }
 0x14f   : > { %1267 = vrot.lane.b32.xlu1 %v5503_v22, %s4989_s12  ;;  %1273 = vrot.lane.b32.xlu0 %v5507_v23, %s4989_s12 }
 0x151   : > { %v5963_v18 = vpop.permute.xlu1 %1027  ;;  %v5965_v19 = vpop.permute.xlu0 %1033 }
 0x152   : > { %8412 = vst [vmem:[#allocation110_spill] sm:$0xff] %v5963_v18  ;;  %8413 = vst [vmem:[#allocation111_spill] sm:$0xff] %v5965_v19 }
 0x153   : > { %1271 = vrot.lane.b32.xlu1 %v5511_v24, %s4989_s12  ;;  %1277 = vrot.lane.b32.xlu0 %v5515_v28, %s4989_s12 }
 0x155   : > { %v5971_v20 = vpop.permute.xlu1 %1031  ;;  %v5973_v21 = vpop.permute.xlu0 %1037 }
 0x156   : > { %8414 = vst [vmem:[#allocation112_spill] sm:$0xff] %v5971_v20  ;;  %8415 = vst [vmem:[#allocation113_spill] sm:$0xff] %v5973_v21  ;;  %v8418_v21 = vld [vmem:[#allocation6_spill] sm:$0xff]  ;;  %v8422_v20 = vld [vmem:[#allocation16_spill] sm:$0xff] }
 0x157   : > { %1275 = vrot.lane.b32.xlu1 %v5519_v29, %s4989_s12  ;;  %1281 = vrot.lane.b32.xlu0 %v5523_v33, %s4989_s12  ;;  %v8419_v29 = vld [vmem:[#allocation8_spill] sm:$0xff] }
 0x159   : > { %v5979_v22 = vpop.permute.xlu1 %1035  ;;  %v5981_v23 = vpop.permute.xlu0 %1105 }
 0x15a   : > { %8416 = vst [vmem:[#allocation114_spill] sm:$0xff] %v5979_v22  ;;  %v5997_v22 = vld [vmem:[#allocation2 + $0x182] sm:$0xff] }
 0x15b   : > { %1279 = vrot.lane.b32.xlu1 %v5529_v35, %s4989_s12  ;;  %1285 = vrot.lane.b32.xlu0 %v5533_v36, %s4989_s12  ;;  %v8420_v35 = vld [vmem:[#allocation10_spill] sm:$0xff] }
 0x15d   : > { %v5987_v24 = vpop.permute.xlu1 %1039  ;;  %v5989_v28 = vpop.permute.xlu0 %1109 }
 0x15e   : > { %8417 = vst [vmem:[#allocation115_spill] sm:$0xff] %v5987_v24 }
 0x15f   : > { %1283 = vrot.lane.b32.xlu1 %v8418_v21, %s4989_s12  ;;  %1289 = vrot.lane.b32.xlu0 %v8419_v29, %s4989_s12  ;;  %v8421_v21 = vld [vmem:[#allocation13_spill] sm:$0xff] }
 0x160   : > { %v6011_v29 = vld [vmem:[#allocation2 + $0x18a] sm:$0xff] }
 0x161   : > { %v5995_v33 = vpop.permute.xlu1 %1107  ;;  %v5999_v19 = vpop.permute.xlu0 %1113 }
 0x163   : > { %1287 = vrot.lane.b32.xlu1 %v8420_v35, %s4989_s12  ;;  %1293 = vrot.lane.b32.xlu0 %v5997_v22, %s4989_s12  ;;  %v8423_v35 = vld [vmem:[#allocation19_spill] sm:$0xff] }
 0x165   : > { %v6005_v36 = vpop.permute.xlu1 %1111  ;;  %v6007_v24 = vpop.permute.xlu0 %1117 }
 0x167   : > { %1291 = vrot.lane.b32.xlu1 %v8421_v21, %s4989_s12  ;;  %1361 = vrot.lane.b32.xlu0 %v8422_v20, %s4990_s13  ;;  %v8424_v21 = vld [vmem:[#allocation21_spill] sm:$0xff] }
 0x169   : > { %v6015_v49 = vpop.permute.xlu1 %1115  ;;  %v6017_v17 = vpop.permute.xlu0 %1121 }
 0x16b   : > { %1295 = vrot.lane.b32.xlu1 %v6011_v29, %s4989_s12  ;;  %1365 = vrot.lane.b32.xlu0 %v8423_v35, %s4990_s13  ;;  %s4996_s12 = smov 64  }
 0x16d   : > { %v6023_v46 = vpop.permute.xlu1 %1119  ;;  %v6025_v18 = vpop.permute.xlu0 %1125 }
 0x16f   : > { %1363 = vrot.lane.b32.xlu1 %v8424_v21, %s4990_s13  ;;  %1369 = vrot.lane.b32.xlu0 %v8425_v47, %s4990_s13  ;;  %v8432_v21 = vld [vmem:[#allocation31_spill] sm:$0xff] }
 0x171   : > { %v6031_v20 = vpop.permute.xlu1 %1123  ;;  %v6033_v15 = vpop.permute.xlu0 %1129 }
 0x172   : > { %8426 = vst [vmem:[#allocation6_spill] sm:$0xff] %v6033_v15  ;;  %v675_v15 = vld [vmem:[#allocation2 + $0x10a] sm:$0xff] }
 0x173   : > { %1367 = vrot.lane.b32.xlu1 %v8427_v44, %s4990_s13  ;;  %1373 = vrot.lane.b32.xlu0 %v8428_v16, %s4990_s13  ;;  %v8436_v44 = vld [vmem:[#allocation35_spill] sm:$0xff] }
 0x175   : > { %v6039_v35 = vpop.permute.xlu1 %1127  ;;  %v6041_v45 = vpop.permute.xlu0 %1133 }
 0x176   : > { %8429 = vst [vmem:[#allocation8_spill] sm:$0xff] %v6039_v35  ;;  %8430 = vst [vmem:[#allocation10_spill] sm:$0xff] %v6041_v45 }
 0x177   : > { %1371 = vrot.lane.b32.xlu1 %v8431_v13, %s4990_s13  ;;  %1377 = vrot.lane.b32.xlu0 %v8432_v21, %s4990_s13  ;;  %v8440_v13 = vld [vmem:[#allocation39_spill] sm:$0xff] }
 0x179   : > { %v6047_v47 = vpop.permute.xlu1 %1131  ;;  %v6049_v42 = vpop.permute.xlu0 %1137 }
 0x17a   : > { %8433 = vst [vmem:[#allocation13_spill] sm:$0xff] %v6047_v47  ;;  %8434 = vst [vmem:[#allocation16_spill] sm:$0xff] %v6049_v42 }
 0x17b   : > { %1375 = vrot.lane.b32.xlu1 %v8435_v14, %s4990_s13  ;;  %1381 = vrot.lane.b32.xlu0 %v8436_v44, %s4990_s13  ;;  %v8444_v14 = vld [vmem:[#allocation43_spill] sm:$0xff] }
 0x17d   : > { %v6055_v16 = vpop.permute.xlu1 %1135  ;;  %v6057_v43 = vpop.permute.xlu0 %1141 }
 0x17e   : > { %8437 = vst [vmem:[#allocation19_spill] sm:$0xff] %v6055_v16  ;;  %8438 = vst [vmem:[#allocation21_spill] sm:$0xff] %v6057_v43  ;;  %v8447_v43 = vld [vmem:[#allocation45_spill] sm:$0xff]  ;;  %v633_v16 = vld [vmem:[#allocation2 + $0x91] sm:$0xff] }
 0x17f   : > { %1379 = vrot.lane.b32.xlu1 %v8439_v11, %s4990_s13  ;;  %1385 = vrot.lane.b32.xlu0 %v8440_v13, %s4990_s13  ;;  %v8448_v11 = vld [vmem:[#allocation47_spill] sm:$0xff] }
 0x181   : > { %v6063_v21 = vpop.permute.xlu1 %1139  ;;  %v6065_v12 = vpop.permute.xlu0 %1145 }
 0x182   : > { %8441 = vst [vmem:[#allocation23_spill] sm:$0xff] %v6063_v21  ;;  %8442 = vst [vmem:[#allocation25_spill] sm:$0xff] %v6065_v12  ;;  %v8451_v12 = vld [vmem:[#allocation49_spill] sm:$0xff] }
 0x183   : > { %1383 = vrot.lane.b32.xlu1 %v8443_v40, %s4990_s13  ;;  %1389 = vrot.lane.b32.xlu0 %v8444_v14, %s4990_s13  ;;  %v8452_v40 = vld [vmem:[#allocation51_spill] sm:$0xff] }
 0x185   : > { %v6071_v44 = vpop.permute.xlu1 %1143  ;;  %v6073_v41 = vpop.permute.xlu0 %1149 }
 0x186   : > { %8445 = vst [vmem:[#allocation27_spill] sm:$0xff] %v6071_v44  ;;  %8446 = vst [vmem:[#allocation29_spill] sm:$0xff] %v6073_v41  ;;  %v8455_v41 = vld [vmem:[#allocation53_spill] sm:$0xff] }
 0x187   : > { %1387 = vrot.lane.b32.xlu1 %v8447_v43, %s4990_s13  ;;  %1393 = vrot.lane.b32.xlu0 %v8448_v11, %s4990_s13  ;;  %v8456_v43 = vld [vmem:[#allocation55_spill] sm:$0xff] }
 0x189   : > { %v6079_v13 = vpop.permute.xlu1 %1147  ;;  %v6081_v21 = vpop.permute.xlu0 %1153 }
 0x18a   : > { %8449 = vst [vmem:[#allocation31_spill] sm:$0xff] %v6079_v13  ;;  %8450 = vst [vmem:[#allocation33_spill] sm:$0xff] %v6081_v21  ;;  %v8459_v21 = vld [vmem:[#allocation57_spill] sm:$0xff] }
 0x18b   : > { %1391 = vrot.lane.b32.xlu1 %v8451_v12, %s4990_s13  ;;  %1397 = vrot.lane.b32.xlu0 %v8452_v40, %s4990_s13  ;;  %v8460_v12 = vld [vmem:[#allocation59_spill] sm:$0xff] }
 0x18d   : > { %v6087_v14 = vpop.permute.xlu1 %1151  ;;  %v6089_v44 = vpop.permute.xlu0 %1157 }
 0x18e   : > { %8453 = vst [vmem:[#allocation35_spill] sm:$0xff] %v6087_v14  ;;  %8454 = vst [vmem:[#allocation37_spill] sm:$0xff] %v6089_v44  ;;  %v8463_v44 = vld [vmem:[#allocation61_spill] sm:$0xff] }
 0x18f   : > { %1395 = vrot.lane.b32.xlu1 %v8455_v41, %s4990_s13  ;;  %1401 = vrot.lane.b32.xlu0 %v8456_v43, %s4990_s13  ;;  %v8464_v41 = vld [vmem:[#allocation63_spill] sm:$0xff] }
 0x191   : > { %v6095_v11 = vpop.permute.xlu1 %1155  ;;  %v6097_v13 = vpop.permute.xlu0 %1161 }
 0x192   : > { %8457 = vst [vmem:[#allocation39_spill] sm:$0xff] %v6095_v11  ;;  %8458 = vst [vmem:[#allocation41_spill] sm:$0xff] %v6097_v13  ;;  %v8466_v13 = vld [vmem:[#allocation65_spill] sm:$0xff] }
 0x193   : > { %1399 = vrot.lane.b32.xlu1 %v8459_v21, %s4990_s13  ;;  %1405 = vrot.lane.b32.xlu0 %v8460_v12, %s4990_s13 }
 0x195   : > { %v6103_v40 = vpop.permute.xlu1 %1159  ;;  %v6105_v14 = vpop.permute.xlu0 %1165 }
 0x196   : > { %8461 = vst [vmem:[#allocation43_spill] sm:$0xff] %v6103_v40  ;;  %8462 = vst [vmem:[#allocation45_spill] sm:$0xff] %v6105_v14  ;;  %v8468_v14 = vld [vmem:[#allocation68_spill] sm:$0xff]  ;;  %v627_v40 = vld [vmem:[#allocation2 + $0x49] sm:$0xff] }
 0x197   : > { %1403 = vrot.lane.b32.xlu1 %v8463_v44, %s4990_s13  ;;  %1409 = vrot.lane.b32.xlu0 %v8464_v41, %s4990_s13  ;;  %v623_v41 = vld [vmem:[#allocation2 + $0x198] sm:$0xff] }
 0x199   : > { %v6111_v43 = vpop.permute.xlu1 %1163  ;;  %v6113_v11 = vpop.permute.xlu0 %1233 }
 0x19a   : > { %8465 = vst [vmem:[#allocation47_spill] sm:$0xff] %v6111_v43 }
 0x19b   : > { %1407 = vrot.lane.b32.xlu1 %v8466_v13, %s4990_s13  ;;  %1413 = vrot.lane.b32.xlu0 %v5723_v58, %s4990_s13  ;;  %v625_v13 = vld [vmem:[#allocation2 + $0x31] sm:$0xff] }
 0x19d   : > { %v6119_v21 = vpop.permute.xlu1 %1167  ;;  %v6121_v12 = vpop.permute.xlu0 %1237 }
 0x19e   : > { %8467 = vst [vmem:[#allocation49_spill] sm:$0xff] %v6119_v21 }
 0x19f   : > { %1411 = vrot.lane.b32.xlu1 %v8468_v14, %s4990_s13  ;;  %1417 = vrot.lane.b32.xlu0 %v5731_v34, %s4990_s13  ;;  %v624_v14 = vld [vmem:[#allocation2 + $0x1a0] sm:$0xff] }
 0x1a1   : > { %v6127_v44 = vpop.permute.xlu1 %1235  ;;  %v6129_v43 = vpop.permute.xlu0 %1241 }
 0x1a3   : > { %1415 = vrot.lane.b32.xlu1 %v5741_v0, %s4990_s13  ;;  %1421 = vrot.lane.b32.xlu0 %v623_v41, %s4990_s13  ;;  %v626_v0 = vld [vmem:[#allocation2 + $0x39] sm:$0xff] }
 0x1a5   : > { %v6134_v58 = vpop.permute.xlu1 %1239  ;;  %v6136_v21 = vpop.permute.xlu0 %1245 }
 0x1a7   : > { %1419 = vrot.lane.b32.xlu1 %v5747_v39, %s4990_s13  ;;  %1489 = vrot.lane.b32.xlu0 %v625_v13, %s4991_s14  ;;  %v628_v39 = vld [vmem:[#allocation2 + $0x51] sm:$0xff] }
 0x1a9   : > { %v6141_v34 = vpop.permute.xlu1 %1243  ;;  %v6143_v9 = vpop.permute.xlu0 %1249 }
 0x1ab   : > { %1423 = vrot.lane.b32.xlu1 %v624_v14, %s4990_s13  ;;  %1493 = vrot.lane.b32.xlu0 %v627_v40, %s4991_s14  ;;  %v630_v14 = vld [vmem:[#allocation2 + $0x69] sm:$0xff] }
 0x1ad   : > { %v6147_v41 = vpop.permute.xlu1 %1247  ;;  %v6149_v32 = vpop.permute.xlu0 %1253 }
 0x1ae   : > { %8469 = vst [vmem:[#allocation51_spill] sm:$0xff] %v6149_v32  ;;  %v400_v32 = vld [vmem:[#allocation2] sm:$0xff] }
 0x1af   : > { %1491 = vrot.lane.b32.xlu1 %v626_v0, %s4991_s14  ;;  %1497 = vrot.lane.b32.xlu0 %v629_v10, %s4991_s14  ;;  %v632_v0 = vld [vmem:[#allocation2 + $0x81] sm:$0xff] }
 0x1b1   : > { %v6153_v13 = vpop.permute.xlu1 %1251  ;;  %v6155_v42 = vpop.permute.xlu0 %1257 }
 0x1b2   : > { %8470 = vst [vmem:[#allocation53_spill] sm:$0xff] %v6153_v13  ;;  %8471 = vst [vmem:[#allocation55_spill] sm:$0xff] %v6155_v42 }
 0x1b3   : > { %1495 = vrot.lane.b32.xlu1 %v628_v39, %s4991_s14  ;;  %1501 = vrot.lane.b32.xlu0 %v631_v38, %s4991_s14  ;;  %v634_v39 = vld [vmem:[#allocation2 + $0x99] sm:$0xff] }
 0x1b5   : > { %v6159_v40 = vpop.permute.xlu1 %1255  ;;  %v6161_v7 = vpop.permute.xlu0 %1261 }
 0x1b6   : > { %8472 = vst [vmem:[#allocation57_spill] sm:$0xff] %v6159_v40  ;;  %8473 = vst [vmem:[#allocation59_spill] sm:$0xff] %v6161_v7  ;;  %v639_v7 = vld [vmem:[#allocation2 + $0xd9] sm:$0xff] }
 0x1b7   : > { %1499 = vrot.lane.b32.xlu1 %v630_v14, %s4991_s14  ;;  %1505 = vrot.lane.b32.xlu0 %v633_v16, %s4991_s14  ;;  %v636_v14 = vld [vmem:[#allocation2 + $0xb1] sm:$0xff] }
 0x1b9   : > { %v6165_v10 = vpop.permute.xlu1 %1259  ;;  %v6167_v30 = vpop.permute.xlu0 %1265 }
 0x1ba   : > { %8474 = vst [vmem:[#allocation61_spill] sm:$0xff] %v6165_v10  ;;  %8475 = vst [vmem:[#allocation63_spill] sm:$0xff] %v6167_v30 }
 0x1bb   : > { %1503 = vrot.lane.b32.xlu1 %v632_v0, %s4991_s14  ;;  %1509 = vrot.lane.b32.xlu0 %v635_v8, %s4991_s14  ;;  %v638_v0 = vld [vmem:[#allocation2 + $0xc9] sm:$0xff]  ;;  %v1980_v8 = vld [vmem:[%s8264_s1 + $0x20] sm:$0xf] }
 0x1bc   : > { %4766 = vmatprep.subr.msk.mxu0 %vm2078_vm3, %v1980_v8 }
 0x1bd   : > { %v6171_v38 = vpop.permute.xlu1 %1263  ;;  %v6173_v45 = vpop.permute.xlu0 %1269  ;;  %4767 = vmatpush3.msk.msra.mxu0 %vm2078_vm3, %v1980_v8  ;;  %v643_v8 = vld [vmem:[#allocation2 + $0x109] sm:$0xff] }
 0x1be   : > { %8476 = vst [vmem:[#allocation65_spill] sm:$0xff] %v6171_v38  ;;  %8477 = vst [vmem:[#allocation68_spill] sm:$0xff] %v6173_v45 }
 0x1bf   : > { %1507 = vrot.lane.b32.xlu1 %v634_v39, %s4991_s14  ;;  %1513 = vrot.lane.b32.xlu0 %v637_v31, %s4991_s14  ;;  %v641_v39 = vld [vmem:[#allocation2 + $0xf1] sm:$0xff] }
 0x1c0   : > { %v1979_v31 = vld [vmem:[%s8264_s1 + $0x18] sm:$0xff] }
 0x1c1   : > { %v6177_v16 = vpop.permute.xlu1 %1267  ;;  %v6179_v10 = vpop.permute.xlu0 %1273  ;;  %4768 = vmatprep.subr.mxu0 %v1979_v31 }
 0x1c2   : > { %8478 = vst [vmem:[#allocation116_spill] sm:$0xff] %v6177_v16  ;;  %8479 = vst [vmem:[#allocation117_spill] sm:$0xff] %v6179_v10  ;;  %v640_v16 = vld [vmem:[#allocation2 + $0xe1] sm:$0xff]  ;;  %4769 = vmatpush3.msra.mxu0 %v1979_v31 }
 0x1c3   : > { %1511 = vrot.lane.b32.xlu1 %v636_v14, %s4991_s14  ;;  %1517 = vrot.lane.b32.xlu0 %v639_v7, %s4991_s14  ;;  %v1978_v14 = vld [vmem:[%s8264_s1 + $0x10] sm:$0xff] }
 0x1c4   : > { %4770 = vmatprep.subr.mxu0 %v1978_v14 }
 0x1c5   : > { %v6186_v45 = vpop.permute.xlu1 %1271  ;;  %v6191_v10 = vpop.permute.xlu0 %1277  ;;  %4771 = vmatpush3.msra.mxu0 %v1978_v14  ;;  %v645_v14 = vld [vmem:[#allocation2 + $0x121] sm:$0xff] }
 0x1c6   : > { %8480 = vst [vmem:[#allocation118_spill] sm:$0xff] %v6186_v45  ;;  %8481 = vst [vmem:[#allocation119_spill] sm:$0xff] %v6191_v10  ;;  %v1977_v10 = vld [vmem:[%s8264_s1 + $0x8] sm:$0xff] }
 0x1c7   : > { %1515 = vrot.lane.b32.xlu1 %v638_v0, %s4991_s14  ;;  %1521 = vrot.lane.b32.xlu0 %v641_v39, %s4991_s14  ;;  %v642_v0 = vld [vmem:[#allocation2 + $0xf9] sm:$0xff] }
 0x1c8   : > { %4772 = vmatprep.subr.mxu0 %v1977_v10  ;;  %v1976_v39 = vld [vmem:[%s8264_s1] sm:$0xff] }
 0x1c9   : > { %v6198_v7 = vpop.permute.xlu1 %1275  ;;  %v6203_v45 = vpop.permute.xlu0 %1281  ;;  %4773 = vmatpush3.msra.mxu0 %v1977_v10  ;;  %v657_v10 = vld [vmem:[#allocation2 + $0x32] sm:$0xff] }
 0x1ca   : > { %8482 = vst [vmem:[#allocation120_spill] sm:$0xff] %v6198_v7  ;;  %8483 = vst [vmem:[#allocation121_spill] sm:$0xff] %v6203_v45  ;;  %4774 = vmatprep.subr.mxu0 %v1976_v39  ;;  %v644_v45 = vld [vmem:[#allocation2 + $0x111] sm:$0xff] }
 0x1cb   : > { %1519 = vrot.lane.b32.xlu1 %v640_v16, %s4991_s14  ;;  %1525 = vrot.lane.b32.xlu0 %v643_v8, %s4991_s14  ;;  %v646_v8 = vld [vmem:[#allocation2 + $0x129] sm:$0xff] }
 0x1cc   : > { %4775 = vmatpush3.msra.mxu0 %v1976_v39  ;;  %v659_v39 = vld [vmem:[#allocation2 + $0x4a] sm:$0xff] }
 0x1cd   : > { %v6210_v31 = vpop.permute.xlu1 %1279  ;;  %v6212_v7 = vpop.permute.xlu0 %1285 }
 0x1ce   : > { %8484 = vst [vmem:[#allocation122_spill] sm:$0xff] %v6210_v31  ;;  %8485 = vst [vmem:[#allocation123_spill] sm:$0xff] %v6212_v7 }
 0x1cf   : > { %1523 = vrot.lane.b32.xlu1 %v642_v0, %s4991_s14  ;;  %1529 = vrot.lane.b32.xlu0 %v645_v14, %s4991_s14  ;;  %v658_v0 = vld [vmem:[#allocation2 + $0x3a] sm:$0xff] }
 0x1d1   : > { %v6216_v16 = vpop.permute.xlu1 %1283  ;;  %v6218_v30 = vpop.permute.xlu0 %1289 }
 0x1d2   : > { %8486 = vst [vmem:[#allocation124_spill] sm:$0xff] %v6216_v16  ;;  %8487 = vst [vmem:[#allocation125_spill] sm:$0xff] %v6218_v30  ;;  %v661_v16 = vld [vmem:[#allocation2 + $0x62] sm:$0xff] }
 0x1d3   : > { %1527 = vrot.lane.b32.xlu1 %v644_v45, %s4991_s14  ;;  %1617 = vrot.lane.b32.xlu0 %v657_v10, %s4992_s28  ;;  %v660_v45 = vld [vmem:[#allocation2 + $0x52] sm:$0xff] }
 0x1d5   : > { %v6222_v31 = vpop.permute.xlu1 %1287  ;;  %v6224_v7 = vpop.permute.xlu0 %1293 }
 0x1d6   : > { %8488 = vst [vmem:[#allocation126_spill] sm:$0xff] %v6222_v31  ;;  %8489 = vst [vmem:[#allocation127_spill] sm:$0xff] %v6224_v7  ;;  %v663_v31 = vld [vmem:[#allocation2 + $0x7a] sm:$0xff]  ;;  %v665_v7 = vld [vmem:[#allocation2 + $0x92] sm:$0xff] }
 0x1d7   : > { %1531 = vrot.lane.b32.xlu1 %v646_v8, %s4991_s14  ;;  %1621 = vrot.lane.b32.xlu0 %v659_v39, %s4992_s28  ;;  %v662_v8 = vld [vmem:[#allocation2 + $0x6a] sm:$0xff] }
 0x1d9   : > { %v6228_v14 = vpop.permute.xlu1 %1291  ;;  %v6230_v30 = vpop.permute.xlu0 %1361 }
 0x1da   : > { %8490 = vst [vmem:[#allocation128_spill] sm:$0xff] %v6228_v14 }
 0x1db   : > { %1619 = vrot.lane.b32.xlu1 %v658_v0, %s4992_s28  ;;  %1625 = vrot.lane.b32.xlu0 %v661_v16, %s4992_s28  ;;  %v664_v0 = vld [vmem:[#allocation2 + $0x82] sm:$0xff] }
 0x1dd   : > { %v6234_v10 = vpop.permute.xlu1 %1295  ;;  %v6236_v38 = vpop.permute.xlu0 %1365 }
 0x1de   : > { %8491 = vst [vmem:[#allocation129_spill] sm:$0xff] %v6234_v10  ;;  %v667_v10 = vld [vmem:[#allocation2 + $0xaa] sm:$0xff] }
 0x1df   : > { %1623 = vrot.lane.b32.xlu1 %v660_v45, %s4992_s28  ;;  %1629 = vrot.lane.b32.xlu0 %v663_v31, %s4992_s28  ;;  %v666_v45 = vld [vmem:[#allocation2 + $0x9a] sm:$0xff] }
 0x1e1   : > { %v6240_v39 = vpop.permute.xlu1 %1363  ;;  %v6242_v14 = vpop.permute.xlu0 %1369 }
 0x1e3   : > { %1627 = vrot.lane.b32.xlu1 %v662_v8, %s4992_s28  ;;  %1633 = vrot.lane.b32.xlu0 %v665_v7, %s4992_s28  ;;  %v668_v8 = vld [vmem:[#allocation2 + $0xb2] sm:$0xff] }
 0x1e5   : > { %v6246_v16 = vpop.permute.xlu1 %1367  ;;  %v6248_v47 = vpop.permute.xlu0 %1373 }
 0x1e7   : > { %1631 = vrot.lane.b32.xlu1 %v664_v0, %s4992_s28  ;;  %1637 = vrot.lane.b32.xlu0 %v667_v10, %s4992_s28  ;;  %v670_v0 = vld [vmem:[#allocation2 + $0xca] sm:$0xff] }
 0x1e9   : > { %v6252_v31 = vpop.permute.xlu1 %1371  ;;  %v6254_v6 = vpop.permute.xlu0 %1377 }
 0x1eb   : > { %1635 = vrot.lane.b32.xlu1 %v666_v45, %s4992_s28  ;;  %1641 = vrot.lane.b32.xlu0 %v669_v48, %s4992_s28  ;;  %v672_v45 = vld [vmem:[#allocation2 + $0xe2] sm:$0xff] }
 0x1ed   : > { %v6258_v7 = vpop.permute.xlu1 %1375  ;;  %v6260_v42 = vpop.permute.xlu0 %1381 }
 0x1ee   : > { %8492 = vst [vmem:[#allocation130_spill] sm:$0xff] %v6260_v42 }
 0x1ef   : > { %1639 = vrot.lane.b32.xlu1 %v668_v8, %s4992_s28  ;;  %1645 = vrot.lane.b32.xlu0 %v671_v1, %s4992_s28  ;;  %v674_v8 = vld [vmem:[#allocation2 + $0xfa] sm:$0xff] }
 0x1f1   : > { %v6264_v10 = vpop.permute.xlu1 %1379  ;;  %v6266_v40 = vpop.permute.xlu0 %1385 }
 0x1f2   : > { %8493 = vst [vmem:[#allocation131_spill] sm:$0xff] %v6264_v10  ;;  %8494 = vst [vmem:[#allocation132_spill] sm:$0xff] %v6266_v40  ;;  %v647_v40 = vld [vmem:[#allocation2 + $0x139] sm:$0xff] }
 0x1f3   : > { %1643 = vrot.lane.b32.xlu1 %v670_v0, %s4992_s28  ;;  %1649 = vrot.lane.b32.xlu0 %v673_v27, %s4992_s28  ;;  %v676_v0 = vld [vmem:[#allocation2 + $0x112] sm:$0xff] }
 0x1f5   : > { %v6270_v48 = vpop.permute.xlu1 %1383  ;;  %v6272_v35 = vpop.permute.xlu0 %1389 }
 0x1f6   : > { %8495 = vst [vmem:[#allocation133_spill] sm:$0xff] %v6270_v48  ;;  %8496 = vst [vmem:[#allocation134_spill] sm:$0xff] %v6272_v35  ;;  %v679_v35 = vld [vmem:[#allocation2 + $0x13a] sm:$0xff] }
 0x1f7   : > { %1647 = vrot.lane.b32.xlu1 %v672_v45, %s4992_s28  ;;  %1653 = vrot.lane.b32.xlu0 %v675_v15, %s4992_s28  ;;  %v678_v45 = vld [vmem:[#allocation2 + $0x12a] sm:$0xff] }
 0x1f9   : > { %v6276_v1 = vpop.permute.xlu1 %1387  ;;  %v6278_v42 = vpop.permute.xlu0 %1393 }
 0x1fa   : > { %8497 = vst [vmem:[#allocation135_spill] sm:$0xff] %v6276_v1  ;;  %8498 = vst [vmem:[#allocation136_spill] sm:$0xff] %v6278_v42  ;;  %v649_v42 = vld [vmem:[#allocation2 + $0x151] sm:$0xff] }
 0x1fb   : > { %1651 = vrot.lane.b32.xlu1 %v674_v8, %s4992_s28  ;;  %1657 = vrot.lane.b32.xlu0 %v677_v3, %s4992_s28  ;;  %v648_v8 = vld [vmem:[#allocation2 + $0x141] sm:$0xff] }
 0x1fd   : > { %v6282_v27 = vpop.permute.xlu1 %1391  ;;  %v6284_v48 = vpop.permute.xlu0 %1397 }
 0x1fe   : > { %8499 = vst [vmem:[#allocation137_spill] sm:$0xff] %v6282_v27  ;;  %8500 = vst [vmem:[#allocation138_spill] sm:$0xff] %v6284_v48  ;;  %v681_v48 = vld [vmem:[#allocation2 + $0x152] sm:$0xff] }
 0x1ff   : > { %1655 = vrot.lane.b32.xlu1 %v676_v0, %s4992_s28  ;;  %1533 = vrot.lane.b32.xlu0 %v647_v40, %s4991_s14  ;;  %v680_v0 = vld [vmem:[#allocation2 + $0x142] sm:$0xff] }
 0x201   : > { %v6288_v15 = vpop.permute.xlu1 %1395  ;;  %v6290_v1 = vpop.permute.xlu0 %1401 }
 0x202   : > { %8501 = vst [vmem:[#allocation139_spill] sm:$0xff] %v6288_v15  ;;  %8502 = vst [vmem:[#allocation140_spill] sm:$0xff] %v6290_v1  ;;  %v651_v1 = vld [vmem:[#allocation2 + $0x169] sm:$0xff] }
 0x203   : > { %1659 = vrot.lane.b32.xlu1 %v678_v45, %s4992_s28  ;;  %1661 = vrot.lane.b32.xlu0 %v679_v35, %s4992_s28  ;;  %v650_v45 = vld [vmem:[#allocation2 + $0x159] sm:$0xff] }
 0x205   : > { %v6294_v3 = vpop.permute.xlu1 %1399  ;;  %v6296_v27 = vpop.permute.xlu0 %1405 }
 0x206   : > { %8503 = vst [vmem:[#allocation141_spill] sm:$0xff] %v6294_v3  ;;  %8504 = vst [vmem:[#allocation142_spill] sm:$0xff] %v6296_v27  ;;  %v683_v27 = vld [vmem:[#allocation2 + $0x16a] sm:$0xff] }
 0x207   : > { %1535 = vrot.lane.b32.xlu1 %v648_v8, %s4991_s14  ;;  %1537 = vrot.lane.b32.xlu0 %v649_v42, %s4991_s14  ;;  %v682_v8 = vld [vmem:[#allocation2 + $0x15a] sm:$0xff] }
 0x209   : > { %v6300_v40 = vpop.permute.xlu1 %1403  ;;  %v6302_v15 = vpop.permute.xlu0 %1409 }
 0x20a   : > { %8505 = vst [vmem:[#allocation143_spill] sm:$0xff] %v6300_v40  ;;  %8506 = vst [vmem:[#allocation144_spill] sm:$0xff] %v6302_v15 }
 0x20b   : > { %1663 = vrot.lane.b32.xlu1 %v680_v0, %s4992_s28  ;;  %1665 = vrot.lane.b32.xlu0 %v681_v48, %s4992_s28  ;;  %v652_v0 = vld [vmem:[#allocation2 + $0x171] sm:$0xff] }
 0x20d   : > { %v6306_v35 = vpop.permute.xlu1 %1407  ;;  %v6308_v3 = vpop.permute.xlu0 %1413 }
 0x20e   : > { %8507 = vst [vmem:[#allocation145_spill] sm:$0xff] %v6306_v35  ;;  %8508 = vst [vmem:[#allocation146_spill] sm:$0xff] %v6308_v3 }
 0x20f   : > { %1539 = vrot.lane.b32.xlu1 %v650_v45, %s4991_s14  ;;  %1541 = vrot.lane.b32.xlu0 %v651_v1, %s4991_s14  ;;  %v684_v45 = vld [vmem:[#allocation2 + $0x172] sm:$0xff] }
 0x211   : > { %v6312_v42 = vpop.permute.xlu1 %1411  ;;  %v6314_v40 = vpop.permute.xlu0 %1417 }
 0x212   : > { %8509 = vst [vmem:[#allocation147_spill] sm:$0xff] %v6312_v42  ;;  %8510 = vst [vmem:[#allocation148_spill] sm:$0xff] %v6314_v40 }
 0x213   : > { %1667 = vrot.lane.b32.xlu1 %v682_v8, %s4992_s28  ;;  %1669 = vrot.lane.b32.xlu0 %v683_v27, %s4992_s28  ;;  %v655_v27 = vld [vmem:[#allocation2 + $0x199] sm:$0xff] }
 0x215   : > { %v6318_v48 = vpop.permute.xlu1 %1415  ;;  %v6320_v15 = vpop.permute.xlu0 %1421 }
 0x216   : > { %8511 = vst [vmem:[#allocation149_spill] sm:$0xff] %v6318_v48  ;;  %8512 = vst [vmem:[#allocation150_spill] sm:$0xff] %v6320_v15 }
 0x217   : > { %1543 = vrot.lane.b32.xlu1 %v652_v0, %s4991_s14  ;;  %1545 = vrot.lane.b32.xlu0 %v5865_v56, %s4991_s14  ;;  %v687_v56 = vld [vmem:[#allocation2 + $0x19a] sm:$0xff] }
 0x219   : > { %v6325_v1 = vpop.permute.xlu1 %1419  ;;  %v1490_v3 = vpop.permute.xlu0 %1489 }
 0x21a   : > { %8513 = vst [vmem:[#allocation151_spill] sm:$0xff] %v6325_v1 }
 0x21b   : > { %1671 = vrot.lane.b32.xlu1 %v684_v45, %s4992_s28  ;;  %1673 = vrot.lane.b32.xlu0 %v5997_v22, %s4992_s28  ;;  %v656_v45 = vld [vmem:[#allocation2 + $0x1a1] sm:$0xff] }
 0x21d   : > { %v6330_v8 = vpop.permute.xlu1 %1423  ;;  %v6332_v40 = vpop.permute.xlu0 %1493 }
 0x21e   : > { %8514 = vst [vmem:[#allocation152_spill] sm:$0xff] %v6330_v8 }
 0x21f   : > { %1547 = vrot.lane.b32.xlu1 %v5879_v60, %s4991_s14  ;;  %1549 = vrot.lane.b32.xlu0 %v655_v27, %s4991_s14  ;;  %v688_v60 = vld [vmem:[#allocation2 + $0x1a2] sm:$0xff] }
 0x221   : > { %v6337_v0 = vpop.permute.xlu1 %1491  ;;  %v6339_v15 = vpop.permute.xlu0 %1497 }
 0x223   : > { %1675 = vrot.lane.b32.xlu1 %v6011_v29, %s4992_s28  ;;  %1677 = vrot.lane.b32.xlu0 %v687_v56, %s4992_s28 }
 0x225   : > { %v6344_v22 = vpop.permute.xlu1 %1495  ;;  %v6346_v8 = vpop.permute.xlu0 %1501 }
 0x227   : > { %1551 = vrot.lane.b32.xlu1 %v656_v45, %s4991_s14 }
 0x229   : > { %v6349_v1 = vpop.permute.xlu1 %1499  ;;  %v6351_v27 = vpop.permute.xlu0 %1505 }
 0x22b   : > { %1679 = vrot.lane.b32.xlu1 %v688_v60, %s4992_s28 }
 0x22d   : > { %v6354_v48 = vpop.permute.xlu1 %1503  ;;  %v6356_v42 = vpop.permute.xlu0 %1509 }
 0x22e   : > { %8515 = vst [vmem:[#allocation153_spill] sm:$0xff] %v6356_v42  ;;  %v1713_v42 = vsel %vm279_vm0, %v400_v32, %v8524_v26 }
 0x231   : > { %v6358_v29 = vpop.permute.xlu1 %1507  ;;  %v6360_v56 = vpop.permute.xlu0 %1513 }
 0x232   : > { %8516 = vst [vmem:[#allocation154_spill] sm:$0xff] %v6358_v29  ;;  %8517 = vst [vmem:[#allocation155_spill] sm:$0xff] %v6360_v56  ;;  %v8526_v56 = vld [vmem:[#allocation62_spill] sm:$0xff] }
 0x235   : > { %v6362_v35 = vpop.permute.xlu1 %1511  ;;  %v6364_v5 = vpop.permute.xlu0 %1517 }
 0x236   : > { %8518 = vst [vmem:[#allocation156_spill] sm:$0xff] %v6362_v35  ;;  %8519 = vst [vmem:[#allocation157_spill] sm:$0xff] %v6364_v5  ;;  %v1746_v35 = vsel %vm1745_vm2, %v1713_v42, %v8526_v56  ;;  %v8529_v56 = vld [vmem:[#allocation5_spill] sm:$0xff] }
 0x237   : > { %v1779_v5 = vsel %vm1778_vm4, %v1746_v35, %v5849_v52 }
 0x239   : > { %v6366_v45 = vpop.permute.xlu1 %1515  ;;  %v6368_v62 = vpop.permute.xlu0 %1521 }
 0x23a   : > { %8520 = vst [vmem:[#allocation158_spill] sm:$0xff] %v6366_v45  ;;  %8521 = vst [vmem:[#allocation159_spill] sm:$0xff] %v6368_v62  ;;  %v8530_v45 = vld [vmem:[#allocation7_spill] sm:$0xff] }
 0x23d   : > { %v6370_v10 = vpop.permute.xlu1 %1519  ;;  %v6372_v60 = vpop.permute.xlu0 %1525 }
 0x23e   : > { %8522 = vst [vmem:[#allocation160_spill] sm:$0xff] %v6370_v10  ;;  %8523 = vst [vmem:[#allocation161_spill] sm:$0xff] %v6372_v60  ;;  %v401_v10 = vld [vmem:[#allocation2 + $0x8] sm:$0xff]  ;;  %v1812_v60 = vsel %vm1811_vm5, %v1779_v5, %v5981_v23  ;;  %v8531_v23 = vld [vmem:[#allocation67_spill] sm:$0xff] }
 0x23f   : > { %v1845_v26 = vsel %vm1844_vm6, %v1812_v60, %v6113_v11  ;;  %v1714_v52 = vsel %vm279_vm0, %v401_v10, %v8529_v56  ;;  %v4931_v56 = vld [vmem:[#allocation2 + $0x30] sm:$0xff] }
 0x240   : > { %v1878_v42 = vsel %vm1877_vm7, %v1845_v26, %v6230_v30  ;;  %v1747_v11 = vsel %vm1745_vm2, %v1714_v52, %v8531_v23  ;;  %v8533_v26 = vld [vmem:[#allocation11_spill] sm:$0xff]  ;;  %v8534_v52 = vld [vmem:[#allocation9_spill] sm:$0xff] }
 0x241   : > { %v6376_v29 = vpop.permute.xlu1 %1523  ;;  %v6382_v62 = vpop.permute.xlu0 %1529  ;;  %v1911_v35 = vsel %vm1910_vm8, %v1878_v42, %v1490_v3  ;;  %v1780_v30 = vsel %vm1778_vm4, %v1747_v11, %v5863_v55  ;;  %v8536_v23 = vld [vmem:[#allocation69_spill] sm:$0xff] }
 0x242   : > { %8525 = vst [vmem:[#allocation4_spill] sm:$0xff] %v6376_v29  ;;  %8527 = vst [vmem:[#allocation62_spill] sm:$0xff] %v6382_v62  ;;  %v4929_v29 = vld [vmem:[#allocation2 + $0x18] sm:$0xff] }
 0x243   : > { %v1715_v5 = vsel %vm279_vm0, %v4929_v29, %v8530_v45  ;;  %v1813_v29 = vsel %vm1811_vm5, %v1780_v30, %v5995_v33  ;;  %v4930_v45 = vld [vmem:[#allocation2 + $0x20] sm:$0xff] }
 0x244   : > { %v1846_v55 = vsel %vm1844_vm6, %v1813_v29, %v6127_v44 }
 0x245   : > { %v6388_v32 = vpop.permute.xlu1 %1527  ;;  %v1618_v62 = vpop.permute.xlu0 %1617 }
 0x246   : > { %8528 = vst [vmem:[#allocation162_spill] sm:$0xff] %v6388_v32  ;;  %v1944_v60 = vsel %vm1943_vm9, %v1911_v35, %v1618_v62  ;;  %v8532_v32 = vld [vmem:[#allocation66_spill] sm:$0xff]  ;;  %v1716_v62 = vsel %vm279_vm0, %v4930_v45, %v8533_v26  ;;  %v1717_v35 = vsel %vm279_vm0, %v4931_v56, %v8534_v52  ;;  %v4932_v45 = vld [vmem:[#allocation2 + $0x38] sm:$0xff] }
 0x247   : > { %v1748_v13 = vsel %vm1745_vm2, %v1715_v5, %v8532_v32  ;;  %4776 = vmatprep.mubr.msk.f32.mxu0 %vm1981_vm10, %v1944_v60  ;;  %v8535_v5 = vld [vmem:[#allocation70_spill] sm:$0xff] }
 0x248   : > { %v1781_v3 = vsel %vm1778_vm4, %v1748_v13, %v5857_v54  ;;  %v1749_v54 = vsel %vm1745_vm2, %v1716_v62, %v8535_v5  ;;  %v1879_v13 = vsel %vm1877_vm7, %v1846_v55, %v6240_v39  ;;  %v8539_v55 = vld [vmem:[#allocation72_spill] sm:$0xff] }
 0x249   : > { %v6405_v10 = vpop.permute.xlu1 %1531  ;;  %v1814_v32 = vsel %vm1811_vm5, %v1781_v3, %v5989_v28  ;;  %v1622_v42 = vpop.permute.xlu0 %1621  ;;  %v1750_v28 = vsel %vm1745_vm2, %v1717_v35, %v8536_v23  ;;  %v1782_v44 = vsel %vm1778_vm4, %v1749_v54, %v5873_v57  ;;  %v1912_v60 = vsel %vm1910_vm8, %v1879_v13, %v6337_v0  ;;  %v8537_v57 = vld [vmem:[#allocation14_spill] sm:$0xff] }
 0x24a   : > { %v1847_v33 = vsel %vm1844_vm6, %v1814_v32, %v6121_v12  ;;  %v1783_v3 = vsel %vm1778_vm4, %v1750_v28, %v5867_v50  ;;  %v1815_v12 = vsel %vm1811_vm5, %v1782_v44, %v6005_v36  ;;  %v1718_v26 = vsel %vm279_vm0, %v4932_v45, %v8537_v57  ;;  %v4933_v36 = vld [vmem:[#allocation2 + $0x48] sm:$0xff]  ;;  %v8538_v32 = vld [vmem:[#allocation12_spill] sm:$0xff]  ;;  %v4934_v28 = vld [vmem:[#allocation2 + $0x50] sm:$0xff] }
 0x24b   : > { %v1880_v11 = vsel %vm1877_vm7, %v1847_v33, %v6236_v38  ;;  %v1816_v38 = vsel %vm1811_vm5, %v1783_v3, %v5999_v19  ;;  %v1848_v0 = vsel %vm1844_vm6, %v1815_v12, %v6134_v58  ;;  %v1751_v56 = vsel %vm1745_vm2, %v1718_v26, %v8539_v55  ;;  %v8540_v58 = vld [vmem:[#allocation71_spill] sm:$0xff] }
 0x24c   : > { %v1913_v39 = vsel %vm1910_vm8, %v1880_v11, %v6332_v40  ;;  %v1719_v40 = vsel %vm279_vm0, %v4933_v36, %v8538_v32  ;;  %v1849_v52 = vsel %vm1844_vm6, %v1816_v38, %v6129_v43  ;;  %v1881_v19 = vsel %vm1877_vm7, %v1848_v0, %v6246_v16  ;;  %v4936_v38 = vld [vmem:[#allocation2 + $0x68] sm:$0xff] }
 0x24d   : > { %v1620_v30 = vpop.permute.xlu1 %1619  ;;  %v1946_v50 = vsel %vm1943_vm9, %v1913_v39, %v1622_v42  ;;  %v1626_v62 = vpop.permute.xlu0 %1625  ;;  %v1752_v42 = vsel %vm1745_vm2, %v1719_v40, %v8540_v58  ;;  %v1784_v35 = vsel %vm1778_vm4, %v1751_v56, %v5883_v61  ;;  %v1882_v5 = vsel %vm1877_vm7, %v1849_v52, %v6242_v14  ;;  %v8541_v61 = vld [vmem:[#allocation17_spill] sm:$0xff] }
 0x24e   : > { %v1945_v29 = vsel %vm1943_vm9, %v1912_v60, %v1620_v30  ;;  %v1914_v54 = vsel %vm1910_vm8, %v1881_v19, %v6344_v22  ;;  %v1785_v43 = vsel %vm1778_vm4, %v1752_v42, %v5875_v59  ;;  %v1817_v16 = vsel %vm1811_vm5, %v1784_v35, %v6015_v49  ;;  %v4935_v49 = vld [vmem:[#allocation2 + $0x60] sm:$0xff]  ;;  %v8542_v60 = vld [vmem:[#allocation15_spill] sm:$0xff] }
 0x24f   : > { %4777 = vmatmul.mubr.msk.f32.vlgmr.msra.gmra.mxu0 %vm1981_vm10, %v1945_v29  ;;  %v1915_v13 = vsel %vm1910_vm8, %v1882_v5, %v6339_v15  ;;  %v1720_v44 = vsel %vm279_vm0, %v4934_v28, %v8541_v61  ;;  %v1818_v14 = vsel %vm1811_vm5, %v1785_v43, %v6007_v24  ;;  %v1850_v22 = vsel %vm1844_vm6, %v1817_v16, %v6141_v34  ;;  %v8543_v34 = vld [vmem:[#allocation73_spill] sm:$0xff]  ;;  %v4938_v19 = vld [vmem:[#allocation2 + $0x80] sm:$0xff]  ;;  %v8548_v5 = vld [vmem:[#allocation22_spill] sm:$0xff] }
 0x250   : > { %4779 = vmatprep.mubr.msk.f32.mxu0 %vm1981_vm10, %v1946_v50  ;;  %v1948_v59 = vsel %vm1943_vm9, %v1915_v13, %v1626_v62  ;;  %v1721_v15 = vsel %vm279_vm0, %v4935_v49, %v8542_v60  ;;  %v1753_v30 = vsel %vm1745_vm2, %v1720_v44, %v5759_v4  ;;  %v1851_v3 = vsel %vm1844_vm6, %v1818_v14, %v6136_v21  ;;  %v8545_v62 = vld [vmem:[#allocation18_spill] sm:$0xff]  ;;  %v8550_v43 = vld [vmem:[#allocation51_spill] sm:$0xff]  ;;  %v8553_v61 = vld [vmem:[#allocation96_spill] sm:$0xff] }
 0x251   : > { %v1624_v33 = vpop.permute.xlu1 %1623  ;;  %v1630_v11 = vpop.permute.xlu0 %1629  ;;  %v1883_v24 = vsel %vm1877_vm7, %v1850_v22, %v6252_v31  ;;  %v1754_v12 = vsel %vm1745_vm2, %v1721_v15, %v8543_v34  ;;  %v1786_v39 = vsel %vm1778_vm4, %v1753_v30, %v5891_v63  ;;  %v1884_v29 = vsel %vm1877_vm7, %v1851_v3, %v6248_v47  ;;  %v8544_v63 = vld [vmem:[#allocation20_spill] sm:$0xff]  ;;  %v8551_v13 = vld [vmem:[#allocation131_spill] sm:$0xff]  ;;  %v8554_v14 = vld [vmem:[#allocation130_spill] sm:$0xff] }
 0x252   : > { %v1947_v23 = vsel %vm1943_vm9, %v1914_v54, %v1624_v33  ;;  %v1916_v4 = vsel %vm1910_vm8, %v1883_v24, %v6349_v1  ;;  %v1787_v21 = vsel %vm1778_vm4, %v1754_v12, %v5885_v53  ;;  %v1819_v31 = vsel %vm1811_vm5, %v1786_v39, %v6023_v46  ;;  %v4937_v46 = vld [vmem:[#allocation2 + $0x78] sm:$0xff]  ;;  %v8557_v30 = vld [vmem:[#allocation8_spill] sm:$0xff]  ;;  %v8558_v24 = vld [vmem:[#allocation153_spill] sm:$0xff] }
 0x253   : > { %4780 = vmatmul.mubr.msk.f32.gmra.mxu0 %vm1981_vm10, %v1947_v23  ;;  %v1917_v57 = vsel %vm1910_vm8, %v1884_v29, %v6346_v8  ;;  %v1722_v0 = vsel %vm279_vm0, %v4936_v38, %v8544_v63  ;;  %v1820_v47 = vsel %vm1811_vm5, %v1787_v21, %v6017_v17  ;;  %v1852_v1 = vsel %vm1844_vm6, %v1819_v31, %v6147_v41  ;;  %v8549_v54 = vld [vmem:[#allocation75_spill] sm:$0xff]  ;;  %v8552_v23 = vld [vmem:[#allocation74_spill] sm:$0xff]  ;;  %v8559_v29 = vld [vmem:[#allocation28_spill] sm:$0xff] }
 0x254   : > { %4782 = vmatprep.mubr.msk.f32.mxu0 %vm1981_vm10, %v1948_v59  ;;  %v1950_v53 = vsel %vm1943_vm9, %v1917_v57, %v1630_v11  ;;  %v1723_v8 = vsel %vm279_vm0, %v4937_v46, %v8545_v62  ;;  %v1755_v36 = vsel %vm1745_vm2, %v1722_v0, %v5767_v25  ;;  %v1853_v32 = vsel %vm1844_vm6, %v1820_v47, %v6143_v9  ;;  %v8555_v59 = vld [vmem:[#allocation154_spill] sm:$0xff]  ;;  %v8556_v60 = vld [vmem:[#allocation95_spill] sm:$0xff]  ;;  %v8561_v31 = vld [vmem:[#allocation57_spill] sm:$0xff] }
 0x255   : > { %v1628_v45 = vpop.permute.xlu1 %1627  ;;  %v1634_v50 = vpop.permute.xlu0 %1633  ;;  %v1885_v17 = vsel %vm1877_vm7, %v1852_v1, %v6258_v7  ;;  %v1756_v41 = vsel %vm1745_vm2, %v1723_v8, %v5761_v37  ;;  %v1788_v40 = vsel %vm1778_vm4, %v1755_v36, %v5899_v2  ;;  %v1886_v55 = vsel %vm1877_vm7, %v1853_v32, %v6254_v6  ;;  %v8546_v2 = vld [vmem:[#allocation24_spill] sm:$0xff]  ;;  %v4940_v39 = vld [vmem:[#allocation2 + $0x98] sm:$0xff]  ;;  %v4941_v63 = vld [vmem:[#allocation2 + $0xa8] sm:$0xff] }
 0x256   : > { %v1949_v26 = vsel %vm1943_vm9, %v1916_v4, %v1628_v45  ;;  %v1918_v25 = vsel %vm1910_vm8, %v1885_v17, %v6354_v48  ;;  %v1789_v9 = vsel %vm1778_vm4, %v1756_v41, %v5893_v51  ;;  %v1821_v7 = vsel %vm1811_vm5, %v1788_v40, %v6031_v20  ;;  %v8547_v48 = vld [vmem:[#allocation53_spill] sm:$0xff]  ;;  %v4939_v20 = vld [vmem:[#allocation2 + $0x90] sm:$0xff]  ;;  %v8566_v36 = vld [vmem:[#allocation76_spill] sm:$0xff] }
 0x257   : > { %4783 = vmatmul.mubr.msk.f32.gmra.mxu0 %vm1981_vm10, %v1949_v26  ;;  %v1919_v52 = vsel %vm1910_vm8, %v1886_v55, %v6351_v27  ;;  %v1724_v58 = vsel %vm279_vm0, %v4938_v19, %v8546_v2  ;;  %v1822_v6 = vsel %vm1811_vm5, %v1789_v9, %v6025_v18  ;;  %v1854_v42 = vsel %vm1844_vm6, %v1821_v7, %v8547_v48  ;;  %v8560_v45 = vld [vmem:[#allocation6_spill] sm:$0xff]  ;;  %v8563_v1 = vld [vmem:[#allocation77_spill] sm:$0xff]  ;;  %v8568_v40 = vld [vmem:[#allocation132_spill] sm:$0xff] }
 0x258   : > { %4785 = vmatprep.mubr.msk.f32.mxu0 %vm1981_vm10, %v1950_v53  ;;  %v1952_v51 = vsel %vm1943_vm9, %v1919_v52, %v1634_v50  ;;  %v1725_v27 = vsel %vm279_vm0, %v4939_v20, %v8548_v5  ;;  %v1757_v33 = vsel %vm1745_vm2, %v1724_v58, %v8549_v54  ;;  %v1855_v16 = vsel %vm1844_vm6, %v1822_v6, %v8550_v43  ;;  %v8562_v0 = vld [vmem:[#allocation26_spill] sm:$0xff]  ;;  %v8564_v50 = vld [vmem:[#allocation55_spill] sm:$0xff]  ;;  %v8565_v62 = vld [vmem:[#allocation133_spill] sm:$0xff] }
 0x259   : > { %v1632_v56 = vpop.permute.xlu1 %1631  ;;  %v1638_v35 = vpop.permute.xlu0 %1637  ;;  %v1887_v18 = vsel %vm1877_vm7, %v1854_v42, %v8551_v13  ;;  %v1758_v28 = vsel %vm1745_vm2, %v1725_v27, %v8552_v23  ;;  %v1790_v44 = vsel %vm1778_vm4, %v1757_v33, %v8553_v61  ;;  %v1888_v22 = vsel %vm1877_vm7, %v1855_v16, %v8554_v14  ;;  %v8567_v17 = vld [vmem:[#allocation98_spill] sm:$0xff]  ;;  %v8570_v7 = vld [vmem:[#allocation97_spill] sm:$0xff]  ;;  %v8572_v2 = vld [vmem:[#allocation155_spill] sm:$0xff] }
 0x25a   : > { %v1951_v37 = vsel %vm1943_vm9, %v1918_v25, %v1632_v56  ;;  %v1920_v11 = vsel %vm1910_vm8, %v1887_v18, %v8555_v59  ;;  %v1791_v15 = vsel %vm1778_vm4, %v1758_v28, %v8556_v60  ;;  %v1823_v3 = vsel %vm1811_vm5, %v1790_v44, %v8557_v30  ;;  %v8569_v25 = vld [vmem:[#allocation156_spill] sm:$0xff]  ;;  %v4942_v48 = vld [vmem:[#allocation2 + $0xb0] sm:$0xff]  ;;  %v8575_v5 = vld [vmem:[#allocation61_spill] sm:$0xff] }
 0x25b   : > { %4786 = vmatmul.mubr.msk.f32.gmra.mxu0 %vm1981_vm10, %v1951_v37  ;;  %v1921_v34 = vsel %vm1910_vm8, %v1888_v22, %v8558_v24  ;;  %v1726_v4 = vsel %vm279_vm0, %v4940_v39, %v8559_v29  ;;  %v1824_v21 = vsel %vm1811_vm5, %v1791_v15, %v8560_v45  ;;  %v1856_v57 = vsel %vm1844_vm6, %v1823_v3, %v8561_v31  ;;  %v8571_v37 = vld [vmem:[#allocation13_spill] sm:$0xff]  ;;  %v8573_v42 = vld [vmem:[#allocation32_spill] sm:$0xff]  ;;  %v8576_v16 = vld [vmem:[#allocation30_spill] sm:$0xff] }
 0x25c   : > { %4788 = vmatprep.mubr.msk.f32.mxu0 %vm1981_vm10, %v1952_v51  ;;  %v1954_v26 = vsel %vm1943_vm9, %v1921_v34, %v1638_v35  ;;  %v1727_v47 = vsel %vm279_vm0, %v4941_v63, %v8562_v0  ;;  %v1759_v53 = vsel %vm1745_vm2, %v1726_v4, %v8563_v1  ;;  %v1857_v46 = vsel %vm1844_vm6, %v1824_v21, %v8564_v50  ;;  %v8574_v35 = vld [vmem:[#allocation10_spill] sm:$0xff]  ;;  %v4943_v43 = vld [vmem:[#allocation2 + $0xc0] sm:$0xff]  ;;  %v8577_v18 = vld [vmem:[#allocation79_spill] sm:$0xff] }
 0x25d   : > { %v1636_v49 = vpop.permute.xlu1 %1635  ;;  %v1642_v38 = vpop.permute.xlu0 %1641  ;;  %v1889_v8 = vsel %vm1877_vm7, %v1856_v57, %v8565_v62  ;;  %v1760_v32 = vsel %vm1745_vm2, %v1727_v47, %v8566_v36  ;;  %v1792_v41 = vsel %vm1778_vm4, %v1759_v53, %v8567_v17  ;;  %v1890_v55 = vsel %vm1877_vm7, %v1857_v46, %v8568_v40  ;;  %v8578_v28 = vld [vmem:[#allocation59_spill] sm:$0xff]  ;;  %v8580_v22 = vld [vmem:[#allocation78_spill] sm:$0xff]  ;;  %v8586_v4 = vld [vmem:[#allocation157_spill] sm:$0xff] }
 0x25e   : > { %v1953_v12 = vsel %vm1943_vm9, %v1920_v11, %v1636_v49  ;;  %v1922_v56 = vsel %vm1910_vm8, %v1889_v8, %v8569_v25  ;;  %v1793_v52 = vsel %vm1778_vm4, %v1760_v32, %v8570_v7  ;;  %v1825_v19 = vsel %vm1811_vm5, %v1792_v41, %v8571_v37  ;;  %v8579_v44 = vld [vmem:[#allocation135_spill] sm:$0xff]  ;;  %v8581_v11 = vld [vmem:[#allocation100_spill] sm:$0xff]  ;;  %v8582_v60 = vld [vmem:[#allocation134_spill] sm:$0xff] }
 0x25f   : > { %4789 = vmatmul.mubr.msk.f32.gmra.mxu0 %vm1981_vm10, %v1953_v12  ;;  %v1923_v58 = vsel %vm1910_vm8, %v1890_v55, %v8572_v2  ;;  %v1728_v51 = vsel %vm279_vm0, %v4942_v48, %v8573_v42  ;;  %v1826_v20 = vsel %vm1811_vm5, %v1793_v52, %v8574_v35  ;;  %v1858_v27 = vsel %vm1844_vm6, %v1825_v19, %v8575_v5  ;;  %v8583_v30 = vld [vmem:[#allocation158_spill] sm:$0xff]  ;;  %v8584_v34 = vld [vmem:[#allocation99_spill] sm:$0xff]  ;;  %v4944_v31 = vld [vmem:[#allocation2 + $0xc8] sm:$0xff] }
 0x260   : > { %4791 = vmatprep.mubr.msk.f32.mxu0 %vm1981_vm10, %v1954_v26  ;;  %v1956_v54 = vsel %vm1943_vm9, %v1923_v58, %v1642_v38  ;;  %v1729_v13 = vsel %vm279_vm0, %v4943_v43, %v8576_v16  ;;  %v1761_v23 = vsel %vm1745_vm2, %v1728_v51, %v8577_v18  ;;  %v1859_v61 = vsel %vm1844_vm6, %v1826_v20, %v8578_v28  ;;  %v8585_v39 = vld [vmem:[#allocation19_spill] sm:$0xff]  ;;  %v8587_v57 = vld [vmem:[#allocation36_spill] sm:$0xff]  ;;  %v8589_v0 = vld [vmem:[#allocation65_spill] sm:$0xff] }
 0x261   : > { %v1640_v9 = vpop.permute.xlu1 %1639  ;;  %v1646_v33 = vpop.permute.xlu0 %1645  ;;  %v1891_v14 = vsel %vm1877_vm7, %v1858_v27, %v8579_v44  ;;  %v1762_v59 = vsel %vm1745_vm2, %v1729_v13, %v8580_v22  ;;  %v1794_v49 = vsel %vm1778_vm4, %v1761_v23, %v8581_v11  ;;  %v1892_v15 = vsel %vm1877_vm7, %v1859_v61, %v8582_v60  ;;  %v8588_v38 = vld [vmem:[#allocation16_spill] sm:$0xff]  ;;  %v4945_v50 = vld [vmem:[#allocation2 + $0xd8] sm:$0xff]  ;;  %v8590_v46 = vld [vmem:[#allocation34_spill] sm:$0xff] }
 0x262   : > { %v1955_v6 = vsel %vm1943_vm9, %v1922_v56, %v1640_v9  ;;  %v1924_v3 = vsel %vm1910_vm8, %v1891_v14, %v8583_v30  ;;  %v1795_v12 = vsel %vm1778_vm4, %v1762_v59, %v8584_v34  ;;  %v1827_v29 = vsel %vm1811_vm5, %v1794_v49, %v8585_v39  ;;  %v8591_v8 = vld [vmem:[#allocation81_spill] sm:$0xff]  ;;  %v8592_v32 = vld [vmem:[#allocation63_spill] sm:$0xff]  ;;  %v8594_v55 = vld [vmem:[#allocation80_spill] sm:$0xff] }
 0x263   : > { %4792 = vmatmul.mubr.msk.f32.gmra.mxu0 %vm1981_vm10, %v1955_v6  ;;  %v1925_v45 = vsel %vm1910_vm8, %v1892_v15, %v8586_v4  ;;  %v1730_v26 = vsel %vm279_vm0, %v4944_v31, %v8587_v57  ;;  %v1828_v63 = vsel %vm1811_vm5, %v1795_v12, %v8588_v38  ;;  %v1860_v47 = vsel %vm1844_vm6, %v1827_v29, %v8589_v0  ;;  %v8593_v41 = vld [vmem:[#allocation137_spill] sm:$0xff]  ;;  %v8595_v56 = vld [vmem:[#allocation102_spill] sm:$0xff]  ;;  %v8596_v7 = vld [vmem:[#allocation136_spill] sm:$0xff] }
 0x264   : > { %4794 = vmatprep.mubr.msk.f32.mxu0 %vm1981_vm10, %v1956_v54  ;;  %v1958_v1 = vsel %vm1943_vm9, %v1925_v45, %v1646_v33  ;;  %v1731_v62 = vsel %vm279_vm0, %v4945_v50, %v8590_v46  ;;  %v1763_v36 = vsel %vm1745_vm2, %v1730_v26, %v8591_v8  ;;  %v1861_v17 = vsel %vm1844_vm6, %v1828_v63, %v8592_v32  ;;  %v8597_v37 = vld [vmem:[#allocation160_spill] sm:$0xff]  ;;  %v8598_v58 = vld [vmem:[#allocation101_spill] sm:$0xff]  ;;  %v8599_v48 = vld [vmem:[#allocation23_spill] sm:$0xff] }
 0x265   : > { %v1644_v24 = vpop.permute.xlu1 %1643  ;;  %v1650_v53 = vpop.permute.xlu0 %1649  ;;  %v1893_v40 = vsel %vm1877_vm7, %v1860_v47, %v8593_v41  ;;  %v1764_v25 = vsel %vm1745_vm2, %v1731_v62, %v8594_v55  ;;  %v1796_v9 = vsel %vm1778_vm4, %v1763_v36, %v8595_v56  ;;  %v1894_v52 = vsel %vm1877_vm7, %v1861_v17, %v8596_v7  ;;  %v8600_v51 = vld [vmem:[#allocation159_spill] sm:$0xff]  ;;  %v4946_v5 = vld [vmem:[#allocation2 + $0xe0] sm:$0xff]  ;;  %v8602_v33 = vld [vmem:[#allocation21_spill] sm:$0xff] }
 0x266   : > { %v1957_v21 = vsel %vm1943_vm9, %v1924_v3, %v1644_v24  ;;  %v1926_v19 = vsel %vm1910_vm8, %v1893_v40, %v8597_v37  ;;  %v1797_v6 = vsel %vm1778_vm4, %v1764_v25, %v8598_v58  ;;  %v1829_v42 = vsel %vm1811_vm5, %v1796_v9, %v8599_v48  ;;  %v8601_v27 = vld [vmem:[#allocation40_spill] sm:$0xff]  ;;  %v4947_v28 = vld [vmem:[#allocation2 + $0xf0] sm:$0xff]  ;;  %v8605_v14 = vld [vmem:[#allocation83_spill] sm:$0xff] }
 0x267   : > { %4795 = vmatmul.mubr.msk.f32.gmra.mxu0 %vm1981_vm10, %v1957_v21  ;;  %v1927_v35 = vsel %vm1910_vm8, %v1894_v52, %v8600_v51  ;;  %v1732_v54 = vsel %vm279_vm0, %v4946_v5, %v8601_v27  ;;  %v1830_v43 = vsel %vm1811_vm5, %v1797_v6, %v8602_v33  ;;  %v8603_v16 = vld [vmem:[#allocation116_spill] sm:$0xff]  ;;  %v8604_v61 = vld [vmem:[#allocation38_spill] sm:$0xff]  ;;  %v8607_v49 = vld [vmem:[#allocation139_spill] sm:$0xff] }
 0x268   : > { %4797 = vmatprep.mubr.msk.f32.mxu0 %vm1981_vm10, %v1958_v1  ;;  %v1862_v13 = vsel %vm1844_vm6, %v1829_v42, %v8603_v16  ;;  %v1960_v18 = vsel %vm1943_vm9, %v1927_v35, %v1650_v53  ;;  %v1733_v44 = vsel %vm279_vm0, %v4947_v28, %v8604_v61  ;;  %v1765_v22 = vsel %vm1745_vm2, %v1732_v54, %v8605_v14  ;;  %v8606_v59 = vld [vmem:[#allocation68_spill] sm:$0xff]  ;;  %v8608_v15 = vld [vmem:[#allocation82_spill] sm:$0xff]  ;;  %v8612_v45 = vld [vmem:[#allocation103_spill] sm:$0xff] }
 0x269   : > { %v1648_v2 = vpop.permute.xlu1 %1647  ;;  %v1654_v23 = vpop.permute.xlu0 %1653  ;;  %v1863_v11 = vsel %vm1844_vm6, %v1830_v43, %v8606_v59  ;;  %v1895_v60 = vsel %vm1877_vm7, %v1862_v13, %v8607_v49  ;;  %v1766_v30 = vsel %vm1745_vm2, %v1733_v44, %v8608_v15  ;;  %v8609_v3 = vld [vmem:[#allocation104_spill] sm:$0xff]  ;;  %v8610_v34 = vld [vmem:[#allocation138_spill] sm:$0xff]  ;;  %v8613_v31 = vld [vmem:[#allocation27_spill] sm:$0xff] }
 0x26a   : > { %v1959_v20 = vsel %vm1943_vm9, %v1926_v19, %v1648_v2  ;;  %v1798_v24 = vsel %vm1778_vm4, %v1765_v22, %v8609_v3  ;;  %v1896_v12 = vsel %vm1877_vm7, %v1863_v11, %v8610_v34  ;;  %v8611_v39 = vld [vmem:[#allocation4_spill] sm:$0xff]  ;;  %v1799_v21 = vsel %vm1778_vm4, %v1766_v30, %v8612_v45  ;;  %v8614_v26 = vld [vmem:[#allocation161_spill] sm:$0xff]  ;;  %v4948_v0 = vld [vmem:[#allocation2 + $0xf8] sm:$0xff] }
 0x26b   : > { %4798 = vmatmul.mubr.msk.f32.gmra.mxu0 %vm1981_vm10, %v1959_v20  ;;  %v1928_v29 = vsel %vm1910_vm8, %v1895_v60, %v8611_v39  ;;  %v1831_v57 = vsel %vm1811_vm5, %v1798_v24, %v8613_v31  ;;  %v1929_v38 = vsel %vm1910_vm8, %v1896_v12, %v8614_v26  ;;  %v8615_v47 = vld [vmem:[#allocation44_spill] sm:$0xff]  ;;  %v8616_v53 = vld [vmem:[#allocation25_spill] sm:$0xff]  ;;  %v8617_v46 = vld [vmem:[#allocation118_spill] sm:$0xff] }
 0x26c   : > { %4800 = vmatprep.mubr.msk.f32.mxu0 %vm1981_vm10, %v1960_v18  ;;  %v1734_v1 = vsel %vm279_vm0, %v4948_v0, %v8615_v47  ;;  %v1832_v50 = vsel %vm1811_vm5, %v1799_v21, %v8616_v53  ;;  %v1864_v62 = vsel %vm1844_vm6, %v1831_v57, %v8617_v46  ;;  %v1962_v8 = vsel %vm1943_vm9, %v1929_v38, %v1654_v23  ;;  %v8618_v32 = vld [vmem:[#allocation85_spill] sm:$0xff]  ;;  %v8621_v9 = vld [vmem:[#allocation42_spill] sm:$0xff]  ;;  %v8623_v19 = vld [vmem:[#allocation140_spill] sm:$0xff] }
 0x26d   : > { %v1652_v4 = vpop.permute.xlu1 %1651  ;;  %v1658_v36 = vpop.permute.xlu0 %1657  ;;  %v1767_v17 = vsel %vm1745_vm2, %v1734_v1, %v8618_v32  ;;  %v8619_v41 = vld [vmem:[#allocation117_spill] sm:$0xff]  ;;  %v8622_v52 = vld [vmem:[#allocation106_spill] sm:$0xff]  ;;  %v8625_v42 = vld [vmem:[#allocation84_spill] sm:$0xff] }
 0x26e   : > { %v1961_v63 = vsel %vm1943_vm9, %v1928_v29, %v1652_v4  ;;  %v1865_v40 = vsel %vm1844_vm6, %v1832_v50, %v8619_v41  ;;  %v8620_v55 = vld [vmem:[#allocation141_spill] sm:$0xff]  ;;  %v1800_v37 = vsel %vm1778_vm4, %v1767_v17, %v8622_v52  ;;  %v8624_v58 = vld [vmem:[#allocation162_spill] sm:$0xff]  ;;  %v8626_v35 = vld [vmem:[#allocation31_spill] sm:$0xff] }
 0x26f   : > { %4801 = vmatmul.mubr.msk.f32.gmra.mxu0 %vm1981_vm10, %v1961_v63  ;;  %v1897_v25 = vsel %vm1877_vm7, %v1864_v62, %v8620_v55  ;;  %v4949_v56 = vld [vmem:[#allocation2 + $0x108] sm:$0xff]  ;;  %v1898_v2 = vsel %vm1877_vm7, %v1865_v40, %v8623_v19  ;;  %v1833_v20 = vsel %vm1811_vm5, %v1800_v37, %v8626_v35  ;;  %v8627_v5 = vld [vmem:[#allocation62_spill] sm:$0xff]  ;;  %v8629_v16 = vld [vmem:[#allocation120_spill] sm:$0xff] }
 0x270   : > { %4803 = vmatprep.mubr.msk.f32.mxu0 %vm1981_vm10, %v1962_v8  ;;  %v1735_v7 = vsel %vm279_vm0, %v4949_v56, %v8621_v9  ;;  %v1930_v6 = vsel %vm1910_vm8, %v1897_v25, %v8624_v58  ;;  %v1931_v27 = vsel %vm1910_vm8, %v1898_v2, %v8627_v5  ;;  %v8628_v33 = vld [vmem:[#allocation105_spill] sm:$0xff]  ;;  %v1866_v13 = vsel %vm1844_vm6, %v1833_v20, %v8629_v16  ;;  %v8631_v44 = vld [vmem:[#allocation143_spill] sm:$0xff]  ;;  %v8633_v60 = vld [vmem:[#allocation142_spill] sm:$0xff] }
 0x271   : > { %v1656_v48 = vpop.permute.xlu1 %1655  ;;  %v1768_v51 = vsel %vm1745_vm2, %v1735_v7, %v8625_v42  ;;  %v1964_v18 = vsel %vm1943_vm9, %v1931_v27, %v1658_v36  ;;  %v1534_v23 = vpop.permute.xlu0 %1533  ;;  %v8630_v28 = vld [vmem:[#allocation29_spill] sm:$0xff]  ;;  %v1899_v14 = vsel %vm1877_vm7, %v1866_v13, %v8631_v44  ;;  %v8632_v22 = vld [vmem:[#allocation119_spill] sm:$0xff]  ;;  %v4950_v3 = vld [vmem:[#allocation2 + $0x110] sm:$0xff] }
 0x272   : > { %v1963_v54 = vsel %vm1943_vm9, %v1930_v6, %v1656_v48  ;;  %v1801_v43 = vsel %vm1778_vm4, %v1768_v51, %v8628_v33  ;;  %v1932_v11 = vsel %vm1910_vm8, %v1899_v14, %v6405_v10  ;;  %v8634_v24 = vld [vmem:[#allocation48_spill] sm:$0xff]  ;;  %v8635_v29 = vld [vmem:[#allocation87_spill] sm:$0xff]  ;;  %v8636_v21 = vld [vmem:[#allocation46_spill] sm:$0xff] }
 0x273   : > { %4804 = vmatmul.mubr.msk.f32.gmra.mxu0 %vm1981_vm10, %v1963_v54  ;;  %v1834_v61 = vsel %vm1811_vm5, %v1801_v43, %v8630_v28  ;;  %v1736_v34 = vsel %vm279_vm0, %v4950_v3, %v8634_v24  ;;  %v4951_v45 = vld [vmem:[#allocation2 + $0x120] sm:$0xff]  ;;  %v8638_v63 = vld [vmem:[#allocation86_spill] sm:$0xff]  ;;  %v8639_v47 = vld [vmem:[#allocation35_spill] sm:$0xff] }
 0x274   : > { %4806 = vmatprep.mubr.msk.f32.mxu0 %vm1981_vm10, %v1964_v18  ;;  %v1867_v59 = vsel %vm1844_vm6, %v1834_v61, %v8632_v22  ;;  %v1769_v4 = vsel %vm1745_vm2, %v1736_v34, %v8635_v29  ;;  %v1737_v31 = vsel %vm279_vm0, %v4951_v45, %v8636_v21  ;;  %v8637_v57 = vld [vmem:[#allocation108_spill] sm:$0xff]  ;;  %v8640_v53 = vld [vmem:[#allocation107_spill] sm:$0xff]  ;;  %v8641_v46 = vld [vmem:[#allocation122_spill] sm:$0xff] }
 0x275   : > { %v1660_v49 = vpop.permute.xlu1 %1659  ;;  %v1900_v15 = vsel %vm1877_vm7, %v1867_v59, %v8633_v60  ;;  %v1662_v39 = vpop.permute.xlu0 %1661  ;;  %v1802_v26 = vsel %vm1778_vm4, %v1769_v4, %v8637_v57  ;;  %v1770_v0 = vsel %vm1745_vm2, %v1737_v31, %v8638_v63  ;;  %v8642_v36 = vld [vmem:[#allocation33_spill] sm:$0xff]  ;;  %v8645_v9 = vld [vmem:[#allocation144_spill] sm:$0xff]  ;;  %v4953_v35 = vld [vmem:[#allocation2 + $0x138] sm:$0xff] }
 0x276   : > { %v1965_v30 = vsel %vm1943_vm9, %v1932_v11, %v1660_v49  ;;  %v1933_v12 = vsel %vm1910_vm8, %v1900_v15, %v1534_v23  ;;  %v1835_v1 = vsel %vm1811_vm5, %v1802_v26, %v8639_v47  ;;  %v1803_v50 = vsel %vm1778_vm4, %v1770_v0, %v8640_v53  ;;  %v8643_v17 = vld [vmem:[#allocation145_spill] sm:$0xff]  ;;  %v8646_v19 = vld [vmem:[#allocation52_spill] sm:$0xff]  ;;  %v8648_v20 = vld [vmem:[#allocation50_spill] sm:$0xff] }
 0x277   : > { %4807 = vmatmul.mubr.msk.f32.gmra.mxu0 %vm1981_vm10, %v1965_v30  ;;  %v1966_v10 = vsel %vm1943_vm9, %v1933_v12, %v1662_v39  ;;  %v1868_v62 = vsel %vm1844_vm6, %v1835_v1, %v8641_v46  ;;  %v1836_v32 = vsel %vm1811_vm5, %v1803_v50, %v8642_v36  ;;  %v8644_v40 = vld [vmem:[#allocation121_spill] sm:$0xff]  ;;  %v1739_v5 = vsel %vm279_vm0, %v4953_v35, %v8648_v20  ;;  %v8649_v27 = vld [vmem:[#allocation110_spill] sm:$0xff]  ;;  %v8650_v43 = vld [vmem:[#allocation88_spill] sm:$0xff] }
 0x278   : > { %4809 = vmatprep.mubr.msk.f32.mxu0 %vm1981_vm10, %v1966_v10  ;;  %v1901_v41 = vsel %vm1877_vm7, %v1868_v62, %v8643_v17  ;;  %v1869_v55 = vsel %vm1844_vm6, %v1836_v32, %v8644_v40  ;;  %v4952_v37 = vld [vmem:[#allocation2 + $0x128] sm:$0xff]  ;;  %v1772_v16 = vsel %vm1745_vm2, %v1739_v5, %v8650_v43  ;;  %v8651_v13 = vld [vmem:[#allocation39_spill] sm:$0xff]  ;;  %v8653_v61 = vld [vmem:[#allocation124_spill] sm:$0xff] }
 0x279   : > { %v1536_v38 = vpop.permute.xlu1 %1535  ;;  %v1538_v8 = vpop.permute.xlu0 %1537  ;;  %v1902_v7 = vsel %vm1877_vm7, %v1869_v55, %v8645_v9  ;;  %v1738_v2 = vsel %vm279_vm0, %v4952_v37, %v8646_v19  ;;  %v8647_v48 = vld [vmem:[#allocation89_spill] sm:$0xff]  ;;  %v8655_v11 = vld [vmem:[#allocation147_spill] sm:$0xff]  ;;  %v8657_v24 = vld [vmem:[#allocation146_spill] sm:$0xff] }
 0x27a   : > { %v1934_v25 = vsel %vm1910_vm8, %v1901_v41, %v1536_v38  ;;  %v1935_v58 = vsel %vm1910_vm8, %v1902_v7, %v1538_v8  ;;  %v1771_v42 = vsel %vm1745_vm2, %v1738_v2, %v8647_v48  ;;  %v8652_v23 = vld [vmem:[#allocation109_spill] sm:$0xff]  ;;  %v8656_v60 = vld [vmem:[#allocation123_spill] sm:$0xff]  ;;  %v4954_v39 = vld [vmem:[#allocation2 + $0x140] sm:$0xff] }
 0x27b   : > { %v1804_v54 = vsel %vm1778_vm4, %v1771_v42, %v8649_v27  ;;  %v1805_v28 = vsel %vm1778_vm4, %v1772_v16, %v8652_v23  ;;  %v8654_v22 = vld [vmem:[#allocation37_spill] sm:$0xff]  ;;  %v8658_v29 = vld [vmem:[#allocation56_spill] sm:$0xff]  ;;  %v8659_v21 = vld [vmem:[#allocation91_spill] sm:$0xff] }
 0x27c   : > { %v1837_v18 = vsel %vm1811_vm5, %v1804_v54, %v8651_v13  ;;  %v1838_v59 = vsel %vm1811_vm5, %v1805_v28, %v8654_v22  ;;  %v1740_v4 = vsel %vm279_vm0, %v4954_v39, %v8658_v29  ;;  %v4955_v26 = vld [vmem:[#allocation2 + $0x150] sm:$0xff]  ;;  %v8661_v0 = vld [vmem:[#allocation112_spill] sm:$0xff]  ;;  %v8663_v46 = vld [vmem:[#allocation43_spill] sm:$0xff] }
 0x27d   : > { %v1664_v56 = vpop.permute.xlu1 %1663  ;;  %v1666_v6 = vpop.permute.xlu0 %1665  ;;  %v1870_v44 = vsel %vm1844_vm6, %v1837_v18, %v8653_v61  ;;  %v1871_v15 = vsel %vm1844_vm6, %v1838_v59, %v8656_v60  ;;  %v1773_v31 = vsel %vm1745_vm2, %v1740_v4, %v8659_v21  ;;  %v8660_v38 = vld [vmem:[#allocation54_spill] sm:$0xff]  ;;  %v8664_v8 = vld [vmem:[#allocation111_spill] sm:$0xff]  ;;  %v8666_v40 = vld [vmem:[#allocation41_spill] sm:$0xff] }
 0x27e   : > { %v1967_v52 = vsel %vm1943_vm9, %v1934_v25, %v1664_v56  ;;  %v1968_v51 = vsel %vm1943_vm9, %v1935_v58, %v1666_v6  ;;  %v1903_v49 = vsel %vm1877_vm7, %v1870_v44, %v8655_v11  ;;  %v1904_v34 = vsel %vm1877_vm7, %v1871_v15, %v8657_v24  ;;  %v8662_v53 = vld [vmem:[#allocation90_spill] sm:$0xff]  ;;  %v8667_v25 = vld [vmem:[#allocation149_spill] sm:$0xff]  ;;  %v8669_v19 = vld [vmem:[#allocation148_spill] sm:$0xff] }
 0x27f   : > { %4810 = vmatmul.mubr.msk.f32.gmra.mxu0 %vm1981_vm10, %v1967_v52  ;;  %v1741_v63 = vsel %vm279_vm0, %v4955_v26, %v8660_v38  ;;  %v1806_v47 = vsel %vm1778_vm4, %v1773_v31, %v8661_v0  ;;  %v8665_v32 = vld [vmem:[#allocation126_spill] sm:$0xff]  ;;  %v8668_v9 = vld [vmem:[#allocation125_spill] sm:$0xff]  ;;  %v4956_v6 = vld [vmem:[#allocation2 + $0x158] sm:$0xff] }
 0x280   : > { %4812 = vmatprep.mubr.msk.f32.mxu0 %vm1981_vm10, %v1968_v51  ;;  %v1774_v50 = vsel %vm1745_vm2, %v1741_v63, %v8662_v53  ;;  %v1839_v62 = vsel %vm1811_vm5, %v1806_v47, %v8663_v46  ;;  %v8670_v48 = vld [vmem:[#allocation60_spill] sm:$0xff]  ;;  %v8671_v20 = vld [vmem:[#allocation93_spill] sm:$0xff]  ;;  %v8673_v16 = vld [vmem:[#allocation114_spill] sm:$0xff] }
 0x281   : > { %v1540_v33 = vpop.permute.xlu1 %1539  ;;  %v1542_v14 = vpop.permute.xlu0 %1541  ;;  %v1807_v36 = vsel %vm1778_vm4, %v1774_v50, %v8664_v8  ;;  %v1872_v17 = vsel %vm1844_vm6, %v1839_v62, %v8665_v32  ;;  %v1742_v42 = vsel %vm279_vm0, %v4956_v6, %v8670_v48  ;;  %v4957_v54 = vld [vmem:[#allocation2 + $0x168] sm:$0xff]  ;;  %v8674_v23 = vld [vmem:[#allocation92_spill] sm:$0xff]  ;;  %v8675_v61 = vld [vmem:[#allocation47_spill] sm:$0xff] }
 0x282   : > { %v1936_v30 = vsel %vm1910_vm8, %v1903_v49, %v1540_v33  ;;  %v1937_v10 = vsel %vm1910_vm8, %v1904_v34, %v1542_v14  ;;  %v1840_v55 = vsel %vm1811_vm5, %v1807_v36, %v8666_v40  ;;  %v1905_v56 = vsel %vm1877_vm7, %v1872_v17, %v8667_v25  ;;  %v8672_v33 = vld [vmem:[#allocation58_spill] sm:$0xff]  ;;  %v8677_v22 = vld [vmem:[#allocation113_spill] sm:$0xff]  ;;  %v8678_v11 = vld [vmem:[#allocation128_spill] sm:$0xff] }
 0x283   : > { %v1873_v7 = vsel %vm1844_vm6, %v1840_v55, %v8668_v9  ;;  %v1775_v5 = vsel %vm1745_vm2, %v1742_v42, %v8671_v20  ;;  %v1743_v43 = vsel %vm279_vm0, %v4957_v54, %v8672_v33  ;;  %v8676_v14 = vmov 0.0   ;;  %v8679_v15 = vld [vmem:[#allocation45_spill] sm:$0xff]  ;;  %v8681_v34 = vld [vmem:[#allocation127_spill] sm:$0xff]  ;;  %v8682_v4 = vld [vmem:[#allocation150_spill] sm:$0xff] }
 0x284   : > { %v1906_v2 = vsel %vm1877_vm7, %v1873_v7, %v8669_v19  ;;  %v1808_v13 = vsel %vm1778_vm4, %v1775_v5, %v8673_v16  ;;  %v1776_v28 = vsel %vm1745_vm2, %v1743_v43, %v8674_v23  ;;  %2423 = vst.msk [vmem:[#allocation3 + $0x28] sm:$0x3] %vm2419_vm11, %v8676_v14  ;;  %2420 = vst.msk [vmem:[#allocation3 + $0x10] sm:$0x3] %vm2419_vm11, %v8676_v14  ;;  %v4958_v21 = vld [vmem:[#allocation2 + $0x170] sm:$0xff]  ;;  %v8683_v31 = vld [vmem:[#allocation64_spill] sm:$0xff] }
 0x285   : > { %v1668_v3 = vpop.permute.xlu1 %1667  ;;  %v1670_v45 = vpop.permute.xlu0 %1669  ;;  %v1841_v44 = vsel %vm1811_vm5, %v1808_v13, %v8675_v61  ;;  %2426 = vst.msk [vmem:[#allocation3 + $0x40] sm:$0x3] %vm2419_vm11, %v8676_v14  ;;  %2429 = vst.msk [vmem:[#allocation3 + $0x58] sm:$0x3] %vm2419_vm11, %v8676_v14  ;;  %v1809_v59 = vsel %vm1778_vm4, %v1776_v28, %v8677_v22  ;;  %v8684_v63 = vld [vmem:[#allocation94_spill] sm:$0xff]  ;;  %v8686_v62 = vld [vmem:[#allocation49_spill] sm:$0xff] }
 0x286   : > { %v1969_v12 = vsel %vm1943_vm9, %v1936_v30, %v1668_v3  ;;  %v1970_v57 = vsel %vm1943_vm9, %v1937_v10, %v1670_v45  ;;  %2432 = vst.msk [vmem:[#allocation3 + $0x70] sm:$0x3] %vm2419_vm11, %v8676_v14  ;;  %2435 = vst.msk [vmem:[#allocation3 + $0x88] sm:$0x3] %vm2419_vm11, %v8676_v14  ;;  %v1874_v49 = vsel %vm1844_vm6, %v1841_v44, %v8678_v11  ;;  %v8680_v3 = vld [vmem:[#allocation151_spill] sm:$0xff]  ;;  %v8687_v36 = vld [vmem:[#allocation129_spill] sm:$0xff] }
 0x287   : > { %4813 = vmatmul.mubr.msk.f32.gmra.mxu0 %vm1981_vm10, %v1969_v12  ;;  %2438 = vst.msk [vmem:[#allocation3 + $0xa0] sm:$0x3] %vm2419_vm11, %v8676_v14  ;;  %2441 = vst.msk [vmem:[#allocation3 + $0xb8] sm:$0x3] %vm2419_vm11, %v8676_v14  ;;  %v1842_v30 = vsel %vm1811_vm5, %v1809_v59, %v8679_v15  ;;  %v1907_v24 = vsel %vm1877_vm7, %v1874_v49, %v8680_v3  ;;  %v2537_v17 = vld [vmem:[#allocation3 + $0x1] sm:$0xff] }
 0x288   : > { %4815 = vmatprep.mubr.msk.f32.mxu0 %vm1981_vm10, %v1970_v57  ;;  %2444 = vst.msk [vmem:[#allocation3 + $0xd0] sm:$0x3] %vm2419_vm11, %v8676_v14  ;;  %2447 = vst.msk [vmem:[#allocation3 + $0xe8] sm:$0x3] %vm2419_vm11, %v8676_v14  ;;  %v1875_v12 = vsel %vm1844_vm6, %v1842_v30, %v8681_v34  ;;  %v1744_v57 = vsel %vm279_vm0, %v4958_v21, %v8683_v31  ;;  %2826 = vrot.lane.b32.xlu0 %v2537_v17, %s4986_s9  ;;  %v6924_v9 = vld [vmem:[%s8265_s2] ss:$0 sm:$0xff] }
 0x289   : > { %v1544_v1 = vpop.permute.xlu1 %1543  ;;  %v1546_v41 = vpop.permute.xlu0 %1545  ;;  %2450 = vst.msk [vmem:[#allocation3 + $0x100] sm:$0x3] %vm2419_vm11, %v8676_v14  ;;  %2453 = vst.msk [vmem:[#allocation3 + $0x118] sm:$0x3] %vm2419_vm11, %v8676_v14  ;;  %v1908_v10 = vsel %vm1877_vm7, %v1875_v12, %v8682_v4  ;;  %v1777_v0 = vsel %vm1745_vm2, %v1744_v57, %v8684_v63  ;;  %vm4087_vm0 = vcmask 588800  }
 0x28a   : > { %v1938_v52 = vsel %vm1910_vm8, %v1905_v56, %v1544_v1  ;;  %v1939_v51 = vsel %vm1910_vm8, %v1906_v2, %v1546_v41  ;;  %2456 = vst.msk [vmem:[#allocation3 + $0x130] sm:$0x3] %vm2419_vm11, %v8676_v14  ;;  %2459 = vst.msk [vmem:[#allocation3 + $0x148] sm:$0x3] %vm2419_vm11, %v8676_v14  ;;  %v8685_v1 = vld [vmem:[#allocation115_spill] sm:$0xff]  ;;  %v8688_v41 = vld [vmem:[#allocation152_spill] sm:$0xff] }
 0x28b   : > { %2462 = vst.msk [vmem:[#allocation3 + $0x160] sm:$0x3] %vm2419_vm11, %v8676_v14  ;;  %2465 = vst.msk [vmem:[#allocation3 + $0x178] sm:$0x3] %vm2419_vm11, %v8676_v14  ;;  %v1810_v53 = vsel %vm1778_vm4, %v1777_v0, %v8685_v1  ;;  %v2538_v46 = vld [vmem:[#allocation3 + $0x9] sm:$0xff] }
 0x28c   : > { %2468 = vst.msk [vmem:[#allocation3 + $0x190] sm:$0x3] %vm2419_vm11, %v8676_v14  ;;  %2471 = vst.msk [vmem:[#allocation3 + $0x1a8] sm:$0x3] %vm2419_vm11, %v8676_v14  ;;  %v1843_v8 = vsel %vm1811_vm5, %v1810_v53, %v8686_v62  ;;  %2828 = vrot.lane.b32.xlu1 %v2538_v46, %s4986_s9 }
 0x28d   : > { %v1672_v37 = vpop.permute.xlu1 %1671  ;;  %v1674_v35 = vpop.permute.xlu0 %1673  ;;  %v1876_v32 = vsel %vm1844_vm6, %v1843_v8, %v8687_v36 }
 0x28e   : > { %v1971_v58 = vsel %vm1943_vm9, %v1938_v52, %v1672_v37  ;;  %v1972_v27 = vsel %vm1943_vm9, %v1939_v51, %v1674_v35  ;;  %v1909_v40 = vsel %vm1877_vm7, %v1876_v32, %v8688_v41  ;;  %v6929_v52 = vld [vmem:[%s8266_s3] ss:$0 sm:$0xff] }
 0x28f   : > { %4816 = vmatmul.mubr.msk.f32.gmra.mxu0 %vm1981_vm10, %v1971_v58 }
 0x290   : > { %4818 = vmatprep.mubr.msk.f32.mxu0 %vm1981_vm10, %v1972_v27 }
 0x291   : > { %v1548_v18 = vpop.permute.xlu1 %1547  ;;  %v1550_v60 = vpop.permute.xlu0 %1549 }
 0x292   : > { %v1940_v39 = vsel %vm1910_vm8, %v1907_v24, %v1548_v18  ;;  %v1941_v26 = vsel %vm1910_vm8, %v1908_v10, %v1550_v60 }
 0x295   : > { %v1676_v29 = vpop.permute.xlu1 %1675  ;;  %v1678_v38 = vpop.permute.xlu0 %1677 }
 0x296   : > { %v1973_v45 = vsel %vm1943_vm9, %v1940_v39, %v1676_v29  ;;  %v1974_v47 = vsel %vm1943_vm9, %v1941_v26, %v1678_v38 }
 0x297   : > { %4819 = vmatmul.mubr.msk.f32.gmra.mxu0 %vm1981_vm10, %v1973_v45 }
 0x298   : > { %4821 = vmatprep.mubr.msk.f32.mxu0 %vm1981_vm10, %v1974_v47 }
 0x299   : > { %v1552_v50 = vpop.permute.xlu1 %1551 }
 0x29a   : > { %v1942_v55 = vsel %vm1910_vm8, %v1909_v40, %v1552_v50 }
 0x29d   : > { %v1680_v25 = vpop.permute.xlu1 %1679 }
 0x29e   : > { %v1975_v56 = vsel %vm1943_vm9, %v1942_v55, %v1680_v25 }
 0x29f   : > { %4822 = vmatmul.mubr.msk.f32.gmra.mxu0 %vm1981_vm10, %v1975_v56 }
 0x30f   : > { %v4778_v7 = vpop.f32.mrf.mxu0 }
 0x310   : > { %v2315_v37 = vmul.f32 %v4778_v7, %v6924_v9 }
 0x311   : > { %v2148_v19 = vpop.f32.mrf.mxu0 }
 0x312   : > { %v2354_v2 = vadd.f32 %v6929_v52, %v2315_v37  ;;  %v2314_v58 = vmul.f32 %v6924_v9, %v2148_v19 }
 0x313   : > { %v4781_v6 = vpop.f32.mrf.mxu0 }
 0x314   : > { %v2386_v48 = vmax.f32 %v2354_v2, 0.0  ;;  %v2353_v42 = vadd.f32 %v6929_v52, %v2314_v58  ;;  %v2317_v51 = vmul.f32 %v4781_v6, %v6924_v9 }
 0x315   : > { %v2158_v35 = vpop.f32.mrf.mxu0 }
 0x316   : > { %2474 = vst.msk [vmem:[#allocation3 + $0x21] sm:$0xff] %vm1745_vm2, %v2386_v48  ;;  %v2385_v20 = vmax.f32 %v2353_v42, 0.0  ;;  %v2356_v5 = vadd.f32 %v6929_v52, %v2317_v51  ;;  %v2316_v27 = vmul.f32 %v6924_v9, %v2158_v35 }
 0x317   : > { %v4784_v54 = vpop.f32.mrf.mxu0 }
 0x318   : > { %2473 = vst.msk [vmem:[#allocation3 + $0x19] sm:$0xff] %vm1745_vm2, %v2385_v20  ;;  %v2388_v33 = vmax.f32 %v2356_v5, 0.0  ;;  %v2355_v43 = vadd.f32 %v6929_v52, %v2316_v27  ;;  %v2319_v16 = vmul.f32 %v4784_v54, %v6924_v9 }
 0x319   : > { %v2168_v13 = vpop.f32.mrf.mxu0 }
 0x31a   : > { %2476 = vst.msk [vmem:[#allocation3 + $0x39] sm:$0xff] %vm1745_vm2, %v2388_v33  ;;  %v2387_v18 = vmax.f32 %v2355_v43, 0.0  ;;  %v2358_v23 = vadd.f32 %v6929_v52, %v2319_v16  ;;  %v2318_v28 = vmul.f32 %v6924_v9, %v2168_v13 }
 0x31b   : > { %v4787_v61 = vpop.f32.mrf.mxu0 }
 0x31c   : > { %2475 = vst.msk [vmem:[#allocation3 + $0x31] sm:$0xff] %vm1745_vm2, %v2387_v18  ;;  %v2390_v44 = vmax.f32 %v2358_v23, 0.0  ;;  %v2357_v14 = vadd.f32 %v6929_v52, %v2318_v28  ;;  %v2321_v22 = vmul.f32 %v4787_v61, %v6924_v9 }
 0x31d   : > { %v2178_v59 = vpop.f32.mrf.mxu0  ;;  %v2540_v11 = vld [vmem:[#allocation3 + $0x21] sm:$0xff] }
 0x31e   : > { %2478 = vst.msk [vmem:[#allocation3 + $0x51] sm:$0xff] %vm1745_vm2, %v2390_v44  ;;  %v2389_v49 = vmax.f32 %v2357_v14, 0.0  ;;  %v2360_v60 = vadd.f32 %v6929_v52, %v2321_v22  ;;  %v2320_v15 = vmul.f32 %v6924_v9, %v2178_v59  ;;  %2832 = vrot.lane.b32.xlu1 %v2540_v11, %s4986_s9 }
 0x31f   : > { %v4790_v30 = vpop.f32.mrf.mxu0  ;;  %v2539_v3 = vld [vmem:[#allocation3 + $0x19] sm:$0xff] }
 0x320   : > { %2477 = vst.msk [vmem:[#allocation3 + $0x49] sm:$0xff] %vm1745_vm2, %v2389_v49  ;;  %v2392_v24 = vmax.f32 %v2360_v60, 0.0  ;;  %v2359_v34 = vadd.f32 %v6929_v52, %v2320_v15  ;;  %v2323_v12 = vmul.f32 %v4790_v30, %v6924_v9  ;;  %2830 = vrot.lane.b32.xlu0 %v2539_v3, %s4986_s9 }
 0x321   : > { %v2188_v39 = vpop.f32.mrf.mxu0  ;;  %v6956_v29 = vld [vmem:[#allocation3 + $0x39] sm:$0xff] }
 0x322   : > { %2480 = vst.msk [vmem:[#allocation3 + $0x69] sm:$0xff] %vm1745_vm2, %v2392_v24  ;;  %v2391_v4 = vmax.f32 %v2359_v34, 0.0  ;;  %v2362_v10 = vadd.f32 %v6929_v52, %v2323_v12  ;;  %v2322_v45 = vmul.f32 %v6924_v9, %v2188_v39  ;;  %2836 = vrot.lane.b32.xlu1 %v6956_v29, %s4986_s9 }
 0x323   : > { %v4793_v21 = vpop.f32.mrf.mxu0  ;;  %v6963_v31 = vld [vmem:[#allocation3 + $0x31] sm:$0xff] }
 0x324   : > { %2479 = vst.msk [vmem:[#allocation3 + $0x61] sm:$0xff] %vm1745_vm2, %v2391_v4  ;;  %v2394_v57 = vmax.f32 %v2362_v10, 0.0  ;;  %v2361_v26 = vadd.f32 %v6929_v52, %v2322_v45  ;;  %v2325_v38 = vmul.f32 %v4793_v21, %v6924_v9  ;;  %2834 = vrot.lane.b32.xlu0 %v6963_v31, %s4986_s9 }
 0x325   : > { %v2198_v63 = vpop.f32.mrf.mxu0  ;;  %v6970_v0 = vld [vmem:[#allocation3 + $0x51] sm:$0xff] }
 0x326   : > { %2482 = vst.msk [vmem:[#allocation3 + $0x81] sm:$0xff] %vm1745_vm2, %v2394_v57  ;;  %v2393_v47 = vmax.f32 %v2361_v26, 0.0  ;;  %v2364_v1 = vadd.f32 %v6929_v52, %v2325_v38  ;;  %v2324_v53 = vmul.f32 %v6924_v9, %v2198_v63  ;;  %2840 = vrot.lane.b32.xlu1 %v6970_v0, %s4986_s9 }
 0x327   : > { %v4796_v50 = vpop.f32.mrf.mxu0  ;;  %v6977_v46 = vld [vmem:[#allocation3 + $0x49] sm:$0xff] }
 0x328   : > { %2481 = vst.msk [vmem:[#allocation3 + $0x79] sm:$0xff] %vm1745_vm2, %v2393_v47  ;;  %v2396_v62 = vmax.f32 %v2364_v1, 0.0  ;;  %v2363_v8 = vadd.f32 %v6929_v52, %v2324_v53  ;;  %v2327_v36 = vmul.f32 %v4796_v50, %v6924_v9  ;;  %2838 = vrot.lane.b32.xlu0 %v6977_v46, %s4986_s9 }
 0x329   : > { %v2208_v32 = vpop.f32.mrf.mxu0  ;;  %v6984_v17 = vld [vmem:[#allocation3 + $0x69] sm:$0xff] }
 0x32a   : > { %2484 = vst.msk [vmem:[#allocation3 + $0x99] sm:$0xff] %vm1745_vm2, %v2396_v62  ;;  %v2395_v41 = vmax.f32 %v2363_v8, 0.0  ;;  %v2366_v40 = vadd.f32 %v6929_v52, %v2327_v36  ;;  %v2326_v55 = vmul.f32 %v6924_v9, %v2208_v32  ;;  %2844 = vrot.lane.b32.xlu1 %v6984_v17, %s4986_s9 }
 0x32b   : > { %v4799_v25 = vpop.f32.mrf.mxu0  ;;  %v6991_v56 = vld [vmem:[#allocation3 + $0x61] sm:$0xff] }
 0x32c   : > { %2483 = vst.msk [vmem:[#allocation3 + $0x91] sm:$0xff] %vm1745_vm2, %v2395_v41  ;;  %v2398_v7 = vmax.f32 %v2366_v40, 0.0  ;;  %v2365_v37 = vadd.f32 %v6929_v52, %v2326_v55  ;;  %v2329_v19 = vmul.f32 %v4799_v25, %v6924_v9  ;;  %2842 = vrot.lane.b32.xlu0 %v6991_v56, %s4986_s9 }
 0x32d   : > { %v2218_v2 = vpop.f32.mrf.mxu0  ;;  %v6998_v58 = vld [vmem:[#allocation3 + $0x81] sm:$0xff] }
 0x32e   : > { %2486 = vst.msk [vmem:[#allocation3 + $0xb1] sm:$0xff] %vm1745_vm2, %v2398_v7  ;;  %v2397_v6 = vmax.f32 %v2365_v37, 0.0  ;;  %v2368_v48 = vadd.f32 %v6929_v52, %v2329_v19  ;;  %v2328_v42 = vmul.f32 %v6924_v9, %v2218_v2  ;;  %2848 = vrot.lane.b32.xlu1 %v6998_v58, %s4986_s9 }
 0x32f   : > { %v4802_v51 = vpop.f32.mrf.mxu0  ;;  %v7005_v35 = vld [vmem:[#allocation3 + $0x79] sm:$0xff] }
 0x330   : > { %2485 = vst.msk [vmem:[#allocation3 + $0xa9] sm:$0xff] %vm1745_vm2, %v2397_v6  ;;  %v2400_v20 = vmax.f32 %v2368_v48, 0.0  ;;  %v2367_v5 = vadd.f32 %v6929_v52, %v2328_v42  ;;  %v2331_v27 = vmul.f32 %v4802_v51, %v6924_v9  ;;  %2846 = vrot.lane.b32.xlu0 %v7005_v35, %s4986_s9 }
 0x331   : > { %v2228_v54 = vpop.f32.mrf.mxu0  ;;  %v7012_v33 = vld [vmem:[#allocation3 + $0x99] sm:$0xff] }
 0x332   : > { %2488 = vst.msk [vmem:[#allocation3 + $0xc9] sm:$0xff] %vm1745_vm2, %v2400_v20  ;;  %v2399_v43 = vmax.f32 %v2367_v5, 0.0  ;;  %v2370_v16 = vadd.f32 %v6929_v52, %v2331_v27  ;;  %v2330_v13 = vmul.f32 %v6924_v9, %v2228_v54  ;;  %2852 = vrot.lane.b32.xlu1 %v7012_v33, %s4986_s9 }
 0x333   : > { %v4805_v18 = vpop.f32.mrf.mxu0  ;;  %v7019_v23 = vld [vmem:[#allocation3 + $0x91] sm:$0xff] }
 0x334   : > { %2487 = vst.msk [vmem:[#allocation3 + $0xc1] sm:$0xff] %vm1745_vm2, %v2399_v43  ;;  %v2402_v28 = vmax.f32 %v2370_v16, 0.0  ;;  %v2369_v61 = vadd.f32 %v6929_v52, %v2330_v13  ;;  %v2333_v44 = vmul.f32 %v4805_v18, %v6924_v9  ;;  %2850 = vrot.lane.b32.xlu0 %v7019_v23, %s4986_s9 }
 0x335   : > { %v2238_v14 = vpop.f32.mrf.mxu0  ;;  %v2552_v22 = vld [vmem:[#allocation3 + $0xb1] sm:$0xff] }
 0x336   : > { %2490 = vst.msk [vmem:[#allocation3 + $0xe1] sm:$0xff] %vm1745_vm2, %v2402_v28  ;;  %v2401_v59 = vmax.f32 %v2369_v61, 0.0  ;;  %v2372_v11 = vadd.f32 %v6929_v52, %v2333_v44  ;;  %v2332_v49 = vmul.f32 %v6924_v9, %v2238_v14  ;;  %2856 = vrot.lane.b32.xlu1 %v2552_v22, %s4986_s9 }
 0x337   : > { %v4808_v60 = vpop.f32.mrf.mxu0  ;;  %v2551_v15 = vld [vmem:[#allocation3 + $0xa9] sm:$0xff] }
 0x338   : > { %2489 = vst.msk [vmem:[#allocation3 + $0xd9] sm:$0xff] %vm1745_vm2, %v2401_v59  ;;  %v2404_v30 = vmax.f32 %v2372_v11, 0.0  ;;  %v2371_v3 = vadd.f32 %v6929_v52, %v2332_v49  ;;  %v2335_v24 = vmul.f32 %v4808_v60, %v6924_v9  ;;  %2854 = vrot.lane.b32.xlu0 %v2551_v15, %s4986_s9 }
 0x339   : > { %v2248_v34 = vpop.f32.mrf.mxu0  ;;  %v2554_v12 = vld [vmem:[#allocation3 + $0xc9] sm:$0xff] }
 0x33a   : > { %2492 = vst.msk [vmem:[#allocation3 + $0xf9] sm:$0xff] %vm1745_vm2, %v2404_v30  ;;  %v2403_v39 = vmax.f32 %v2371_v3, 0.0  ;;  %v2374_v4 = vadd.f32 %v6929_v52, %v2335_v24  ;;  %v2334_v10 = vmul.f32 %v6924_v9, %v2248_v34  ;;  %2860 = vrot.lane.b32.xlu1 %v2554_v12, %s4986_s9 }
 0x33b   : > { %v2553_v45 = vld [vmem:[#allocation3 + $0xc1] sm:$0xff] }
 0x33c   : > { %2491 = vst.msk [vmem:[#allocation3 + $0xf1] sm:$0xff] %vm1745_vm2, %v2403_v39  ;;  %v2406_v21 = vmax.f32 %v2374_v4, 0.0  ;;  %v2373_v57 = vadd.f32 %v6929_v52, %v2334_v10  ;;  %2858 = vrot.lane.b32.xlu0 %v2553_v45, %s4986_s9 }
 0x33d   : > { %v2556_v26 = vld [vmem:[#allocation3 + $0xe1] sm:$0xff] }
 0x33e   : > { %2494 = vst.msk [vmem:[#allocation3 + $0x111] sm:$0xff] %vm1745_vm2, %v2406_v21  ;;  %v2405_v38 = vmax.f32 %v2373_v57, 0.0  ;;  %2864 = vrot.lane.b32.xlu1 %v2556_v26, %s4986_s9 }
 0x33f   : > { %v4811_v63 = vpop.f32.mrf.mxu0  ;;  %v2555_v47 = vld [vmem:[#allocation3 + $0xd9] sm:$0xff] }
 0x340   : > { %2493 = vst.msk [vmem:[#allocation3 + $0x109] sm:$0xff] %vm1745_vm2, %v2405_v38  ;;  %v2337_v1 = vmul.f32 %v4811_v63, %v6924_v9  ;;  %2862 = vrot.lane.b32.xlu0 %v2555_v47, %s4986_s9  ;;  %v2570_v47 = vld [vmem:[#allocation3 + $0xa] sm:$0xff] }
 0x341   : > { %v2258_v53 = vpop.f32.mrf.mxu0  ;;  %v2558_v50 = vld [vmem:[#allocation3 + $0xf9] sm:$0xff] }
 0x342   : > { %v2376_v62 = vadd.f32 %v6929_v52, %v2337_v1  ;;  %v2336_v8 = vmul.f32 %v6924_v9, %v2258_v53  ;;  %2868 = vrot.lane.b32.xlu1 %v2558_v50, %s4986_s9  ;;  %v2569_v1 = vld [vmem:[#allocation3 + $0x2] sm:$0xff]  ;;  %v7091_v53 = vld [vmem:[#allocation3 + $0x3a] sm:$0xff]  ;;  %v7095_v50 = vld [vmem:[#allocation3 + $0x32] sm:$0xff] }
 0x343   : > { %v2557_v36 = vld [vmem:[#allocation3 + $0xf1] sm:$0xff] }
 0x344   : > { %v2408_v32 = vmax.f32 %v2376_v62, 0.0  ;;  %v2375_v41 = vadd.f32 %v6929_v52, %v2336_v8  ;;  %2866 = vrot.lane.b32.xlu0 %v2557_v36, %s4986_s9  ;;  %v7099_v62 = vld [vmem:[#allocation3 + $0x52] sm:$0xff]  ;;  %v7103_v8 = vld [vmem:[#allocation3 + $0x4a] sm:$0xff] }
 0x345   : > { %v2560_v40 = vld [vmem:[#allocation3 + $0x111] sm:$0xff] }
 0x346   : > { %2496 = vst.msk [vmem:[#allocation3 + $0x129] sm:$0xff] %vm1745_vm2, %v2408_v32  ;;  %v2407_v55 = vmax.f32 %v2375_v41, 0.0  ;;  %2872 = vrot.lane.b32.xlu1 %v2560_v40, %s4986_s9  ;;  %v7107_v36 = vld [vmem:[#allocation3 + $0x6a] sm:$0xff]  ;;  %v7111_v32 = vld [vmem:[#allocation3 + $0x62] sm:$0xff]  ;;  %v7119_v40 = vld [vmem:[#allocation3 + $0x7a] sm:$0xff] }
 0x347   : > { %v4814_v25 = vpop.f32.mrf.mxu0  ;;  %v2559_v7 = vld [vmem:[#allocation3 + $0x109] sm:$0xff] }
 0x348   : > { %2495 = vst.msk [vmem:[#allocation3 + $0x121] sm:$0xff] %vm1745_vm2, %v2407_v55  ;;  %v2339_v37 = vmul.f32 %v4814_v25, %v6924_v9  ;;  %2870 = vrot.lane.b32.xlu0 %v2559_v7, %s4986_s9  ;;  %v7115_v41 = vld [vmem:[#allocation3 + $0x82] sm:$0xff]  ;;  %v7123_v55 = vld [vmem:[#allocation3 + $0x9a] sm:$0xff]  ;;  %v7127_v25 = vld [vmem:[#allocation3 + $0x92] sm:$0xff] }
 0x349   : > { %v2268_v19 = vpop.f32.mrf.mxu0  ;;  %v7131_v7 = vld [vmem:[#allocation3 + $0xb2] sm:$0xff] }
 0x34a   : > { %v2378_v2 = vadd.f32 %v6929_v52, %v2339_v37  ;;  %v2338_v6 = vmul.f32 %v6924_v9, %v2268_v19  ;;  %v7135_v37 = vld [vmem:[#allocation3 + $0xaa] sm:$0xff] }
 0x34b   : > { %v7139_v19 = vld [vmem:[#allocation3 + $0xca] sm:$0xff] }
 0x34c   : > { %v2410_v48 = vmax.f32 %v2378_v2, 0.0  ;;  %v2377_v42 = vadd.f32 %v6929_v52, %v2338_v6  ;;  %v7143_v2 = vpop.permute.xlu1 %2828  ;;  %v7145_v6 = vld [vmem:[#allocation3 + $0xc2] sm:$0xff] }
 0x34d   : > { %v2562_v51 = vld [vmem:[#allocation3 + $0x129] sm:$0xff]  ;;  %8689 = vst [vmem:[#allocation5_spill] sm:$0xff] %v7143_v2  ;;  %v7274_v2 = vld [vmem:[#allocation3 + $0xe0] sm:$0xff] }
 0x34e   : > { %2498 = vst.msk [vmem:[#allocation3 + $0x141] sm:$0xff] %vm1745_vm2, %v2410_v48  ;;  %v2409_v20 = vmax.f32 %v2377_v42, 0.0  ;;  %2876 = vrot.lane.b32.xlu1 %v2562_v51, %s4986_s9  ;;  %v7149_v48 = vpop.permute.xlu0 %2826  ;;  %v2588_v42 = vld [vmem:[#allocation3 + $0xe2] sm:$0xff]  ;;  %v7152_v51 = vld [vmem:[#allocation3 + $0xda] sm:$0xff] }
 0x34f   : > { %v4817_v5 = vpop.f32.mrf.mxu0  ;;  %v2561_v27 = vld [vmem:[#allocation3 + $0x121] sm:$0xff]  ;;  %8690 = vst [vmem:[#allocation7_spill] sm:$0xff] %v7149_v48 }
 0x350   : > { %2497 = vst.msk [vmem:[#allocation3 + $0x139] sm:$0xff] %vm1745_vm2, %v2409_v20  ;;  %v2341_v54 = vmul.f32 %v4817_v5, %v6924_v9  ;;  %2874 = vrot.lane.b32.xlu0 %v2561_v27, %s4986_s9  ;;  %v2590_v5 = vld [vmem:[#allocation3 + $0xfa] sm:$0xff] }
 0x351   : > { %v2278_v43 = vpop.f32.mrf.mxu0 }
 0x352   : > { %v2380_v16 = vadd.f32 %v6929_v52, %v2341_v54  ;;  %v2340_v13 = vmul.f32 %v6924_v9, %v2278_v43  ;;  %v2589_v54 = vld [vmem:[#allocation3 + $0xf2] sm:$0xff] }
 0x354   : > { %v2412_v18 = vmax.f32 %v2380_v16, 0.0  ;;  %v2379_v28 = vadd.f32 %v6929_v52, %v2340_v13  ;;  %v2592_v16 = vld [vmem:[#allocation3 + $0x112] sm:$0xff] }
 0x355   : > { %v2564_v61 = vld [vmem:[#allocation3 + $0x141] sm:$0xff] }
 0x356   : > { %2500 = vst.msk [vmem:[#allocation3 + $0x159] sm:$0xff] %vm1745_vm2, %v2412_v18  ;;  %v2411_v44 = vmax.f32 %v2379_v28, 0.0  ;;  %2880 = vrot.lane.b32.xlu1 %v2564_v61, %s4986_s9  ;;  %v2591_v18 = vld [vmem:[#allocation3 + $0x10a] sm:$0xff] }
 0x357   : > { %v4820_v14 = vpop.f32.mrf.mxu0  ;;  %v2563_v22 = vld [vmem:[#allocation3 + $0x139] sm:$0xff]  ;;  %v2594_v61 = vld [vmem:[#allocation3 + $0x12a] sm:$0xff] }
 0x358   : > { %2499 = vst.msk [vmem:[#allocation3 + $0x151] sm:$0xff] %vm1745_vm2, %v2411_v44  ;;  %v2343_v59 = vmul.f32 %v4820_v14, %v6924_v9  ;;  %2878 = vrot.lane.b32.xlu0 %v2563_v22, %s4986_s9  ;;  %v2593_v14 = vld [vmem:[#allocation3 + $0x122] sm:$0xff] }
 0x359   : > { %v2288_v11 = vpop.f32.mrf.mxu0  ;;  %v2596_v22 = vld [vmem:[#allocation3 + $0x142] sm:$0xff] }
 0x35a   : > { %v2382_v49 = vadd.f32 %v6929_v52, %v2343_v59  ;;  %v2342_v60 = vmul.f32 %v6924_v9, %v2288_v11  ;;  %v2595_v11 = vld [vmem:[#allocation3 + $0x13a] sm:$0xff] }
 0x35c   : > { %v2414_v15 = vmax.f32 %v2382_v49, 0.0  ;;  %v2381_v30 = vadd.f32 %v6929_v52, %v2342_v60 }
 0x35d   : > { %v2566_v3 = vld [vmem:[#allocation3 + $0x159] sm:$0xff] }
 0x35e   : > { %2502 = vst.msk [vmem:[#allocation3 + $0x171] sm:$0xff] %vm1745_vm2, %v2414_v15  ;;  %v2413_v24 = vmax.f32 %v2381_v30, 0.0  ;;  %2884 = vrot.lane.b32.xlu1 %v2566_v3, %s4986_s9  ;;  %v2598_v60 = vld [vmem:[#allocation3 + $0x15a] sm:$0xff] }
 0x35f   : > { %v4823_v34 = vpop.f32.mrf.mxu0  ;;  %v2565_v12 = vld [vmem:[#allocation3 + $0x151] sm:$0xff] }
 0x360   : > { %2501 = vst.msk [vmem:[#allocation3 + $0x169] sm:$0xff] %vm1745_vm2, %v2413_v24  ;;  %v2345_v39 = vmul.f32 %v4823_v34, %v6924_v9  ;;  %2882 = vrot.lane.b32.xlu0 %v2565_v12, %s4986_s9  ;;  %v2597_v15 = vld [vmem:[#allocation3 + $0x152] sm:$0xff]  ;;  %v7188_v12 = vld [vmem:[#allocation3 + $0x20] sm:$0xff] }
 0x361   : > { %v2298_v4 = vpop.f32.mrf.mxu0 }
 0x362   : > { %v2384_v10 = vadd.f32 %v6929_v52, %v2345_v39  ;;  %v2344_v45 = vmul.f32 %v6924_v9, %v2298_v4  ;;  %v2572_v9 = vld [vmem:[#allocation3 + $0x22] sm:$0xff]  ;;  %v7194_v4 = vld [vmem:[#allocation3 + $0x18] sm:$0xff] }
 0x364   : > { %v2416_v21 = vmax.f32 %v2384_v10, 0.0  ;;  %v2383_v57 = vadd.f32 %v6929_v52, %v2344_v45  ;;  %v2571_v52 = vld [vmem:[#allocation3 + $0x1a] sm:$0xff] }
 0x365   : > { %v2568_v26 = vld [vmem:[#allocation3 + $0x171] sm:$0xff] }
 0x366   : > { %2504 = vst.msk [vmem:[#allocation3 + $0x189] sm:$0xff] %vm1745_vm2, %v2416_v21  ;;  %v2415_v38 = vmax.f32 %v2383_v57, 0.0  ;;  %2888 = vrot.lane.b32.xlu1 %v2568_v26, %s4986_s9  ;;  %v2600_v3 = vld [vmem:[#allocation3 + $0x172] sm:$0xff] }
 0x367   : > { %v2567_v63 = vld [vmem:[#allocation3 + $0x169] sm:$0xff]  ;;  %v7200_v45 = vld [vmem:[#allocation3 + $0x38] sm:$0xff] }
 0x368   : > { %2503 = vst.msk [vmem:[#allocation3 + $0x181] sm:$0xff] %vm1745_vm2, %v2415_v38  ;;  %2886 = vrot.lane.b32.xlu0 %v2567_v63, %s4986_s9  ;;  %v2599_v34 = vld [vmem:[#allocation3 + $0x16a] sm:$0xff] }
 0x369   : > { %v7204_v21 = vld [vmem:[#allocation3 + $0x30] sm:$0xff]  ;;  %v7216_v63 = vld [vmem:[#allocation3 + $0x48] sm:$0xff] }
 0x36a   : > { %2956 = vrot.lane.b32.xlu1 %v2570_v47, %s4988_s11  ;;  %v7210_v26 = vld [vmem:[#allocation3 + $0x50] sm:$0xff]  ;;  %v7220_v47 = vld [vmem:[#allocation3 + $0x68] sm:$0xff] }
 0x36c   : > { %2954 = vrot.lane.b32.xlu0 %v2569_v1, %s4988_s11 }
 0x36e   : > { %2960 = vrot.lane.b32.xlu1 %v2572_v9, %s4988_s11  ;;  %v7226_v9 = vld [vmem:[#allocation3 + $0x60] sm:$0xff] }
 0x370   : > { %2958 = vrot.lane.b32.xlu0 %v2571_v52, %s4988_s11 }
 0x372   : > { %2964 = vrot.lane.b32.xlu1 %v7091_v53, %s4988_s11 }
 0x374   : > { %2962 = vrot.lane.b32.xlu0 %v7095_v50, %s4988_s11 }
 0x376   : > { %2968 = vrot.lane.b32.xlu1 %v7099_v62, %s4988_s11 }
 0x378   : > { %2966 = vrot.lane.b32.xlu0 %v7103_v8, %s4988_s11 }
 0x37a   : > { %2972 = vrot.lane.b32.xlu1 %v7107_v36, %s4988_s11 }
 0x37c   : > { %2970 = vrot.lane.b32.xlu0 %v7111_v32, %s4988_s11 }
 0x37e   : > { %2976 = vrot.lane.b32.xlu1 %v7115_v41, %s4988_s11 }
 0x380   : > { %2974 = vrot.lane.b32.xlu0 %v7119_v40, %s4988_s11 }
 0x382   : > { %2980 = vrot.lane.b32.xlu1 %v7123_v55, %s4988_s11 }
 0x384   : > { %2978 = vrot.lane.b32.xlu0 %v7127_v25, %s4988_s11 }
 0x386   : > { %2984 = vrot.lane.b32.xlu1 %v7131_v7, %s4988_s11 }
 0x388   : > { %2982 = vrot.lane.b32.xlu0 %v7135_v37, %s4988_s11 }
 0x38a   : > { %2988 = vrot.lane.b32.xlu1 %v7139_v19, %s4988_s11 }
 0x38c   : > { %2986 = vrot.lane.b32.xlu0 %v7145_v6, %s4988_s11 }
 0x38e   : > { %2992 = vrot.lane.b32.xlu1 %v2588_v42, %s4988_s11  ;;  %v7232_v42 = vld [vmem:[#allocation3 + $0x80] sm:$0xff] }
 0x390   : > { %v7154_v20 = vpop.permute.xlu1 %2832  ;;  %2990 = vrot.lane.b32.xlu0 %v7152_v51, %s4988_s11 }
 0x392   : > { %v7158_v27 = vpop.permute.xlu0 %2830  ;;  %2996 = vrot.lane.b32.xlu1 %v2590_v5, %s4988_s11  ;;  %v7236_v5 = vld [vmem:[#allocation3 + $0x78] sm:$0xff] }
 0x394   : > { %v7161_v43 = vpop.permute.xlu1 %2836  ;;  %2994 = vrot.lane.b32.xlu0 %v2589_v54, %s4988_s11 }
 0x396   : > { %v7164_v13 = vpop.permute.xlu0 %2834  ;;  %3000 = vrot.lane.b32.xlu1 %v2592_v16, %s4988_s11  ;;  %v7242_v16 = vld [vmem:[#allocation3 + $0x98] sm:$0xff] }
 0x398   : > { %v7167_v28 = vpop.permute.xlu1 %2840  ;;  %2998 = vrot.lane.b32.xlu0 %v2591_v18, %s4988_s11 }
 0x39a   : > { %v7170_v44 = vpop.permute.xlu0 %2838  ;;  %3004 = vrot.lane.b32.xlu1 %v2594_v61, %s4988_s11  ;;  %v7248_v61 = vld [vmem:[#allocation3 + $0x90] sm:$0xff] }
 0x39c   : > { %3002 = vrot.lane.b32.xlu0 %v2593_v14, %s4988_s11  ;;  %v7174_v59 = vpop.permute.xlu1 %2844  ;;  %v7252_v14 = vld [vmem:[#allocation3 + $0xb0] sm:$0xff] }
 0x39d   : > { %8691 = vst [vmem:[#allocation67_spill] sm:$0xff] %v7174_v59  ;;  %v2533_v59 = vld [vmem:[#allocation3 + $0x150] sm:$0xff] }
 0x39e   : > { %3008 = vrot.lane.b32.xlu1 %v2596_v22, %s4988_s11  ;;  %v7177_v49 = vpop.permute.xlu0 %2842 }
 0x39f   : > { %8692 = vst [vmem:[#allocation66_spill] sm:$0xff] %v7177_v49  ;;  %v4083_v49 = vld [vmem:[%s8267_s4 + $0x28] sm:$0xff] }
 0x3a0   : > { %3006 = vrot.lane.b32.xlu0 %v2595_v11, %s4988_s11  ;;  %v7181_v30 = vpop.permute.xlu1 %2848  ;;  %v7258_v11 = vld [vmem:[#allocation3 + $0xa8] sm:$0xff] }
 0x3a1   : > { %8693 = vst [vmem:[#allocation11_spill] sm:$0xff] %v7181_v30 }
 0x3a2   : > { %3012 = vrot.lane.b32.xlu1 %v2598_v60, %s4988_s11  ;;  %v7184_v24 = vpop.permute.xlu0 %2846 }
 0x3a3   : > { %8694 = vst [vmem:[#allocation9_spill] sm:$0xff] %v7184_v24 }
 0x3a4   : > { %3010 = vrot.lane.b32.xlu0 %v2597_v15, %s4988_s11  ;;  %v7190_v39 = vpop.permute.xlu1 %2852  ;;  %v7264_v15 = vld [vmem:[#allocation3 + $0xc8] sm:$0xff] }
 0x3a5   : > { %8695 = vst [vmem:[#allocation70_spill] sm:$0xff] %v7190_v39  ;;  %v2532_v39 = vld [vmem:[#allocation3 + $0x140] sm:$0xff] }
 0x3a6   : > { %3016 = vrot.lane.b32.xlu1 %v2600_v3, %s4988_s11  ;;  %v7196_v10 = vpop.permute.xlu0 %2850  ;;  %v7268_v3 = vld [vmem:[#allocation3 + $0xc0] sm:$0xff] }
 0x3a7   : > { %8696 = vst [vmem:[#allocation69_spill] sm:$0xff] %v7196_v10  ;;  %v2531_v10 = vld [vmem:[#allocation3 + $0x138] sm:$0xff] }
 0x3a8   : > { %3014 = vrot.lane.b32.xlu0 %v2599_v34, %s4988_s11  ;;  %v7206_v57 = vpop.permute.xlu1 %2856  ;;  %s4995_s11 = smov 56  }
 0x3a9   : > { %8697 = vst [vmem:[#allocation14_spill] sm:$0xff] %v7206_v57  ;;  %v7310_v57 = vld [vmem:[#allocation3 + $0x128] sm:$0xff] }
 0x3aa   : > { %3084 = vrot.lane.b32.xlu1 %v7188_v12, %s4990_s13  ;;  %v7212_v38 = vpop.permute.xlu0 %2854  ;;  %8712 = vst [vmem:[#allocation74_spill] sm:$0xff] %v7310_v57 }
 0x3ab   : > { %8698 = vst [vmem:[#allocation12_spill] sm:$0xff] %v7212_v38  ;;  %v7316_v38 = vld [vmem:[#allocation3 + $0x120] sm:$0xff] }
 0x3ac   : > { %3082 = vrot.lane.b32.xlu0 %v7194_v4, %s4990_s13  ;;  %v7222_v1 = vpop.permute.xlu1 %2860  ;;  %8714 = vst [vmem:[#allocation130_spill] sm:$0xff] %v7316_v38 }
 0x3ad   : > { %8699 = vst [vmem:[#allocation72_spill] sm:$0xff] %v7222_v1  ;;  %v7298_v1 = vld [vmem:[#allocation3 + $0x110] sm:$0xff] }
 0x3ae   : > { %3088 = vrot.lane.b32.xlu1 %v7200_v45, %s4990_s13  ;;  %v7228_v52 = vpop.permute.xlu0 %2858 }
 0x3af   : > { %8700 = vst [vmem:[#allocation71_spill] sm:$0xff] %v7228_v52  ;;  %v7304_v52 = vld [vmem:[#allocation3 + $0x108] sm:$0xff] }
 0x3b0   : > { %3086 = vrot.lane.b32.xlu0 %v7204_v21, %s4990_s13  ;;  %v7238_v54 = vpop.permute.xlu1 %2864 }
 0x3b1   : > { %8701 = vst [vmem:[#allocation17_spill] sm:$0xff] %v7238_v54  ;;  %v7286_v54 = vld [vmem:[#allocation3 + $0xf8] sm:$0xff] }
 0x3b2   : > { %3092 = vrot.lane.b32.xlu1 %v7210_v26, %s4990_s13  ;;  %v7244_v18 = vpop.permute.xlu0 %2862 }
 0x3b3   : > { %8702 = vst [vmem:[#allocation15_spill] sm:$0xff] %v7244_v18  ;;  %v7292_v18 = vld [vmem:[#allocation3 + $0xf0] sm:$0xff] }
 0x3b4   : > { %3090 = vrot.lane.b32.xlu0 %v7216_v63, %s4990_s13  ;;  %v7254_v22 = vpop.permute.xlu1 %2868 }
 0x3b5   : > { %8703 = vst [vmem:[#allocation73_spill] sm:$0xff] %v7254_v22  ;;  %v7280_v22 = vld [vmem:[#allocation3 + $0xd8] sm:$0xff] }
 0x3b6   : > { %3096 = vrot.lane.b32.xlu1 %v7220_v47, %s4990_s13  ;;  %v7260_v60 = vpop.permute.xlu0 %2866 }
 0x3b7   : > { %8704 = vst [vmem:[#allocation20_spill] sm:$0xff] %v7260_v60 }
 0x3b8   : > { %3094 = vrot.lane.b32.xlu0 %v7226_v9, %s4990_s13  ;;  %v7270_v34 = vpop.permute.xlu1 %2872 }
 0x3b9   : > { %8705 = vst [vmem:[#allocation18_spill] sm:$0xff] %v7270_v34 }
 0x3ba   : > { %3100 = vrot.lane.b32.xlu1 %v7232_v42, %s4990_s13  ;;  %v7276_v48 = vpop.permute.xlu0 %2870 }
 0x3bb   : > { %8706 = vst [vmem:[#allocation24_spill] sm:$0xff] %v7276_v48 }
 0x3bc   : > { %3098 = vrot.lane.b32.xlu0 %v7236_v5, %s4990_s13 }
 0x3be   : > { %3104 = vrot.lane.b32.xlu1 %v7242_v16, %s4990_s13 }
 0x3c0   : > { %3102 = vrot.lane.b32.xlu0 %v7248_v61, %s4990_s13  ;;  %v7282_v60 = vpop.permute.xlu1 %2876 }
 0x3c1   : > { %8707 = vst [vmem:[#allocation53_spill] sm:$0xff] %v7282_v60 }
 0x3c2   : > { %3108 = vrot.lane.b32.xlu1 %v7252_v14, %s4990_s13  ;;  %v7288_v34 = vpop.permute.xlu0 %2874 }
 0x3c3   : > { %8708 = vst [vmem:[#allocation22_spill] sm:$0xff] %v7288_v34 }
 0x3c4   : > { %3106 = vrot.lane.b32.xlu0 %v7258_v11, %s4990_s13 }
 0x3c6   : > { %3112 = vrot.lane.b32.xlu1 %v7264_v15, %s4990_s13 }
 0x3c8   : > { %3110 = vrot.lane.b32.xlu0 %v7268_v3, %s4990_s13  ;;  %v7294_v48 = vpop.permute.xlu1 %2880 }
 0x3c9   : > { %8709 = vst [vmem:[#allocation75_spill] sm:$0xff] %v7294_v48 }
 0x3ca   : > { %3116 = vrot.lane.b32.xlu1 %v7274_v2, %s4990_s13  ;;  %v7300_v60 = vpop.permute.xlu0 %2878 }
 0x3cb   : > { %8710 = vst [vmem:[#allocation51_spill] sm:$0xff] %v7300_v60 }
 0x3cc   : > { %3114 = vrot.lane.b32.xlu0 %v7280_v22, %s4990_s13 }
 0x3ce   : > { %3120 = vrot.lane.b32.xlu1 %v7286_v54, %s4990_s13 }
 0x3d0   : > { %3118 = vrot.lane.b32.xlu0 %v7292_v18, %s4990_s13  ;;  %v7306_v34 = vpop.permute.xlu1 %2884 }
 0x3d1   : > { %8711 = vst [vmem:[#allocation131_spill] sm:$0xff] %v7306_v34 }
 0x3d2   : > { %3124 = vrot.lane.b32.xlu1 %v7298_v1, %s4990_s13  ;;  %v7312_v48 = vpop.permute.xlu0 %2882 }
 0x3d3   : > { %8713 = vst [vmem:[#allocation96_spill] sm:$0xff] %v7312_v48  ;;  %v2534_v48 = vld [vmem:[#allocation3 + $0x158] sm:$0xff] }
 0x3d4   : > { %3122 = vrot.lane.b32.xlu0 %v7304_v52, %s4990_s13 }
 0x3d6   : > { %3128 = vrot.lane.b32.xlu1 %v7310_v57, %s4990_s13 }
 0x3d8   : > { %v7318_v60 = vpop.permute.xlu1 %2888  ;;  %3126 = vrot.lane.b32.xlu0 %v7316_v38, %s4990_s13  ;;  %v2536_v38 = vld [vmem:[#allocation3 + $0x170] sm:$0xff] }
 0x3d9   : > { %8715 = vst [vmem:[#allocation154_spill] sm:$0xff] %v7318_v60 }
 0x3da   : > { %3132 = vrot.lane.b32.xlu1 %v2532_v39, %s4990_s13  ;;  %v7323_v34 = vpop.permute.xlu0 %2886 }
 0x3db   : > { %8716 = vst [vmem:[#allocation95_spill] sm:$0xff] %v7323_v34  ;;  %v2535_v34 = vld [vmem:[#allocation3 + $0x168] sm:$0xff] }
 0x3dc   : > { %v7325_v30 = vpop.permute.xlu1 %2956  ;;  %3130 = vrot.lane.b32.xlu0 %v2531_v10, %s4990_s13  ;;  %v2632_v10 = vld [vmem:[#allocation3 + $0x188] sm:$0xff] }
 0x3dd   : > { %8717 = vst [vmem:[#allocation8_spill] sm:$0xff] %v7325_v30 }
 0x3de   : > { %3136 = vrot.lane.b32.xlu1 %v2534_v48, %s4990_s13  ;;  %v7329_v24 = vpop.permute.xlu0 %2954  ;;  %v4086_v48 = vld [vmem:[%s8267_s4 + $0x40] sm:$0xff] }
 0x3df   : > { %8718 = vst [vmem:[#allocation153_spill] sm:$0xff] %v7329_v24  ;;  %4890 = vmatprep.subr.mxu1 %v4086_v48  ;;  %4824 = vmatprep.subr.mxu0 %v4086_v48 }
 0x3e0   : > { %v7331_v60 = vpop.permute.xlu1 %2960  ;;  %3134 = vrot.lane.b32.xlu0 %v2533_v59, %s4990_s13  ;;  %v2631_v59 = vld [vmem:[#allocation3 + $0x180] sm:$0xff]  ;;  %4899 = vmatpush3.msra.mxu1 %v4086_v48 }
 0x3e1   : > { %4825 = vmatpush3.msra.mxu0 %v4086_v48  ;;  %v4082_v48 = vld [vmem:[%s8267_s4 + $0x20] sm:$0xff] }
 0x3e2   : > { %3140 = vrot.lane.b32.xlu1 %v2536_v38, %s4990_s13  ;;  %v7335_v39 = vpop.permute.xlu0 %2958  ;;  %v4085_v38 = vld [vmem:[%s8267_s4 + $0x38] sm:$0xff] }
 0x3e3   : > { %4891 = vmatprep.subr.mxu1 %v4085_v38  ;;  %4826 = vmatprep.subr.mxu0 %v4085_v38 }
 0x3e4   : > { %v7337_v57 = vpop.permute.xlu1 %2964  ;;  %3138 = vrot.lane.b32.xlu0 %v2535_v34, %s4990_s13  ;;  %4900 = vmatpush3.msra.mxu1 %v4085_v38  ;;  %v4084_v34 = vld [vmem:[%s8267_s4 + $0x30] sm:$0xff] }
 0x3e5   : > { %4892 = vmatprep.subr.mxu1 %v4084_v34  ;;  %4827 = vmatpush3.msra.mxu0 %v4085_v38  ;;  %v4080_v38 = vld [vmem:[%s8267_s4 + $0x10] sm:$0xff] }
 0x3e6   : > { %v7343_v30 = vpop.permute.xlu0 %2962  ;;  %3144 = vrot.lane.b32.xlu1 %v2632_v10, %s4990_s13  ;;  %4901 = vmatpush3.msra.mxu1 %v4084_v34 }
 0x3e7   : > { %4893 = vmatprep.subr.mxu1 %v4083_v49  ;;  %4828 = vmatprep.subr.mxu0 %v4084_v34 }
 0x3e8   : > { %v7349_v24 = vpop.permute.xlu1 %2968  ;;  %3142 = vrot.lane.b32.xlu0 %v2631_v59, %s4990_s13  ;;  %4902 = vmatpush3.msra.mxu1 %v4083_v49  ;;  %s8003_s13 = scalar_lea.vmem %s8270_s7, %s4686_s27 }
 0x3e9   : > { %4894 = vmatprep.subr.mxu1 %v4082_v48  ;;  %4829 = vmatpush3.msra.mxu0 %v4084_v34  ;;  %v4078_v34 = vld [vmem:[%s8267_s4] sm:$0xff] }
 0x3ea   : > { %v7355_v10 = vpop.permute.xlu0 %2966  ;;  %3216 = vrot.lane.b32.xlu1 %v6956_v29, %s4992_s28  ;;  %4903 = vmatpush3.msra.mxu1 %v4082_v48 }
 0x3eb   : > { %4830 = vmatprep.subr.mxu0 %v4083_v49 }
 0x3ec   : > { %v7362_v59 = vpop.permute.xlu1 %2972  ;;  %3214 = vrot.lane.b32.xlu0 %v6963_v31, %s4992_s28  ;;  %4831 = vmatpush3.msra.mxu0 %v4083_v49 }
 0x3ed   : > { %8719 = vst [vmem:[#allocation28_spill] sm:$0xff] %v7362_v59  ;;  %v4081_v59 = vld [vmem:[%s8267_s4 + $0x18] sm:$0xff]  ;;  %4832 = vmatprep.subr.mxu0 %v4082_v48 }
 0x3ee   : > { %v7369_v29 = vpop.permute.xlu0 %2970  ;;  %3344 = vrot.lane.b32.xlu1 %v7091_v53, %s4993_s20  ;;  %4895 = vmatprep.subr.mxu1 %v4081_v59 }
 0x3ef   : > { %8720 = vst [vmem:[#allocation6_spill] sm:$0xff] %v7369_v29  ;;  %4904 = vmatpush3.msra.mxu1 %v4081_v59  ;;  %4833 = vmatpush3.msra.mxu0 %v4082_v48 }
 0x3f0   : > { %v7376_v31 = vpop.permute.xlu1 %2976  ;;  %3342 = vrot.lane.b32.xlu0 %v7095_v50, %s4993_s20  ;;  %4896 = vmatprep.subr.mxu1 %v4080_v38 }
 0x3f1   : > { %8721 = vst [vmem:[#allocation57_spill] sm:$0xff] %v7376_v31  ;;  %4905 = vmatpush3.msra.mxu1 %v4080_v38  ;;  %v4079_v31 = vld [vmem:[%s8267_s4 + $0x8] sm:$0xff]  ;;  %4834 = vmatprep.subr.mxu0 %v4081_v59 }
 0x3f2   : > { %v7383_v53 = vpop.permute.xlu0 %2974  ;;  %3472 = vrot.lane.b32.xlu1 %v7210_v26, %s4994_s29  ;;  %4897 = vmatprep.subr.mxu1 %v4079_v31 }
 0x3f3   : > { %8722 = vst [vmem:[#allocation26_spill] sm:$0xff] %v7383_v53  ;;  %4906 = vmatpush3.msra.mxu1 %v4079_v31  ;;  %4835 = vmatpush3.msra.mxu0 %v4081_v59 }
 0x3f4   : > { %v7390_v50 = vpop.permute.xlu1 %2980  ;;  %3470 = vrot.lane.b32.xlu0 %v7216_v63, %s4994_s29  ;;  %4898 = vmatprep.subr.mxu1 %v4078_v34 }
 0x3f5   : > { %8723 = vst [vmem:[#allocation77_spill] sm:$0xff] %v7390_v50  ;;  %4907 = vmatpush3.msra.mxu1 %v4078_v34  ;;  %4836 = vmatprep.subr.mxu0 %v4080_v38 }
 0x3f6   : > { %v7397_v53 = vpop.permute.xlu0 %2978  ;;  %3218 = vrot.lane.b32.xlu1 %v6977_v46, %s4992_s28  ;;  %4837 = vmatpush3.msra.mxu0 %v4080_v38 }
 0x3f7   : > { %4838 = vmatprep.subr.mxu0 %v4079_v31 }
 0x3f8   : > { %v7401_v29 = vpop.permute.xlu1 %2984  ;;  %3598 = vrot.lane.b32.xlu0 %v6977_v46, %s4995_s11  ;;  %4839 = vmatpush3.msra.mxu0 %v4079_v31 }
 0x3f9   : > { %8724 = vst [vmem:[#allocation55_spill] sm:$0xff] %v7401_v29  ;;  %4840 = vmatprep.subr.mxu0 %v4078_v34 }
 0x3fa   : > { %v7405_v50 = vpop.permute.xlu0 %2982  ;;  %3726 = vrot.lane.b32.xlu1 %v7103_v8, %s4996_s12  ;;  %4841 = vmatpush3.msra.mxu0 %v4078_v34 }
 0x3fc   : > { %v7409_v49 = vpop.permute.xlu1 %2988  ;;  %3600 = vrot.lane.b32.xlu0 %v6970_v0, %s4995_s11 }
 0x3fd   : > { %8725 = vst [vmem:[#allocation133_spill] sm:$0xff] %v7409_v49 }
 0x3fe   : > { %v7413_v29 = vpop.permute.xlu0 %2986  ;;  %3346 = vrot.lane.b32.xlu1 %v7103_v8, %s4993_s20 }
 0x400   : > { %v7417_v46 = vpop.permute.xlu1 %2992  ;;  %3220 = vrot.lane.b32.xlu0 %v6970_v0, %s4992_s28 }
 0x401   : > { %8726 = vst [vmem:[#allocation76_spill] sm:$0xff] %v7417_v46 }
 0x402   : > { %v7421_v59 = vpop.permute.xlu0 %2990  ;;  %3348 = vrot.lane.b32.xlu1 %v7099_v62, %s4993_s20 }
 0x403   : > { %8727 = vst [vmem:[#allocation98_spill] sm:$0xff] %v7421_v59 }
 0x404   : > { %v7425_v48 = vpop.permute.xlu1 %2996  ;;  %3728 = vrot.lane.b32.xlu0 %v7099_v62, %s4996_s12 }
 0x405   : > { %8728 = vst [vmem:[#allocation132_spill] sm:$0xff] %v7425_v48 }
 0x406   : > { %v7429_v38 = vpop.permute.xlu0 %2994  ;;  %3476 = vrot.lane.b32.xlu1 %v7220_v47, %s4994_s29 }
 0x407   : > { %8729 = vst [vmem:[#allocation156_spill] sm:$0xff] %v7429_v38  ;;  %v2644_v38 = vld [vmem:[#allocation3 + $0x99] sm:$0xff] }
 0x408   : > { %v7433_v8 = vpop.permute.xlu1 %3000  ;;  %3474 = vrot.lane.b32.xlu0 %v7226_v9, %s4994_s29 }
 0x409   : > { %8730 = vst [vmem:[#allocation97_spill] sm:$0xff] %v7433_v8 }
 0x40a   : > { %v7437_v0 = vpop.permute.xlu0 %2998  ;;  %3222 = vrot.lane.b32.xlu1 %v6991_v56, %s4992_s28 }
 0x40b   : > { %8731 = vst [vmem:[#allocation13_spill] sm:$0xff] %v7437_v0 }
 0x40c   : > { %v7441_v31 = vpop.permute.xlu1 %3004  ;;  %3602 = vrot.lane.b32.xlu0 %v6991_v56, %s4995_s11 }
 0x40d   : > { %8732 = vst [vmem:[#allocation155_spill] sm:$0xff] %v7441_v31 }
 0x40e   : > { %v7445_v62 = vpop.permute.xlu0 %3002  ;;  %3730 = vrot.lane.b32.xlu1 %v7111_v32, %s4996_s12 }
 0x40f   : > { %8733 = vst [vmem:[#allocation32_spill] sm:$0xff] %v7445_v62 }
 0x410   : > { %v7449_v34 = vpop.permute.xlu1 %3008  ;;  %3604 = vrot.lane.b32.xlu0 %v6984_v17, %s4995_s11 }
 0x411   : > { %8734 = vst [vmem:[#allocation10_spill] sm:$0xff] %v7449_v34 }
 0x412   : > { %v7453_v8 = vpop.permute.xlu0 %3006  ;;  %3350 = vrot.lane.b32.xlu1 %v7111_v32, %s4993_s20 }
 0x413   : > { %8735 = vst [vmem:[#allocation61_spill] sm:$0xff] %v7453_v8 }
 0x414   : > { %v7457_v0 = vpop.permute.xlu1 %3012  ;;  %3224 = vrot.lane.b32.xlu0 %v6984_v17, %s4992_s28 }
 0x415   : > { %8736 = vst [vmem:[#allocation30_spill] sm:$0xff] %v7457_v0 }
 0x416   : > { %v7461_v56 = vpop.permute.xlu0 %3010  ;;  %3352 = vrot.lane.b32.xlu1 %v7107_v36, %s4993_s20 }
 0x417   : > { %8737 = vst [vmem:[#allocation79_spill] sm:$0xff] %v7461_v56 }
 0x418   : > { %v7465_v31 = vpop.permute.xlu1 %3016  ;;  %3732 = vrot.lane.b32.xlu0 %v7107_v36, %s4996_s12 }
 0x419   : > { %8738 = vst [vmem:[#allocation59_spill] sm:$0xff] %v7465_v31 }
 0x41a   : > { %v7469_v34 = vpop.permute.xlu0 %3014  ;;  %3480 = vrot.lane.b32.xlu1 %v7232_v42, %s4994_s29 }
 0x41b   : > { %8739 = vst [vmem:[#allocation135_spill] sm:$0xff] %v7469_v34 }
 0x41c   : > { %v7473_v32 = vpop.permute.xlu1 %3084  ;;  %3478 = vrot.lane.b32.xlu0 %v7236_v5, %s4994_s29 }
 0x41d   : > { %8740 = vst [vmem:[#allocation78_spill] sm:$0xff] %v7473_v32 }
 0x41e   : > { %v7477_v17 = vpop.permute.xlu0 %3082  ;;  %3226 = vrot.lane.b32.xlu1 %v7005_v35, %s4992_s28 }
 0x41f   : > { %8741 = vst [vmem:[#allocation100_spill] sm:$0xff] %v7477_v17 }
 0x420   : > { %v7481_v0 = vpop.permute.xlu1 %3088  ;;  %3606 = vrot.lane.b32.xlu0 %v7005_v35, %s4995_s11 }
 0x422   : > { %v7485_v36 = vpop.permute.xlu0 %3086  ;;  %3734 = vrot.lane.b32.xlu1 %v7119_v40, %s4996_s12 }
 0x424   : > { %v7489_v31 = vpop.permute.xlu1 %3092  ;;  %3608 = vrot.lane.b32.xlu0 %v6998_v58, %s4995_s11 }
 0x426   : > { %v7493_v32 = vpop.permute.xlu0 %3090  ;;  %3354 = vrot.lane.b32.xlu1 %v7119_v40, %s4993_s20 }
 0x428   : > { %v7497_v17 = vpop.permute.xlu1 %3096  ;;  %3228 = vrot.lane.b32.xlu0 %v6998_v58, %s4992_s28 }
 0x42a   : > { %v7501_v35 = vpop.permute.xlu0 %3094  ;;  %3356 = vrot.lane.b32.xlu1 %v7115_v41, %s4993_s20 }
 0x42c   : > { %v7505_v34 = vpop.permute.xlu1 %3100  ;;  %3736 = vrot.lane.b32.xlu0 %v7115_v41, %s4996_s12 }
 0x42e   : > { %v7509_v56 = vpop.permute.xlu0 %3098  ;;  %3484 = vrot.lane.b32.xlu1 %v7242_v16, %s4994_s29 }
 0x430   : > { %v7513_v40 = vpop.permute.xlu1 %3104  ;;  %3482 = vrot.lane.b32.xlu0 %v7248_v61, %s4994_s29 }
 0x432   : > { %v7517_v58 = vpop.permute.xlu0 %3102  ;;  %3230 = vrot.lane.b32.xlu1 %v7019_v23, %s4992_s28 }
 0x434   : > { %v7521_v8 = vpop.permute.xlu1 %3108  ;;  %3610 = vrot.lane.b32.xlu0 %v7019_v23, %s4995_s11 }
 0x436   : > { %v7525_v41 = vpop.permute.xlu0 %3106  ;;  %3738 = vrot.lane.b32.xlu1 %v7127_v25, %s4996_s12 }
 0x438   : > { %v7529_v62 = vpop.permute.xlu1 %3112  ;;  %3612 = vrot.lane.b32.xlu0 %v7012_v33, %s4995_s11 }
 0x43a   : > { %v7533_v48 = vpop.permute.xlu0 %3110  ;;  %3358 = vrot.lane.b32.xlu1 %v7127_v25, %s4993_s20 }
 0x43c   : > { %v7537_v46 = vpop.permute.xlu1 %3116  ;;  %3232 = vrot.lane.b32.xlu0 %v2644_v38, %s4992_s28  ;;  %v2645_v38 = vld [vmem:[#allocation3 + $0xa9] sm:$0xff] }
 0x43d   : > { %8742 = vst [vmem:[#allocation134_spill] sm:$0xff] %v7537_v46 }
 0x43e   : > { %v7540_v23 = vpop.permute.xlu0 %3114  ;;  %3360 = vrot.lane.b32.xlu1 %v7123_v55, %s4993_s20 }
 0x440   : > { %v7544_v59 = vpop.permute.xlu1 %3120  ;;  %3740 = vrot.lane.b32.xlu0 %v7123_v55, %s4996_s12 }
 0x441   : > { %8743 = vst [vmem:[#allocation158_spill] sm:$0xff] %v7544_v59 }
 0x442   : > { %v7548_v33 = vpop.permute.xlu0 %3118  ;;  %3488 = vrot.lane.b32.xlu1 %v7252_v14, %s4994_s29  ;;  %v2741_v14 = vld [vmem:[#allocation3 + $0xb1] sm:$0xff] }
 0x444   : > { %v7552_v25 = vpop.permute.xlu1 %3124  ;;  %3486 = vrot.lane.b32.xlu0 %v7258_v11, %s4994_s29 }
 0x445   : > { %8744 = vst [vmem:[#allocation99_spill] sm:$0xff] %v7552_v25 }
 0x446   : > { %v7556_v46 = vpop.permute.xlu0 %3122  ;;  %3234 = vrot.lane.b32.xlu1 %v2645_v38, %s4992_s28 }
 0x447   : > { %8745 = vst [vmem:[#allocation19_spill] sm:$0xff] %v7556_v46 }
 0x448   : > { %v7559_v49 = vpop.permute.xlu1 %3128  ;;  %3614 = vrot.lane.b32.xlu0 %v2645_v38, %s4995_s11 }
 0x449   : > { %8746 = vst [vmem:[#allocation157_spill] sm:$0xff] %v7559_v49 }
 0x44a   : > { %v7562_v55 = vpop.permute.xlu0 %3126  ;;  %3742 = vrot.lane.b32.xlu1 %v7135_v37, %s4996_s12 }
 0x44b   : > { %8747 = vst [vmem:[#allocation36_spill] sm:$0xff] %v7562_v55 }
 0x44c   : > { %v7566_v59 = vpop.permute.xlu1 %3132  ;;  %3616 = vrot.lane.b32.xlu0 %v2741_v14, %s4995_s11 }
 0x44d   : > { %8748 = vst [vmem:[#allocation16_spill] sm:$0xff] %v7566_v59 }
 0x44e   : > { %v7569_v25 = vpop.permute.xlu0 %3130  ;;  %3362 = vrot.lane.b32.xlu1 %v7135_v37, %s4993_s20 }
 0x44f   : > { %8749 = vst [vmem:[#allocation65_spill] sm:$0xff] %v7569_v25 }
 0x450   : > { %v7573_v46 = vpop.permute.xlu1 %3136  ;;  %3236 = vrot.lane.b32.xlu0 %v2741_v14, %s4992_s28  ;;  %v2647_v14 = vld [vmem:[#allocation3 + $0xc1] sm:$0xff] }
 0x451   : > { %8750 = vst [vmem:[#allocation34_spill] sm:$0xff] %v7573_v46 }
 0x452   : > { %v7576_v38 = vpop.permute.xlu0 %3134  ;;  %3364 = vrot.lane.b32.xlu1 %v7131_v7, %s4993_s20 }
 0x453   : > { %8751 = vst [vmem:[#allocation81_spill] sm:$0xff] %v7576_v38 }
 0x454   : > { %v7580_v49 = vpop.permute.xlu1 %3140  ;;  %3744 = vrot.lane.b32.xlu0 %v7131_v7, %s4996_s12 }
 0x455   : > { %8752 = vst [vmem:[#allocation63_spill] sm:$0xff] %v7580_v49  ;;  %v2743_v49 = vld [vmem:[#allocation3 + $0xc9] sm:$0xff] }
 0x456   : > { %v7584_v59 = vpop.permute.xlu0 %3138  ;;  %3492 = vrot.lane.b32.xlu1 %v7264_v15, %s4994_s29 }
 0x457   : > { %8753 = vst [vmem:[#allocation137_spill] sm:$0xff] %v7584_v59 }
 0x458   : > { %v7588_v37 = vpop.permute.xlu1 %3144  ;;  %3490 = vrot.lane.b32.xlu0 %v7268_v3, %s4994_s29 }
 0x459   : > { %8754 = vst [vmem:[#allocation80_spill] sm:$0xff] %v7588_v37  ;;  %v3820_v37 = vsel %vm1745_vm2, %v7194_v4, %v7158_v27 }
 0x45a   : > { %3238 = vrot.lane.b32.xlu1 %v2647_v14, %s4992_s28  ;;  %v7593_v46 = vpop.permute.xlu0 %3142 }
 0x45b   : > { %8755 = vst [vmem:[#allocation102_spill] sm:$0xff] %v7593_v46 }
 0x45c   : > { %v3217_v38 = vpop.permute.xlu1 %3216  ;;  %3618 = vrot.lane.b32.xlu0 %v2647_v14, %s4995_s11  ;;  %v3852_v14 = vsel %vm1811_vm5, %v3820_v37, %v7335_v39 }
 0x45d   : > { %v3884_v25 = vsel %vm1877_vm7, %v3852_v14, %v7485_v36 }
 0x45e   : > { %3746 = vrot.lane.b32.xlu1 %v7145_v6, %s4996_s12  ;;  %v3215_v7 = vpop.permute.xlu0 %3214 }
 0x460   : > { %v3345_v59 = vpop.permute.xlu1 %3344  ;;  %3620 = vrot.lane.b32.xlu0 %v2743_v49, %s4995_s11 }
 0x462   : > { %3366 = vrot.lane.b32.xlu1 %v7145_v6, %s4993_s20  ;;  %v3343_v15 = vpop.permute.xlu0 %3342  ;;  %v3916_v6 = vsel %vm1943_vm9, %v3884_v25, %v3215_v7  ;;  %v2649_v25 = vld [vmem:[#allocation3 + $0xd9] sm:$0xff] }
 0x463   : > { %v3949_v27 = vsel %vm3946_vm12, %v3916_v6, %v3343_v15  ;;  %v2745_v6 = vld [vmem:[#allocation3 + $0xe1] sm:$0xff] }
 0x464   : > { %v3473_v3 = vpop.permute.xlu1 %3472  ;;  %3240 = vrot.lane.b32.xlu0 %v2743_v49, %s4992_s28 }
 0x466   : > { %3368 = vrot.lane.b32.xlu1 %v7139_v19, %s4993_s20  ;;  %v3471_v46 = vpop.permute.xlu0 %3470 }
 0x467   : > { %v3982_v4 = vsel %vm3979_vm14, %v3949_v27, %v3471_v46 }
 0x468   : > { %v3219_v55 = vpop.permute.xlu1 %3218  ;;  %3748 = vrot.lane.b32.xlu0 %v7139_v19, %s4996_s12 }
 0x46a   : > { %3496 = vrot.lane.b32.xlu1 %v7274_v2, %s4994_s29  ;;  %v3599_v39 = vpop.permute.xlu0 %3598  ;;  %v3821_v2 = vsel %vm1745_vm2, %v7188_v12, %v7154_v20 }
 0x46b   : > { %v4015_v49 = vsel %vm4012_vm13, %v3982_v4, %v3599_v39  ;;  %v3853_v7 = vsel %vm1811_vm5, %v3821_v2, %v7331_v60  ;;  %v3823_v2 = vsel %vm1745_vm2, %v7200_v45, %v7161_v43  ;;  %v2747_v45 = vld [vmem:[#allocation3 + $0xf9] sm:$0xff] }
 0x46c   : > { %v3727_v36 = vpop.permute.xlu1 %3726  ;;  %3494 = vrot.lane.b32.xlu0 %v7280_v22, %s4994_s29  ;;  %v3885_v22 = vsel %vm1877_vm7, %v3853_v7, %v7481_v0 }
 0x46d   : > { %v4048_v19 = vsel %vm4045_vm15, %v4015_v49, %v3727_v36  ;;  %v3917_v14 = vsel %vm1943_vm9, %v3885_v22, %v3217_v38  ;;  %v2682_v38 = vld [vmem:[#allocation3 + $0xe2] sm:$0xff] }
 0x46e   : > { %3242 = vrot.lane.b32.xlu1 %v2649_v25, %s4992_s28  ;;  %4845 = vmatprep.mubr.msk.f32.mxu1 %vm4087_vm0, %v4048_v19  ;;  %v3601_v46 = vpop.permute.xlu0 %3600  ;;  %v3950_v27 = vsel %vm3946_vm12, %v3917_v14, %v3345_v59  ;;  %v3822_v59 = vsel %vm1745_vm2, %v7204_v21, %v7164_v13  ;;  %v2778_v14 = vld [vmem:[#allocation3 + $0xf2] sm:$0xff] }
 0x46f   : > { %v3983_v20 = vsel %vm3979_vm14, %v3950_v27, %v3473_v3  ;;  %v3854_v3 = vsel %vm1811_vm5, %v3822_v59, %v7343_v30 }
 0x470   : > { %v3347_v37 = vpop.permute.xlu1 %3346  ;;  %3622 = vrot.lane.b32.xlu0 %v2649_v25, %s4995_s11  ;;  %v4016_v12 = vsel %vm4012_vm13, %v3983_v20, %v3601_v46 }
 0x472   : > { %3750 = vrot.lane.b32.xlu1 %v7152_v51, %s4996_s12  ;;  %v3221_v15 = vpop.permute.xlu0 %3220 }
 0x474   : > { %v3349_v4 = vpop.permute.xlu1 %3348  ;;  %3624 = vrot.lane.b32.xlu0 %v2745_v6, %s4995_s11 }
 0x476   : > { %3370 = vrot.lane.b32.xlu1 %v7152_v51, %s4993_s20  ;;  %v3729_v60 = vpop.permute.xlu0 %3728  ;;  %v3886_v51 = vsel %vm1877_vm7, %v3854_v3, %v7493_v32 }
 0x477   : > { %v4049_v0 = vsel %vm4045_vm15, %v4016_v12, %v3729_v60  ;;  %v3918_v36 = vsel %vm1943_vm9, %v3886_v51, %v3219_v55  ;;  %v2651_v55 = vld [vmem:[#allocation3 + $0xf1] sm:$0xff]  ;;  %v2684_v60 = vld [vmem:[#allocation3 + $0xfa] sm:$0xff] }
 0x478   : > { %v3477_v39 = vpop.permute.xlu1 %3476  ;;  %3244 = vrot.lane.b32.xlu0 %v2745_v6, %s4992_s28  ;;  %4846 = vmatmul.mubr.msk.f32.vlgmr.msra.gmra.mxu1 %vm4087_vm0, %v4049_v0  ;;  %v3951_v19 = vsel %vm3946_vm12, %v3918_v36, %v3347_v37  ;;  %v2653_v36 = vld [vmem:[#allocation3 + $0x109] sm:$0xff] }
 0x47a   : > { %3372 = vrot.lane.b32.xlu1 %v2682_v38, %s4993_s20  ;;  %v3475_v49 = vpop.permute.xlu0 %3474 }
 0x47b   : > { %v3984_v46 = vsel %vm3979_vm14, %v3951_v19, %v3475_v49 }
 0x47c   : > { %v3223_v25 = vpop.permute.xlu1 %3222  ;;  %3752 = vrot.lane.b32.xlu0 %v2682_v38, %s4996_s12 }
 0x47e   : > { %3500 = vrot.lane.b32.xlu1 %v7286_v54, %s4994_s29  ;;  %v3603_v13 = vpop.permute.xlu0 %3602  ;;  %v3855_v54 = vsel %vm1811_vm5, %v3823_v2, %v7337_v57 }
 0x47f   : > { %v4017_v30 = vsel %vm4012_vm13, %v3984_v46, %v3603_v13  ;;  %v3887_v7 = vsel %vm1877_vm7, %v3855_v54, %v7489_v31  ;;  %v8756_v54 = vld [vmem:[#allocation66_spill] sm:$0xff] }
 0x480   : > { %v3731_v21 = vpop.permute.xlu1 %3730  ;;  %3498 = vrot.lane.b32.xlu0 %v7292_v18, %s4994_s29  ;;  %v3919_v18 = vsel %vm1943_vm9, %v3887_v7, %v3221_v15  ;;  %v3826_v7 = vsel %vm1745_vm2, %v7226_v9, %v8756_v54  ;;  %v8758_v9 = vld [vmem:[#allocation74_spill] sm:$0xff] }
 0x481   : > { %v4050_v32 = vsel %vm4045_vm15, %v4017_v30, %v3731_v21  ;;  %v3952_v6 = vsel %vm3946_vm12, %v3919_v18, %v3349_v4  ;;  %v3824_v4 = vsel %vm1745_vm2, %v7216_v63, %v7170_v44  ;;  %v2780_v30 = vld [vmem:[#allocation3 + $0x10a] sm:$0xff]  ;;  %v8757_v18 = vld [vmem:[#allocation6_spill] sm:$0xff] }
 0x482   : > { %3246 = vrot.lane.b32.xlu1 %v2651_v55, %s4992_s28  ;;  %4848 = vmatprep.mubr.msk.f32.mxu1 %vm4087_vm0, %v4050_v32  ;;  %v3605_v37 = vpop.permute.xlu0 %3604  ;;  %v3985_v57 = vsel %vm3979_vm14, %v3952_v6, %v3477_v39  ;;  %v3856_v0 = vsel %vm1811_vm5, %v3824_v4, %v7355_v10  ;;  %v8759_v4 = vld [vmem:[#allocation130_spill] sm:$0xff] }
 0x483   : > { %v4018_v20 = vsel %vm4012_vm13, %v3985_v57, %v3605_v37  ;;  %v3888_v59 = vsel %vm1877_vm7, %v3856_v0, %v7501_v35  ;;  %v8760_v0 = vld [vmem:[#allocation67_spill] sm:$0xff] }
 0x484   : > { %v3351_v22 = vpop.permute.xlu1 %3350  ;;  %3626 = vrot.lane.b32.xlu0 %v2651_v55, %s4995_s11  ;;  %v3920_v38 = vsel %vm1943_vm9, %v3888_v59, %v3223_v25  ;;  %v3825_v25 = vsel %vm1745_vm2, %v7210_v26, %v7167_v28  ;;  %v2749_v26 = vld [vmem:[#allocation3 + $0x111] sm:$0xff] }
 0x485   : > { %v3953_v49 = vsel %vm3946_vm12, %v3920_v38, %v3351_v22  ;;  %v2686_v22 = vld [vmem:[#allocation3 + $0x112] sm:$0xff] }
 0x486   : > { %3754 = vrot.lane.b32.xlu1 %v2778_v14, %s4996_s12  ;;  %v3225_v43 = vpop.permute.xlu0 %3224  ;;  %v8761_v38 = vld [vmem:[#allocation28_spill] sm:$0xff] }
 0x488   : > { %v3353_v27 = vpop.permute.xlu1 %3352  ;;  %3628 = vrot.lane.b32.xlu0 %v2747_v45, %s4995_s11 }
 0x48a   : > { %3374 = vrot.lane.b32.xlu1 %v2778_v14, %s4993_s20  ;;  %v3733_v31 = vpop.permute.xlu0 %3732  ;;  %v3858_v14 = vsel %vm1811_vm5, %v3826_v7, %v8757_v18  ;;  %v2720_v7 = vld [vmem:[#allocation3 + $0x138] sm:$0xff] }
 0x48b   : > { %v4051_v12 = vsel %vm4045_vm15, %v4018_v20, %v3733_v31  ;;  %v2657_v18 = vld [vmem:[#allocation3 + $0x139] sm:$0xff] }
 0x48c   : > { %v3481_v15 = vpop.permute.xlu1 %3480  ;;  %3248 = vrot.lane.b32.xlu0 %v2747_v45, %s4992_s28  ;;  %4849 = vmatmul.mubr.msk.f32.gmra.mxu1 %vm4087_vm0, %v4051_v12  ;;  %v3890_v45 = vsel %vm1877_vm7, %v3858_v14, %v7509_v56  ;;  %v8764_v14 = vld [vmem:[#allocation11_spill] sm:$0xff] }
 0x48e   : > { %3376 = vrot.lane.b32.xlu1 %v2684_v60, %s4993_s20  ;;  %v3479_v39 = vpop.permute.xlu0 %3478 }
 0x48f   : > { %v3986_v51 = vsel %vm3979_vm14, %v3953_v49, %v3479_v39  ;;  %v3827_v39 = vsel %vm1745_vm2, %v7220_v47, %v8760_v0 }
 0x490   : > { %v3227_v3 = vpop.permute.xlu1 %3226  ;;  %3756 = vrot.lane.b32.xlu0 %v2684_v60, %s4996_s12  ;;  %v2655_v60 = vld [vmem:[#allocation3 + $0x121] sm:$0xff] }
 0x491   : > { %v3922_v6 = vsel %vm1943_vm9, %v3890_v45, %v3227_v3  ;;  %v3859_v3 = vsel %vm1811_vm5, %v3827_v39, %v8761_v38 }
 0x492   : > { %3504 = vrot.lane.b32.xlu1 %v7298_v1, %s4994_s29  ;;  %v3607_v44 = vpop.permute.xlu0 %3606  ;;  %v3857_v1 = vsel %vm1811_vm5, %v3825_v25, %v7349_v24  ;;  %v3891_v49 = vsel %vm1877_vm7, %v3859_v3, %v7505_v34  ;;  %v2690_v3 = vld [vmem:[#allocation3 + $0x142] sm:$0xff] }
 0x493   : > { %v4019_v63 = vsel %vm4012_vm13, %v3986_v51, %v3607_v44  ;;  %v3889_v46 = vsel %vm1877_vm7, %v3857_v1, %v7497_v17 }
 0x494   : > { %v3735_v10 = vpop.permute.xlu1 %3734  ;;  %3502 = vrot.lane.b32.xlu0 %v7304_v52, %s4994_s29  ;;  %v3921_v52 = vsel %vm1943_vm9, %v3889_v46, %v3225_v43 }
 0x495   : > { %v4052_v35 = vsel %vm4045_vm15, %v4019_v63, %v3735_v10  ;;  %v3954_v21 = vsel %vm3946_vm12, %v3921_v52, %v3353_v27  ;;  %v2782_v63 = vld [vmem:[#allocation3 + $0x122] sm:$0xff] }
 0x496   : > { %3250 = vrot.lane.b32.xlu1 %v2653_v36, %s4992_s28  ;;  %4851 = vmatprep.mubr.msk.f32.mxu1 %vm4087_vm0, %v4052_v35  ;;  %v3609_v19 = vpop.permute.xlu0 %3608  ;;  %v3987_v24 = vsel %vm3979_vm14, %v3954_v21, %v3481_v15  ;;  %v2751_v10 = vld [vmem:[#allocation3 + $0x129] sm:$0xff] }
 0x497   : > { %v4020_v55 = vsel %vm4012_vm13, %v3987_v24, %v3609_v19 }
 0x498   : > { %v3355_v13 = vpop.permute.xlu1 %3354  ;;  %3630 = vrot.lane.b32.xlu0 %v2653_v36, %s4995_s11 }
 0x499   : > { %v3955_v57 = vsel %vm3946_vm12, %v3922_v6, %v3355_v13  ;;  %v8762_v13 = vld [vmem:[#allocation9_spill] sm:$0xff] }
 0x49a   : > { %3758 = vrot.lane.b32.xlu1 %v2780_v30, %s4996_s12  ;;  %v3229_v28 = vpop.permute.xlu0 %3228  ;;  %v3828_v52 = vsel %vm1745_vm2, %v7236_v5, %v8762_v13  ;;  %v8765_v6 = vld [vmem:[#allocation57_spill] sm:$0xff] }
 0x49b   : > { %v3923_v44 = vsel %vm1943_vm9, %v3891_v49, %v3229_v28  ;;  %v8763_v28 = vld [vmem:[#allocation26_spill] sm:$0xff] }
 0x49c   : > { %v3357_v32 = vpop.permute.xlu1 %3356  ;;  %3632 = vrot.lane.b32.xlu0 %v2749_v26, %s4995_s11 }
 0x49d   : > { %v3956_v35 = vsel %vm3946_vm12, %v3923_v44, %v3357_v32 }
 0x49e   : > { %3378 = vrot.lane.b32.xlu1 %v2780_v30, %s4993_s20  ;;  %v3737_v17 = vpop.permute.xlu0 %3736  ;;  %v2688_v30 = vld [vmem:[#allocation3 + $0x12a] sm:$0xff] }
 0x49f   : > { %v4053_v2 = vsel %vm4045_vm15, %v4020_v55, %v3737_v17 }
 0x4a0   : > { %v3485_v37 = vpop.permute.xlu1 %3484  ;;  %3252 = vrot.lane.b32.xlu0 %v2749_v26, %s4992_s28  ;;  %4852 = vmatmul.mubr.msk.f32.gmra.mxu1 %vm4087_vm0, %v4053_v2  ;;  %v3860_v26 = vsel %vm1811_vm5, %v3828_v52, %v8763_v28  ;;  %v2721_v2 = vld [vmem:[#allocation3 + $0x140] sm:$0xff]  ;;  %v8768_v52 = vld [vmem:[#allocation77_spill] sm:$0xff] }
 0x4a1   : > { %v3989_v25 = vsel %vm3979_vm14, %v3956_v35, %v3485_v37  ;;  %v3892_v32 = vsel %vm1877_vm7, %v3860_v26, %v7517_v58  ;;  %v2723_v35 = vld [vmem:[#allocation3 + $0x158] sm:$0xff] }
 0x4a2   : > { %3380 = vrot.lane.b32.xlu1 %v2686_v22, %s4993_s20  ;;  %v3483_v43 = vpop.permute.xlu0 %3482 }
 0x4a3   : > { %v3988_v20 = vsel %vm3979_vm14, %v3955_v57, %v3483_v43  ;;  %v3829_v43 = vsel %vm1745_vm2, %v7232_v42, %v8764_v14 }
 0x4a4   : > { %v3231_v27 = vpop.permute.xlu1 %3230  ;;  %3760 = vrot.lane.b32.xlu0 %v2686_v22, %s4996_s12 }
 0x4a5   : > { %v3924_v24 = vsel %vm1943_vm9, %v3892_v32, %v3231_v27  ;;  %v3861_v27 = vsel %vm1811_vm5, %v3829_v43, %v8765_v6  ;;  %v2786_v32 = vld [vmem:[#allocation3 + $0x152] sm:$0xff] }
 0x4a6   : > { %3508 = vrot.lane.b32.xlu1 %v8758_v9, %s4994_s29  ;;  %v3611_v31 = vpop.permute.xlu0 %3610  ;;  %v3893_v57 = vsel %vm1877_vm7, %v3861_v27, %v7513_v40 }
 0x4a7   : > { %v4021_v12 = vsel %vm4012_vm13, %v3988_v20, %v3611_v31  ;;  %v2784_v31 = vld [vmem:[#allocation3 + $0x13a] sm:$0xff] }
 0x4a8   : > { %v3739_v15 = vpop.permute.xlu1 %3738  ;;  %3506 = vrot.lane.b32.xlu0 %v8759_v4, %s4994_s29 }
 0x4a9   : > { %v4054_v56 = vsel %vm4045_vm15, %v4021_v12, %v3739_v15  ;;  %v2753_v12 = vld [vmem:[#allocation3 + $0x141] sm:$0xff] }
 0x4aa   : > { %3254 = vrot.lane.b32.xlu1 %v2655_v60, %s4992_s28  ;;  %4854 = vmatprep.mubr.msk.f32.mxu1 %vm4087_vm0, %v4054_v56  ;;  %v3613_v59 = vpop.permute.xlu0 %3612 }
 0x4ab   : > { %v4022_v19 = vsel %vm4012_vm13, %v3989_v25, %v3613_v59  ;;  %v8766_v59 = vld [vmem:[#allocation69_spill] sm:$0xff]  ;;  %v2722_v25 = vld [vmem:[#allocation3 + $0x150] sm:$0xff] }
 0x4ac   : > { %v3359_v51 = vpop.permute.xlu1 %3358  ;;  %3634 = vrot.lane.b32.xlu0 %v2655_v60, %s4995_s11  ;;  %v3830_v38 = vsel %vm1745_vm2, %v7248_v61, %v8766_v59 }
 0x4ad   : > { %v3957_v17 = vsel %vm3946_vm12, %v3924_v24, %v3359_v51  ;;  %v3862_v49 = vsel %vm1811_vm5, %v3830_v38, %v7397_v53  ;;  %v2755_v24 = vld [vmem:[#allocation3 + $0x159] sm:$0xff]  ;;  %v2788_v38 = vld [vmem:[#allocation3 + $0x16a] sm:$0xff] }
 0x4ae   : > { %3762 = vrot.lane.b32.xlu1 %v2782_v63, %s4996_s12  ;;  %v3233_v47 = vpop.permute.xlu0 %3232  ;;  %v3894_v44 = vsel %vm1877_vm7, %v3862_v49, %v7525_v41  ;;  %v2757_v49 = vld [vmem:[#allocation3 + $0x171] sm:$0xff] }
 0x4af   : > { %v3925_v9 = vsel %vm1943_vm9, %v3893_v57, %v3233_v47  ;;  %v2725_v57 = vld [vmem:[#allocation3 + $0x170] sm:$0xff] }
 0x4b0   : > { %v3361_v36 = vpop.permute.xlu1 %3360  ;;  %3636 = vrot.lane.b32.xlu0 %v2751_v10, %s4995_s11 }
 0x4b1   : > { %v3958_v15 = vsel %vm3946_vm12, %v3925_v9, %v3361_v36  ;;  %v2724_v9 = vld [vmem:[#allocation3 + $0x168] sm:$0xff] }
 0x4b2   : > { %3382 = vrot.lane.b32.xlu1 %v2782_v63, %s4993_s20  ;;  %v3741_v34 = vpop.permute.xlu0 %3740 }
 0x4b3   : > { %v4055_v1 = vsel %vm4045_vm15, %v4022_v19, %v3741_v34  ;;  %v2659_v34 = vld [vmem:[#allocation3 + $0x151] sm:$0xff] }
 0x4b4   : > { %v3489_v46 = vpop.permute.xlu1 %3488  ;;  %3256 = vrot.lane.b32.xlu0 %v2751_v10, %s4992_s28  ;;  %4855 = vmatmul.mubr.msk.f32.gmra.mxu1 %vm4087_vm0, %v4055_v1  ;;  %v8767_v1 = vld [vmem:[#allocation70_spill] sm:$0xff] }
 0x4b5   : > { %v3991_v56 = vsel %vm3979_vm14, %v3958_v15, %v3489_v46  ;;  %v3831_v46 = vsel %vm1745_vm2, %v7242_v16, %v8767_v1  ;;  %v8770_v15 = vld [vmem:[#allocation14_spill] sm:$0xff] }
 0x4b6   : > { %3384 = vrot.lane.b32.xlu1 %v2688_v30, %s4993_s20  ;;  %v3487_v21 = vpop.permute.xlu0 %3486 }
 0x4b7   : > { %v3990_v5 = vsel %vm3979_vm14, %v3957_v17, %v3487_v21 }
 0x4b8   : > { %v3235_v55 = vpop.permute.xlu1 %3234  ;;  %3764 = vrot.lane.b32.xlu0 %v2688_v30, %s4996_s12  ;;  %v3863_v30 = vsel %vm1811_vm5, %v3831_v46, %v8768_v52  ;;  %v2727_v52 = vld [vmem:[#allocation3 + $0x188] sm:$0xff] }
 0x4b9   : > { %v3926_v63 = vsel %vm1943_vm9, %v3894_v44, %v3235_v55  ;;  %v3895_v28 = vsel %vm1877_vm7, %v3863_v30, %v7521_v8 }
 0x4ba   : > { %3512 = vrot.lane.b32.xlu1 %v2721_v2, %s4994_s29  ;;  %v3615_v37 = vpop.permute.xlu0 %3614 }
 0x4bb   : > { %v4023_v54 = vsel %vm4012_vm13, %v3990_v5, %v3615_v37 }
 0x4bc   : > { %v3743_v22 = vpop.permute.xlu1 %3742  ;;  %3510 = vrot.lane.b32.xlu0 %v2720_v7, %s4994_s29  ;;  %v8769_v7 = vld [vmem:[#allocation12_spill] sm:$0xff] }
 0x4bd   : > { %v4056_v58 = vsel %vm4045_vm15, %v4023_v54, %v3743_v22  ;;  %v3832_v22 = vsel %vm1745_vm2, %v7258_v11, %v8769_v7 }
 0x4be   : > { %3258 = vrot.lane.b32.xlu1 %v2657_v18, %s4992_s28  ;;  %4857 = vmatprep.mubr.msk.f32.mxu1 %vm4087_vm0, %v4056_v58  ;;  %v3617_v45 = vpop.permute.xlu0 %3616  ;;  %v2692_v58 = vld [vmem:[#allocation3 + $0x15a] sm:$0xff] }
 0x4bf   : > { %v4024_v60 = vsel %vm4012_vm13, %v3991_v56, %v3617_v45 }
 0x4c0   : > { %v3363_v20 = vpop.permute.xlu1 %3362  ;;  %3638 = vrot.lane.b32.xlu0 %v2657_v18, %s4995_s11  ;;  %v3864_v18 = vsel %vm1811_vm5, %v3832_v22, %v7405_v50 }
 0x4c1   : > { %v3959_v10 = vsel %vm3946_vm12, %v3926_v63, %v3363_v20  ;;  %v3896_v43 = vsel %vm1877_vm7, %v3864_v18, %v7533_v48 }
 0x4c2   : > { %3766 = vrot.lane.b32.xlu1 %v2784_v31, %s4996_s12  ;;  %v3237_v42 = vpop.permute.xlu0 %3236 }
 0x4c3   : > { %v3927_v21 = vsel %vm1943_vm9, %v3895_v28, %v3237_v42  ;;  %v2661_v42 = vld [vmem:[#allocation3 + $0x169] sm:$0xff] }
 0x4c4   : > { %v3365_v4 = vpop.permute.xlu1 %3364  ;;  %3640 = vrot.lane.b32.xlu0 %v2753_v12, %s4995_s11 }
 0x4c5   : > { %v3960_v55 = vsel %vm3946_vm12, %v3927_v21, %v3365_v4 }
 0x4c6   : > { %3386 = vrot.lane.b32.xlu1 %v2784_v31, %s4993_s20  ;;  %v3745_v40 = vpop.permute.xlu0 %3744 }
 0x4c7   : > { %v4057_v0 = vsel %vm4045_vm15, %v4024_v60, %v3745_v40  ;;  %v8771_v60 = vld [vmem:[#allocation55_spill] sm:$0xff] }
 0x4c8   : > { %v3493_v39 = vpop.permute.xlu1 %3492  ;;  %3260 = vrot.lane.b32.xlu0 %v2753_v12, %s4992_s28  ;;  %4858 = vmatmul.mubr.msk.f32.gmra.mxu1 %vm4087_vm0, %v4057_v0  ;;  %v4959_v12 = vld [vmem:[#allocation3 + $0xb0] sm:$0xff] }
 0x4c9   : > { %v3993_v2 = vsel %vm3979_vm14, %v3960_v55, %v3493_v39  ;;  %v3833_v4 = vsel %vm1745_vm2, %v4959_v12, %v8770_v15  ;;  %v8777_v12 = vld [vmem:[#allocation98_spill] sm:$0xff] }
 0x4ca   : > { %3388 = vrot.lane.b32.xlu1 %v2690_v3, %s4993_s20  ;;  %v3491_v51 = vpop.permute.xlu0 %3490  ;;  %v3865_v40 = vsel %vm1811_vm5, %v3833_v4, %v8771_v60 }
 0x4cb   : > { %v3992_v61 = vsel %vm3979_vm14, %v3959_v10, %v3491_v51  ;;  %v3897_v0 = vsel %vm1877_vm7, %v3865_v40, %v7529_v62 }
 0x4cc   : > { %v3239_v47 = vpop.permute.xlu1 %3238  ;;  %3768 = vrot.lane.b32.xlu0 %v2690_v3, %s4996_s12 }
 0x4cd   : > { %v3928_v45 = vsel %vm1943_vm9, %v3896_v43, %v3239_v47 }
 0x4ce   : > { %3516 = vrot.lane.b32.xlu1 %v2723_v35, %s4994_s29  ;;  %v3619_v36 = vpop.permute.xlu0 %3618 }
 0x4cf   : > { %v4025_v53 = vsel %vm4012_vm13, %v3992_v61, %v3619_v36  ;;  %v4960_v61 = vld [vmem:[#allocation3 + $0xc0] sm:$0xff]  ;;  %v8772_v36 = vld [vmem:[#allocation71_spill] sm:$0xff] }
 0x4d0   : > { %v3747_v19 = vpop.permute.xlu1 %3746  ;;  %3514 = vrot.lane.b32.xlu0 %v2722_v25, %s4994_s29  ;;  %v2694_v25 = vld [vmem:[#allocation3 + $0x172] sm:$0xff] }
 0x4d1   : > { %v4058_v41 = vsel %vm4045_vm15, %v4025_v53, %v3747_v19  ;;  %v3834_v53 = vsel %vm1745_vm2, %v4960_v61, %v8772_v36  ;;  %v2728_v61 = vld [vmem:[#allocation3 + $0x198] sm:$0xff]  ;;  %v8780_v36 = vld [vmem:[#allocation158_spill] sm:$0xff] }
 0x4d2   : > { %3262 = vrot.lane.b32.xlu1 %v2659_v34, %s4992_s28  ;;  %4860 = vmatprep.mubr.msk.f32.mxu1 %vm4087_vm0, %v4058_v41  ;;  %v3621_v13 = vpop.permute.xlu0 %3620  ;;  %v3866_v19 = vsel %vm1811_vm5, %v3834_v53, %v7413_v29 }
 0x4d3   : > { %v4026_v5 = vsel %vm4012_vm13, %v3993_v2, %v3621_v13  ;;  %v8774_v2 = vld [vmem:[#allocation133_spill] sm:$0xff] }
 0x4d4   : > { %v3367_v26 = vpop.permute.xlu1 %3366  ;;  %3642 = vrot.lane.b32.xlu0 %v2659_v34, %s4995_s11  ;;  %v3898_v34 = vsel %vm1877_vm7, %v3866_v19, %v7540_v23 }
 0x4d5   : > { %v3961_v27 = vsel %vm3946_vm12, %v3928_v45, %v3367_v26  ;;  %v2726_v26 = vld [vmem:[#allocation3 + $0x180] sm:$0xff] }
 0x4d6   : > { %3770 = vrot.lane.b32.xlu1 %v2786_v32, %s4996_s12  ;;  %v3241_v16 = vpop.permute.xlu0 %3240 }
 0x4d7   : > { %v3929_v59 = vsel %vm1943_vm9, %v3897_v0, %v3241_v16  ;;  %v4961_v16 = vld [vmem:[#allocation3 + $0xc8] sm:$0xff] }
 0x4d8   : > { %v3369_v17 = vpop.permute.xlu1 %3368  ;;  %3644 = vrot.lane.b32.xlu0 %v2755_v24, %s4995_s11 }
 0x4d9   : > { %v3962_v51 = vsel %vm3946_vm12, %v3929_v59, %v3369_v17 }
 0x4da   : > { %3390 = vrot.lane.b32.xlu1 %v2786_v32, %s4993_s20  ;;  %v3749_v8 = vpop.permute.xlu0 %3748  ;;  %v2633_v32 = vld [vmem:[#allocation3 + $0x19] sm:$0xff] }
 0x4db   : > { %v4059_v37 = vsel %vm4045_vm15, %v4026_v5, %v3749_v8  ;;  %v2758_v8 = vld [vmem:[#allocation3 + $0x181] sm:$0xff] }
 0x4dc   : > { %v3497_v54 = vpop.permute.xlu1 %3496  ;;  %3264 = vrot.lane.b32.xlu0 %v2755_v24, %s4992_s28  ;;  %4861 = vmatmul.mubr.msk.f32.gmra.mxu1 %vm4087_vm0, %v4059_v37  ;;  %v8773_v24 = vld [vmem:[#allocation72_spill] sm:$0xff]  ;;  %v8775_v37 = vld [vmem:[#allocation134_spill] sm:$0xff] }
 0x4dd   : > { %v3995_v63 = vsel %vm3979_vm14, %v3962_v51, %v3497_v54  ;;  %v3835_v55 = vsel %vm1745_vm2, %v4961_v16, %v8773_v24  ;;  %v4963_v51 = vld [vmem:[#allocation3 + $0xe0] sm:$0xff]  ;;  %v8781_v16 = vld [vmem:[#allocation20_spill] sm:$0xff] }
 0x4de   : > { %3392 = vrot.lane.b32.xlu1 %v2692_v58, %s4993_s20  ;;  %v3495_v14 = vpop.permute.xlu0 %3494  ;;  %v3867_v5 = vsel %vm1811_vm5, %v3835_v55, %v8774_v2  ;;  %v8782_v55 = vld [vmem:[#allocation156_spill] sm:$0xff] }
 0x4df   : > { %v3994_v11 = vsel %vm3979_vm14, %v3961_v27, %v3495_v14  ;;  %v3899_v54 = vsel %vm1877_vm7, %v3867_v5, %v8775_v37  ;;  %v8783_v5 = vld [vmem:[#allocation19_spill] sm:$0xff]  ;;  %v2730_v37 = vld [vmem:[#allocation3 + $0x31] sm:$0xff] }
 0x4e0   : > { %v3243_v6 = vpop.permute.xlu1 %3242  ;;  %3772 = vrot.lane.b32.xlu0 %v2692_v58, %s4996_s12  ;;  %v2759_v58 = vld [vmem:[#allocation3 + $0x189] sm:$0xff] }
 0x4e1   : > { %v3930_v1 = vsel %vm1943_vm9, %v3898_v34, %v3243_v6  ;;  %v2634_v6 = vld [vmem:[#allocation3 + $0x21] sm:$0xff]  ;;  %v2698_v34 = vld [vmem:[#allocation3 + $0x30] sm:$0xff] }
 0x4e2   : > { %3520 = vrot.lane.b32.xlu1 %v2725_v57, %s4994_s29  ;;  %v3623_v20 = vpop.permute.xlu0 %3622 }
 0x4e3   : > { %v4027_v50 = vsel %vm4012_vm13, %v3994_v11, %v3623_v20  ;;  %v2790_v20 = vld [vmem:[#allocation3 + $0x182] sm:$0xff] }
 0x4e4   : > { %v3751_v31 = vpop.permute.xlu1 %3750  ;;  %3518 = vrot.lane.b32.xlu0 %v2724_v9, %s4994_s29  ;;  %v4962_v9 = vld [vmem:[#allocation3 + $0xd8] sm:$0xff] }
 0x4e5   : > { %v4060_v48 = vsel %vm4045_vm15, %v4027_v50, %v3751_v31  ;;  %v8776_v31 = vld [vmem:[#allocation15_spill] sm:$0xff] }
 0x4e6   : > { %3266 = vrot.lane.b32.xlu1 %v2661_v42, %s4992_s28  ;;  %4863 = vmatprep.mubr.msk.f32.mxu1 %vm4087_vm0, %v4060_v48  ;;  %v3625_v56 = vpop.permute.xlu0 %3624  ;;  %v3836_v48 = vsel %vm1745_vm2, %v4962_v9, %v8776_v31  ;;  %v8785_v31 = vld [vmem:[#allocation132_spill] sm:$0xff] }
 0x4e7   : > { %v4028_v47 = vsel %vm4012_vm13, %v3995_v63, %v3625_v56  ;;  %v3868_v15 = vsel %vm1811_vm5, %v3836_v48, %v8777_v12  ;;  %v2793_v12 = vld [vmem:[#allocation3 + $0x1a2] sm:$0xff] }
 0x4e8   : > { %v3371_v39 = vpop.permute.xlu1 %3370  ;;  %3646 = vrot.lane.b32.xlu0 %v2661_v42, %s4995_s11  ;;  %v2665_v42 = vld [vmem:[#allocation3 + $0x1a] sm:$0xff]  ;;  %v3900_v56 = vsel %vm1877_vm7, %v3868_v15, %v7548_v33  ;;  %v8786_v15 = vld [vmem:[#allocation99_spill] sm:$0xff] }
 0x4e9   : > { %v3963_v13 = vsel %vm3946_vm12, %v3930_v1, %v3371_v39  ;;  %v2791_v39 = vld [vmem:[#allocation3 + $0x18a] sm:$0xff]  ;;  %v2729_v1 = vld [vmem:[#allocation3 + $0x1a0] sm:$0xff] }
 0x4ea   : > { %3774 = vrot.lane.b32.xlu1 %v2788_v38, %s4996_s12  ;;  %v3245_v3 = vpop.permute.xlu0 %3244 }
 0x4eb   : > { %v3931_v22 = vsel %vm1943_vm9, %v3899_v54, %v3245_v3  ;;  %v2761_v54 = vld [vmem:[#allocation3 + $0x1a1] sm:$0xff] }
 0x4ec   : > { %v3373_v44 = vpop.permute.xlu1 %3372  ;;  %3648 = vrot.lane.b32.xlu0 %v2757_v49, %s4995_s11 }
 0x4ed   : > { %v3964_v14 = vsel %vm3946_vm12, %v3931_v22, %v3373_v44  ;;  %v8778_v44 = vld [vmem:[#allocation17_spill] sm:$0xff] }
 0x4ee   : > { %3394 = vrot.lane.b32.xlu1 %v2788_v38, %s4993_s20  ;;  %v3753_v62 = vpop.permute.xlu0 %3752  ;;  %v3837_v63 = vsel %vm1745_vm2, %v4963_v51, %v8778_v44  ;;  %v4966_v44 = vld [vmem:[#allocation3 + $0x108] sm:$0xff] }
 0x4ef   : > { %v4061_v10 = vsel %vm4045_vm15, %v4028_v47, %v3753_v62  ;;  %v8779_v62 = vld [vmem:[#allocation76_spill] sm:$0xff] }
 0x4f0   : > { %v3501_v35 = vpop.permute.xlu1 %3500  ;;  %3268 = vrot.lane.b32.xlu0 %v2757_v49, %s4992_s28  ;;  %4864 = vmatmul.mubr.msk.f32.gmra.mxu1 %vm4087_vm0, %v4061_v10  ;;  %v3869_v10 = vsel %vm1811_vm5, %v3837_v63, %v8779_v62  ;;  %v8787_v63 = vld [vmem:[#allocation24_spill] sm:$0xff]  ;;  %v8788_v62 = vld [vmem:[#allocation13_spill] sm:$0xff] }
 0x4f1   : > { %v3997_v45 = vsel %vm3979_vm14, %v3964_v14, %v3501_v35  ;;  %v2666_v35 = vld [vmem:[#allocation3 + $0x22] sm:$0xff]  ;;  %v3901_v53 = vsel %vm1877_vm7, %v3869_v10, %v8780_v36 }
 0x4f2   : > { %3396 = vrot.lane.b32.xlu1 %v2694_v25, %s4993_s20  ;;  %v3499_v41 = vpop.permute.xlu0 %3498 }
 0x4f3   : > { %v3996_v30 = vsel %vm3979_vm14, %v3963_v13, %v3499_v41 }
 0x4f4   : > { %v3247_v46 = vpop.permute.xlu1 %3246  ;;  %3776 = vrot.lane.b32.xlu0 %v2694_v25, %s4996_s12 }
 0x4f5   : > { %v3932_v60 = vsel %vm1943_vm9, %v3900_v56, %v3247_v46 }
 0x4f6   : > { %3524 = vrot.lane.b32.xlu1 %v2727_v52, %s4994_s29  ;;  %v3627_v28 = vpop.permute.xlu0 %3626 }
 0x4f7   : > { %v4029_v29 = vsel %vm4012_vm13, %v3996_v30, %v3627_v28 }
 0x4f8   : > { %v3755_v21 = vpop.permute.xlu1 %3754  ;;  %3522 = vrot.lane.b32.xlu0 %v2726_v26, %s4994_s29  ;;  %v2699_v26 = vld [vmem:[#allocation3 + $0x38] sm:$0xff] }
 0x4f9   : > { %v4062_v23 = vsel %vm4045_vm15, %v4029_v29, %v3755_v21  ;;  %v2760_v21 = vld [vmem:[#allocation3 + $0x199] sm:$0xff] }
 0x4fa   : > { %3210 = vrot.lane.b32.xlu1 %v2633_v32, %s4992_s28  ;;  %4866 = vmatprep.mubr.msk.f32.mxu1 %vm4087_vm0, %v4062_v23  ;;  %v3629_v17 = vpop.permute.xlu0 %3628  ;;  %v4964_v32 = vld [vmem:[#allocation3 + $0xf0] sm:$0xff] }
 0x4fb   : > { %v4030_v27 = vsel %vm4012_vm13, %v3997_v45, %v3629_v17  ;;  %v3838_v24 = vsel %vm1745_vm2, %v4964_v32, %v8781_v16  ;;  %v2731_v45 = vld [vmem:[#allocation3 + $0x39] sm:$0xff] }
 0x4fc   : > { %v3375_v7 = vpop.permute.xlu1 %3374  ;;  %3650 = vrot.lane.b32.xlu0 %v2758_v8, %s4995_s11  ;;  %v3870_v17 = vsel %vm1811_vm5, %v3838_v24, %v8782_v55  ;;  %v8792_v32 = vld [vmem:[#allocation157_spill] sm:$0xff] }
 0x4fd   : > { %v3965_v0 = vsel %vm3946_vm12, %v3932_v60, %v3375_v7 }
 0x4fe   : > { %3652 = vrot.lane.b32.xlu1 %v2759_v58, %s4995_s11  ;;  %v3249_v18 = vpop.permute.xlu0 %3248 }
 0x4ff   : > { %v3933_v19 = vsel %vm1943_vm9, %v3901_v53, %v3249_v18 }
 0x500   : > { %v3377_v43 = vpop.permute.xlu1 %3376  ;;  %3270 = vrot.lane.b32.xlu0 %v2758_v8, %s4992_s28  ;;  %v3902_v8 = vsel %vm1877_vm7, %v3870_v17, %v8783_v5  ;;  %v7991_v17 = vld [vmem:[%s8269_s6] ss:$0 sm:$0xff] }
 0x501   : > { %v3966_v46 = vsel %vm3946_vm12, %v3933_v19, %v3377_v43 }
 0x502   : > { %3212 = vrot.lane.b32.xlu1 %v2634_v6, %s4992_s28  ;;  %v3757_v57 = vpop.permute.xlu0 %3756  ;;  %v2792_v6 = vld [vmem:[#allocation3 + $0x19a] sm:$0xff] }
 0x503   : > { %v4063_v11 = vsel %vm4045_vm15, %v4030_v27, %v3757_v57 }
 0x504   : > { %v3505_v50 = vpop.permute.xlu1 %3504  ;;  %3778 = vrot.lane.b32.xlu0 %v2790_v20, %s4996_s12  ;;  %4867 = vmatmul.mubr.msk.f32.gmra.mxu1 %vm4087_vm0, %v4063_v11  ;;  %v4965_v11 = vld [vmem:[#allocation3 + $0xf8] sm:$0xff] }
 0x505   : > { %v3999_v52 = vsel %vm3979_vm14, %v3966_v46, %v3505_v50 }
 0x506   : > { %3338 = vrot.lane.b32.xlu1 %v2665_v42, %s4993_s20  ;;  %v3503_v4 = vpop.permute.xlu0 %3502  ;;  %v2762_v42 = vld [vmem:[#allocation3 + $0x32] sm:$0xff] }
 0x507   : > { %v3998_v59 = vsel %vm3979_vm14, %v3965_v0, %v3503_v4  ;;  %v2763_v0 = vld [vmem:[#allocation3 + $0x3a] sm:$0xff] }
 0x508   : > { %v3251_v40 = vpop.permute.xlu1 %3250  ;;  %3272 = vrot.lane.b32.xlu0 %v2759_v58, %s4992_s28 }
 0x509   : > { %v3934_v7 = vsel %vm1943_vm9, %v3902_v8, %v3251_v40 }
 0x50a   : > { %3780 = vrot.lane.b32.xlu1 %v2791_v39, %s4996_s12  ;;  %v3631_v38 = vpop.permute.xlu0 %3630 }
 0x50b   : > { %v4031_v3 = vsel %vm4012_vm13, %v3998_v59, %v3631_v38 }
 0x50c   : > { %v3759_v49 = vpop.permute.xlu1 %3758  ;;  %3398 = vrot.lane.b32.xlu0 %v2790_v20, %s4993_s20  ;;  %v8784_v20 = vld [vmem:[#allocation73_spill] sm:$0xff] }
 0x50d   : > { %v4064_v33 = vsel %vm4045_vm15, %v4031_v3, %v3759_v49  ;;  %v3839_v50 = vsel %vm1745_vm2, %v4965_v11, %v8784_v20  ;;  %v4968_v20 = vld [vmem:[#allocation3 + $0x120] sm:$0xff] }
 0x50e   : > { %3400 = vrot.lane.b32.xlu1 %v2791_v39, %s4993_s20  ;;  %4869 = vmatprep.mubr.msk.f32.mxu1 %vm4087_vm0, %v4064_v33  ;;  %v3633_v47 = vpop.permute.xlu0 %3632  ;;  %v3871_v48 = vsel %vm1811_vm5, %v3839_v50, %v8785_v31  ;;  %v8793_v50 = vld [vmem:[#allocation22_spill] sm:$0xff]  ;;  %v8794_v31 = vld [vmem:[#allocation32_spill] sm:$0xff] }
 0x50f   : > { %v4032_v30 = vsel %vm4012_vm13, %v3999_v52, %v3633_v47  ;;  %v3903_v4 = vsel %vm1877_vm7, %v3871_v48, %v8786_v15  ;;  %v3840_v47 = vsel %vm1745_vm2, %v4966_v44, %v8787_v63  ;;  %v4967_v52 = vld [vmem:[#allocation3 + $0x110] sm:$0xff]  ;;  %v8797_v44 = vld [vmem:[#allocation155_spill] sm:$0xff] }
 0x510   : > { %v3379_v25 = vpop.permute.xlu1 %3378  ;;  %3340 = vrot.lane.b32.xlu0 %v2666_v35, %s4993_s20  ;;  %v3872_v10 = vsel %vm1811_vm5, %v3840_v47, %v8788_v62  ;;  %v8798_v47 = vld [vmem:[#allocation16_spill] sm:$0xff] }
 0x511   : > { %v3967_v58 = vsel %vm3946_vm12, %v3934_v7, %v3379_v25 }
 0x512   : > { %3526 = vrot.lane.b32.xlu1 %v2728_v61, %s4994_s29  ;;  %v3253_v41 = vpop.permute.xlu0 %3252  ;;  %v8789_v61 = vld [vmem:[#allocation36_spill] sm:$0xff] }
 0x513   : > { %v3935_v60 = vsel %vm1943_vm9, %v3903_v4, %v3253_v41  ;;  %v3904_v36 = vsel %vm1877_vm7, %v3872_v10, %v8789_v61 }
 0x514   : > { %v3381_v13 = vpop.permute.xlu1 %3380  ;;  %3466 = vrot.lane.b32.xlu0 %v2698_v34, %s4994_s29 }
 0x515   : > { %v3968_v39 = vsel %vm3946_vm12, %v3935_v60, %v3381_v13 }
 0x516   : > { %3528 = vrot.lane.b32.xlu1 %v2729_v1, %s4994_s29  ;;  %v3761_v28 = vpop.permute.xlu0 %3760 }
 0x517   : > { %v4065_v29 = vsel %vm4045_vm15, %v4032_v30, %v3761_v28  ;;  %v8790_v30 = vld [vmem:[#allocation18_spill] sm:$0xff] }
 0x518   : > { %v3509_v23 = vpop.permute.xlu1 %3508  ;;  %3468 = vrot.lane.b32.xlu0 %v2699_v26, %s4994_s29  ;;  %4870 = vmatmul.mubr.msk.f32.gmra.mxu1 %vm4087_vm0, %v4065_v29  ;;  %v3841_v28 = vsel %vm1745_vm2, %v4967_v52, %v8790_v30  ;;  %v7982_v26 = vld [vmem:[%s8268_s5] ss:$0 sm:$0xff] }
 0x519   : > { %v4001_v38 = vsel %vm3979_vm14, %v3968_v39, %v3509_v23 }
 0x51a   : > { %3654 = vrot.lane.b32.xlu1 %v2760_v21, %s4995_s11  ;;  %v3507_v2 = vpop.permute.xlu0 %3506  ;;  %v8791_v21 = vld [vmem:[#allocation97_spill] sm:$0xff] }
 0x51b   : > { %v4000_v18 = vsel %vm3979_vm14, %v3967_v58, %v3507_v2  ;;  %v3873_v23 = vsel %vm1811_vm5, %v3841_v28, %v8791_v21 }
 0x51c   : > { %v3255_v22 = vpop.permute.xlu1 %3254  ;;  %3594 = vrot.lane.b32.xlu0 %v2730_v37, %s4995_s11  ;;  %v3905_v16 = vsel %vm1877_vm7, %v3873_v23, %v8792_v32  ;;  %v4970_v32 = vld [vmem:[#allocation3 + $0x138] sm:$0xff] }
 0x51d   : > { %v3936_v53 = vsel %vm1943_vm9, %v3904_v36, %v3255_v22 }
 0x51e   : > { %3656 = vrot.lane.b32.xlu1 %v2761_v54, %s4995_s11  ;;  %v3635_v14 = vpop.permute.xlu0 %3634 }
 0x51f   : > { %v4033_v43 = vsel %vm4012_vm13, %v4000_v18, %v3635_v14 }
 0x520   : > { %v3763_v27 = vpop.permute.xlu1 %3762  ;;  %3596 = vrot.lane.b32.xlu0 %v2731_v45, %s4995_s11 }
 0x521   : > { %v4066_v57 = vsel %vm4045_vm15, %v4033_v43, %v3763_v27 }
 0x522   : > { %3782 = vrot.lane.b32.xlu1 %v2792_v6, %s4996_s12  ;;  %4872 = vmatprep.mubr.msk.f32.mxu1 %vm4087_vm0, %v4066_v57  ;;  %v3637_v9 = vpop.permute.xlu0 %3636 }
 0x523   : > { %v4034_v3 = vsel %vm4012_vm13, %v4001_v38, %v3637_v9  ;;  %v3842_v9 = vsel %vm1745_vm2, %v4968_v20, %v8793_v50  ;;  %v8803_v20 = vld [vmem:[#allocation10_spill] sm:$0xff] }
 0x524   : > { %v3383_v56 = vpop.permute.xlu1 %3382  ;;  %3722 = vrot.lane.b32.xlu0 %v2762_v42, %s4996_s12  ;;  %v3874_v48 = vsel %vm1811_vm5, %v3842_v9, %v8794_v31  ;;  %v8804_v9 = vld [vmem:[#allocation34_spill] sm:$0xff] }
 0x525   : > { %v3969_v19 = vsel %vm3946_vm12, %v3936_v53, %v3383_v56 }
 0x526   : > { %3784 = vrot.lane.b32.xlu1 %v2793_v12, %s4996_s12  ;;  %v3257_v40 = vpop.permute.xlu0 %3256  ;;  %v8795_v12 = vld [vmem:[#allocation65_spill] sm:$0xff] }
 0x527   : > { %v3937_v2 = vsel %vm1943_vm9, %v3905_v16, %v3257_v40  ;;  %v3906_v15 = vsel %vm1877_vm7, %v3874_v48, %v8795_v12  ;;  %v8799_v16 = vld [vmem:[#allocation51_spill] sm:$0xff] }
 0x528   : > { %v3385_v59 = vpop.permute.xlu1 %3384  ;;  %3724 = vrot.lane.b32.xlu0 %v2763_v0, %s4996_s12 }
 0x529   : > { %v3970_v22 = vsel %vm3946_vm12, %v3937_v2, %v3385_v59 }
 0x52a   : > { %v3765_v49 = vpop.permute.xlu0 %3764 }
 0x52b   : > { %v4067_v33 = vsel %vm4045_vm15, %v4034_v3, %v3765_v49  ;;  %v4969_v3 = vld [vmem:[#allocation3 + $0x128] sm:$0xff]  ;;  %v8796_v49 = vld [vmem:[#allocation53_spill] sm:$0xff] }
 0x52c   : > { %v3513_v51 = vpop.permute.xlu1 %3512  ;;  %4873 = vmatmul.mubr.msk.f32.gmra.mxu1 %vm4087_vm0, %v4067_v33  ;;  %v3843_v33 = vsel %vm1745_vm2, %v4969_v3, %v8796_v49 }
 0x52d   : > { %v4003_v18 = vsel %vm3979_vm14, %v3970_v22, %v3513_v51  ;;  %v3875_v63 = vsel %vm1811_vm5, %v3843_v33, %v8797_v44 }
 0x52e   : > { %v3511_v35 = vpop.permute.xlu0 %3510  ;;  %v3907_v62 = vsel %vm1877_vm7, %v3875_v63, %v8798_v47 }
 0x52f   : > { %v4002_v41 = vsel %vm3979_vm14, %v3969_v19, %v3511_v35 }
 0x530   : > { %v3259_v25 = vpop.permute.xlu1 %3258 }
 0x531   : > { %v3938_v4 = vsel %vm1943_vm9, %v3906_v15, %v3259_v25 }
 0x532   : > { %v3639_v34 = vpop.permute.xlu0 %3638 }
 0x533   : > { %v4035_v1 = vsel %vm4012_vm13, %v4002_v41, %v3639_v34 }
 0x534   : > { %v3767_v46 = vpop.permute.xlu1 %3766 }
 0x535   : > { %v4068_v13 = vsel %vm4045_vm15, %v4035_v1, %v3767_v46 }
 0x536   : > { %4875 = vmatprep.mubr.msk.f32.mxu1 %vm4087_vm0, %v4068_v13  ;;  %v3641_v29 = vpop.permute.xlu0 %3640 }
 0x537   : > { %v4036_v45 = vsel %vm4012_vm13, %v4003_v18, %v3641_v29 }
 0x538   : > { %v3387_v24 = vpop.permute.xlu1 %3386  ;;  %v4847_v55 = vpop.f32.mrf.mxu1 }
 0x539   : > { %v4419_v5 = vmul.f32 %v4847_v55, %v7982_v26  ;;  %v3971_v60 = vsel %vm3946_vm12, %v3938_v4, %v3387_v24  ;;  %v3844_v24 = vsel %vm1745_vm2, %v4970_v32, %v8799_v16  ;;  %v8800_v55 = vld [vmem:[#allocation61_spill] sm:$0xff] }
 0x53a   : > { %v4260_v8 = vpop.f32.mrf.mxu1  ;;  %v3261_v37 = vpop.permute.xlu0 %3260  ;;  %v3876_v2 = vsel %vm1811_vm5, %v3844_v24, %v8800_v55  ;;  %v8810_v55 = vld [vmem:[#allocation63_spill] sm:$0xff] }
 0x53b   : > { %v4458_v54 = vadd.f32 %v7991_v17, %v4419_v5  ;;  %v4418_v7 = vmul.f32 %v7982_v26, %v4260_v8  ;;  %v3939_v61 = vsel %vm1943_vm9, %v3907_v62, %v3261_v37  ;;  %v8801_v8 = vld [vmem:[#allocation81_spill] sm:$0xff] }
 0x53c   : > { %v3389_v58 = vpop.permute.xlu1 %3388  ;;  %v3908_v37 = vsel %vm1877_vm7, %v3876_v2, %v8801_v8 }
 0x53d   : > { %v4490_v14 = vmax.f32 %v4458_v54, 0.0  ;;  %v4457_v43 = vadd.f32 %v7991_v17, %v4418_v7  ;;  %v3972_v34 = vsel %vm3946_vm12, %v3939_v61, %v3389_v58  ;;  %v8805_v61 = vld [vmem:[#allocation96_spill] sm:$0xff] }
 0x53e   : > { %v3769_v6 = vpop.permute.xlu0 %3768 }
 0x53f   : > { %4522 = vst.msk [vmem:[%s8003_s13 + $0x18] sm:$0xff] %vm1745_vm2, %v4490_v14  ;;  %v4489_v27 = vmax.f32 %v4457_v43, 0.0  ;;  %v4069_v57 = vsel %vm4045_vm15, %v4036_v45, %v3769_v6  ;;  %v4971_v6 = vld [vmem:[#allocation3 + $0x140] sm:$0xff] }
 0x540   : > { %v3517_v11 = vpop.permute.xlu1 %3516  ;;  %4876 = vmatmul.mubr.msk.f32.gmra.mxu1 %vm4087_vm0, %v4069_v57 }
 0x541   : > { %4521 = vst.msk [vmem:[%s8003_s13 + $0x10] sm:$0xff] %vm1745_vm2, %v4489_v27  ;;  %v4005_v46 = vsel %vm3979_vm14, %v3972_v34, %v3517_v11  ;;  %v8802_v27 = vld [vmem:[#allocation75_spill] sm:$0xff] }
 0x542   : > { %v3515_v42 = vpop.permute.xlu0 %3514  ;;  %v3845_v57 = vsel %vm1745_vm2, %v4971_v6, %v8802_v27 }
 0x543   : > { %v4004_v40 = vsel %vm3979_vm14, %v3971_v60, %v3515_v42  ;;  %v3877_v50 = vsel %vm1811_vm5, %v3845_v57, %v8803_v20 }
 0x544   : > { %v3263_v56 = vpop.permute.xlu1 %3262  ;;  %v3909_v31 = vsel %vm1877_vm7, %v3877_v50, %v8804_v9 }
 0x545   : > { %v3940_v54 = vsel %vm1943_vm9, %v3908_v37, %v3263_v56 }
 0x546   : > { %v3643_v0 = vpop.permute.xlu0 %3642 }
 0x547   : > { %v4037_v39 = vsel %vm4012_vm13, %v4004_v40, %v3643_v0 }
 0x548   : > { %v3771_v59 = vpop.permute.xlu1 %3770 }
 0x549   : > { %v4070_v38 = vsel %vm4045_vm15, %v4037_v39, %v3771_v59 }
 0x54a   : > { %4878 = vmatprep.mubr.msk.f32.mxu1 %vm4087_vm0, %v4070_v38  ;;  %v3645_v51 = vpop.permute.xlu0 %3644 }
 0x54b   : > { %v4038_v30 = vsel %vm4012_vm13, %v4005_v46, %v3645_v51 }
 0x54c   : > { %v3391_v10 = vpop.permute.xlu1 %3390  ;;  %v4850_v35 = vpop.f32.mrf.mxu1 }
 0x54d   : > { %v4421_v36 = vmul.f32 %v4850_v35, %v7982_v26  ;;  %v3973_v22 = vsel %vm3946_vm12, %v3940_v54, %v3391_v10  ;;  %v4972_v35 = vld [vmem:[#allocation3 + $0x150] sm:$0xff] }
 0x54e   : > { %v4270_v53 = vpop.f32.mrf.mxu1  ;;  %v3265_v25 = vpop.permute.xlu0 %3264 }
 0x54f   : > { %v4460_v19 = vadd.f32 %v7991_v17, %v4421_v36  ;;  %v4420_v41 = vmul.f32 %v7982_v26, %v4270_v53  ;;  %v3941_v12 = vsel %vm1943_vm9, %v3909_v31, %v3265_v25  ;;  %v3846_v36 = vsel %vm1745_vm2, %v4972_v35, %v8805_v61  ;;  %v8806_v25 = vld [vmem:[#allocation79_spill] sm:$0xff] }
 0x550   : > { %v3393_v1 = vpop.permute.xlu1 %3392  ;;  %v8813_v61 = vld [vmem:[#allocation7_spill] sm:$0xff] }
 0x551   : > { %v4492_v13 = vmax.f32 %v4460_v19, 0.0  ;;  %v4459_v52 = vadd.f32 %v7991_v17, %v4420_v41  ;;  %v3974_v0 = vsel %vm3946_vm12, %v3941_v12, %v3393_v1  ;;  %v3878_v19 = vsel %vm1811_vm5, %v3846_v36, %v8806_v25  ;;  %v8807_v41 = vld [vmem:[#allocation137_spill] sm:$0xff] }
 0x552   : > { %v3773_v28 = vpop.permute.xlu0 %3772  ;;  %v3910_v34 = vsel %vm1877_vm7, %v3878_v19, %v8807_v41  ;;  %v2506_v41 = vld [vmem:[#allocation3 + $0x8] sm:$0xff] }
 0x553   : > { %4524 = vst.msk [vmem:[%s8003_s13 + $0x28] sm:$0xff] %vm1745_vm2, %v4492_v13  ;;  %v4491_v29 = vmax.f32 %v4459_v52, 0.0  ;;  %v4071_v21 = vsel %vm4045_vm15, %v4038_v30, %v3773_v28  ;;  %v4973_v13 = vld [vmem:[#allocation3 + $0x158] sm:$0xff]  ;;  %v8808_v52 = vld [vmem:[#allocation131_spill] sm:$0xff] }
 0x554   : > { %v3521_v23 = vpop.permute.xlu1 %3520  ;;  %4879 = vmatmul.mubr.msk.f32.gmra.mxu1 %vm4087_vm0, %v4071_v21  ;;  %v3847_v30 = vsel %vm1745_vm2, %v4973_v13, %v8808_v52  ;;  %v4975_v52 = vld [vmem:[#allocation3 + $0x170] sm:$0xff] }
 0x555   : > { %4523 = vst.msk [vmem:[%s8003_s13 + $0x20] sm:$0xff] %vm1745_vm2, %v4491_v29  ;;  %v4007_v59 = vsel %vm3979_vm14, %v3974_v0, %v3521_v23  ;;  %v8809_v23 = vld [vmem:[#allocation30_spill] sm:$0xff] }
 0x556   : > { %v3519_v5 = vpop.permute.xlu0 %3518  ;;  %v3879_v32 = vsel %vm1811_vm5, %v3847_v30, %v8809_v23  ;;  %v8816_v30 = vld [vmem:[#allocation154_spill] sm:$0xff] }
 0x557   : > { %v4006_v58 = vsel %vm3979_vm14, %v3973_v22, %v3519_v5  ;;  %v3911_v2 = vsel %vm1877_vm7, %v3879_v32, %v8810_v55 }
 0x558   : > { %v3267_v7 = vpop.permute.xlu1 %3266 }
 0x559   : > { %v3942_v46 = vsel %vm1943_vm9, %v3910_v34, %v3267_v7  ;;  %v8815_v34 = vld [vmem:[#allocation153_spill] sm:$0xff] }
 0x55a   : > { %v3647_v18 = vpop.permute.xlu0 %3646 }
 0x55b   : > { %v4039_v14 = vsel %vm4012_vm13, %v4006_v58, %v3647_v18 }
 0x55c   : > { %v3775_v43 = vpop.permute.xlu1 %3774 }
 0x55d   : > { %v4072_v45 = vsel %vm4045_vm15, %v4039_v14, %v3775_v43 }
 0x55e   : > { %4881 = vmatprep.mubr.msk.f32.mxu1 %vm4087_vm0, %v4072_v45  ;;  %v3649_v11 = vpop.permute.xlu0 %3648 }
 0x55f   : > { %v4040_v49 = vsel %vm4012_vm13, %v4007_v59, %v3649_v11 }
 0x560   : > { %v3395_v48 = vpop.permute.xlu1 %3394  ;;  %v4853_v42 = vpop.f32.mrf.mxu1 }
 0x561   : > { %v4423_v15 = vmul.f32 %v4853_v42, %v7982_v26  ;;  %v3975_v28 = vsel %vm3946_vm12, %v3942_v46, %v3395_v48 }
 0x562   : > { %v4280_v4 = vpop.f32.mrf.mxu1  ;;  %v3269_v56 = vpop.permute.xlu0 %3268 }
 0x563   : > { %v4462_v60 = vadd.f32 %v7991_v17, %v4423_v15  ;;  %v4422_v40 = vmul.f32 %v7982_v26, %v4280_v4  ;;  %v3943_v54 = vsel %vm1943_vm9, %v3911_v2, %v3269_v56 }
 0x564   : > { %v3397_v39 = vpop.permute.xlu1 %3396 }
 0x565   : > { %v4494_v38 = vmax.f32 %v4462_v60, 0.0  ;;  %v4461_v3 = vadd.f32 %v7991_v17, %v4422_v40  ;;  %v3976_v45 = vsel %vm3946_vm12, %v3943_v54, %v3397_v39 }
 0x566   : > { %v3777_v33 = vpop.permute.xlu0 %3776 }
 0x567   : > { %4526 = vst.msk [vmem:[%s8003_s13 + $0x38] sm:$0xff] %vm1745_vm2, %v4494_v38  ;;  %v4493_v51 = vmax.f32 %v4461_v3, 0.0  ;;  %v4073_v44 = vsel %vm4045_vm15, %v4040_v49, %v3777_v33  ;;  %v2505_v38 = vld [vmem:[#allocation3] sm:$0xff]  ;;  %v4974_v33 = vld [vmem:[#allocation3 + $0x168] sm:$0xff] }
 0x568   : > { %v3525_v63 = vpop.permute.xlu1 %3524  ;;  %4882 = vmatmul.mubr.msk.f32.gmra.mxu1 %vm4087_vm0, %v4073_v44  ;;  %v3818_v36 = vsel %vm1745_vm2, %v2505_v38, %v8813_v61 }
 0x569   : > { %4525 = vst.msk [vmem:[%s8003_s13 + $0x30] sm:$0xff] %vm1745_vm2, %v4493_v51  ;;  %v4009_v27 = vsel %vm3979_vm14, %v3976_v45, %v3525_v63  ;;  %v8811_v51 = vld [vmem:[#allocation95_spill] sm:$0xff]  ;;  %v3850_v46 = vsel %vm1811_vm5, %v3818_v36, %v8815_v34 }
 0x56a   : > { %v3523_v47 = vpop.permute.xlu0 %3522  ;;  %v3848_v44 = vsel %vm1745_vm2, %v4974_v33, %v8811_v51 }
 0x56b   : > { %v4008_v16 = vsel %vm3979_vm14, %v3975_v28, %v3523_v47  ;;  %v8812_v47 = vld [vmem:[#allocation135_spill] sm:$0xff]  ;;  %v3849_v28 = vsel %vm1745_vm2, %v4975_v52, %v8816_v30 }
 0x56c   : > { %v8078_v62 = vpop.permute.xlu1 %3210 }
 0x56e   : > { %v3651_v10 = vpop.permute.xlu0 %3650 }
 0x56f   : > { %v4041_v5 = vsel %vm4012_vm13, %v4008_v16, %v3651_v10  ;;  %v3880_v10 = vsel %vm1811_vm5, %v3848_v44, %v8812_v47 }
 0x570   : > { %v3653_v53 = vpop.permute.xlu1 %3652 }
 0x571   : > { %v4042_v11 = vsel %vm4012_vm13, %v4009_v27, %v3653_v53  ;;  %v8814_v53 = vld [vmem:[#allocation102_spill] sm:$0xff] }
 0x572   : > { %v3271_v1 = vpop.permute.xlu0 %3270  ;;  %v3912_v25 = vsel %vm1877_vm7, %v3880_v10, %v8814_v53 }
 0x573   : > { %v3944_v13 = vsel %vm1943_vm9, %v3912_v25, %v3271_v1 }
 0x574   : > { %v8090_v29 = vpop.permute.xlu1 %3212  ;;  %v4856_v21 = vpop.f32.mrf.mxu1 }
 0x575   : > { %v4425_v24 = vmul.f32 %v4856_v21, %v7982_v26  ;;  %v8817_v21 = vld [vmem:[#allocation100_spill] sm:$0xff] }
 0x576   : > { %v4290_v8 = vpop.f32.mrf.mxu1  ;;  %v3779_v37 = vpop.permute.xlu0 %3778  ;;  %v3882_v23 = vsel %vm1877_vm7, %v3850_v46, %v8817_v21 }
 0x577   : > { %v4464_v7 = vadd.f32 %v7991_v17, %v4425_v24  ;;  %v4424_v22 = vmul.f32 %v7982_v26, %v4290_v8  ;;  %v4074_v58 = vsel %vm4045_vm15, %v4041_v5, %v3779_v37  ;;  %v8818_v24 = vld [vmem:[#allocation59_spill] sm:$0xff]  ;;  %v3914_v2 = vsel %vm1943_vm9, %v3882_v23, %v8078_v62  ;;  %v8819_v5 = vld [vmem:[#allocation5_spill] sm:$0xff]  ;;  %v8820_v37 = vld [vmem:[#allocation80_spill] sm:$0xff] }
 0x578   : > { %v3339_v18 = vpop.permute.xlu1 %3338  ;;  %4884 = vmatprep.mubr.msk.f32.mxu1 %vm4087_vm0, %v4074_v58  ;;  %v3881_v55 = vsel %vm1811_vm5, %v3849_v28, %v8818_v24  ;;  %v3819_v8 = vsel %vm1745_vm2, %v2506_v41, %v8819_v5 }
 0x579   : > { %v4496_v14 = vmax.f32 %v4464_v7, 0.0  ;;  %v4463_v43 = vadd.f32 %v7991_v17, %v4424_v22  ;;  %v3913_v54 = vsel %vm1877_vm7, %v3881_v55, %v8820_v37  ;;  %v3947_v7 = vsel %vm3946_vm12, %v3914_v2, %v3339_v18 }
 0x57a   : > { %v3273_v6 = vpop.permute.xlu0 %3272 }
 0x57b   : > { %4528 = vst.msk [vmem:[%s8003_s13 + $0x48] sm:$0xff] %vm1745_vm2, %v4496_v14  ;;  %v4495_v57 = vmax.f32 %v4463_v43, 0.0  ;;  %v8821_v14 = vld [vmem:[#allocation8_spill] sm:$0xff]  ;;  %v3945_v45 = vsel %vm1943_vm9, %v3913_v54, %v3273_v6 }
 0x57c   : > { %v3781_v20 = vpop.permute.xlu1 %3780  ;;  %v3851_v43 = vsel %vm1811_vm5, %v3819_v8, %v8821_v14 }
 0x57d   : > { %4527 = vst.msk [vmem:[%s8003_s13 + $0x40] sm:$0xff] %vm1745_vm2, %v4495_v57  ;;  %v4075_v50 = vsel %vm4045_vm15, %v4042_v11, %v3781_v20  ;;  %v8822_v57 = vld [vmem:[#allocation78_spill] sm:$0xff] }
 0x57e   : > { %4885 = vmatmul.mubr.msk.f32.gmra.mxu1 %vm4087_vm0, %v4075_v50  ;;  %v3399_v9 = vpop.permute.xlu0 %3398  ;;  %v3883_v11 = vsel %vm1877_vm7, %v3851_v43, %v8822_v57 }
 0x57f   : > { %v3977_v32 = vsel %vm3946_vm12, %v3944_v13, %v3399_v9  ;;  %v3915_v9 = vsel %vm1943_vm9, %v3883_v11, %v8090_v29 }
 0x580   : > { %v3401_v31 = vpop.permute.xlu1 %3400 }
 0x581   : > { %v3978_v20 = vsel %vm3946_vm12, %v3945_v45, %v3401_v31 }
 0x582   : > { %v3341_v48 = vpop.permute.xlu0 %3340 }
 0x584   : > { %v3527_v42 = vpop.permute.xlu1 %3526 }
 0x585   : > { %v4010_v1 = vsel %vm3979_vm14, %v3977_v32, %v3527_v42 }
 0x586   : > { %v3467_v12 = vpop.permute.xlu0 %3466 }
 0x587   : > { %v3980_v62 = vsel %vm3979_vm14, %v3947_v7, %v3467_v12  ;;  %v3948_v12 = vsel %vm3946_vm12, %v3915_v9, %v3341_v48 }
 0x588   : > { %v3529_v15 = vpop.permute.xlu1 %3528  ;;  %v4859_v4 = vpop.f32.mrf.mxu1 }
 0x589   : > { %v4427_v56 = vmul.f32 %v4859_v4, %v7982_v26  ;;  %v4011_v42 = vsel %vm3979_vm14, %v3978_v20, %v3529_v15 }
 0x58a   : > { %v4300_v60 = vpop.f32.mrf.mxu1  ;;  %v3469_v40 = vpop.permute.xlu0 %3468 }
 0x58b   : > { %v4466_v0 = vadd.f32 %v7991_v17, %v4427_v56  ;;  %v4426_v39 = vmul.f32 %v7982_v26, %v4300_v60  ;;  %v3981_v31 = vsel %vm3979_vm14, %v3948_v12, %v3469_v40 }
 0x58c   : > { %v3655_v59 = vpop.permute.xlu1 %3654 }
 0x58d   : > { %v4498_v3 = vmax.f32 %v4466_v0, 0.0  ;;  %v4465_v49 = vadd.f32 %v7991_v17, %v4426_v39  ;;  %v4043_v22 = vsel %vm4012_vm13, %v4010_v1, %v3655_v59 }
 0x58e   : > { %v3595_v63 = vpop.permute.xlu0 %3594 }
 0x58f   : > { %4530 = vst.msk [vmem:[%s8003_s13 + $0x58] sm:$0xff] %vm1745_vm2, %v4498_v3  ;;  %v4497_v35 = vmax.f32 %v4465_v49, 0.0  ;;  %v4013_v50 = vsel %vm4012_vm13, %v3980_v62, %v3595_v63 }
 0x590   : > { %v3657_v19 = vpop.permute.xlu1 %3656 }
 0x591   : > { %4529 = vst.msk [vmem:[%s8003_s13 + $0x50] sm:$0xff] %vm1745_vm2, %v4497_v35  ;;  %v4044_v4 = vsel %vm4012_vm13, %v4011_v42, %v3657_v19 }
 0x592   : > { %v3597_v16 = vpop.permute.xlu0 %3596 }
 0x593   : > { %v4014_v0 = vsel %vm4012_vm13, %v3981_v31, %v3597_v16 }
 0x594   : > { %v3783_v58 = vpop.permute.xlu1 %3782 }
 0x595   : > { %v4076_v27 = vsel %vm4045_vm15, %v4043_v22, %v3783_v58 }
 0x596   : > { %4887 = vmatprep.mubr.msk.f32.mxu1 %vm4087_vm0, %v4076_v27  ;;  %v3723_v18 = vpop.permute.xlu0 %3722 }
 0x597   : > { %v4046_v6 = vsel %vm4045_vm15, %v4013_v50, %v3723_v18 }
 0x598   : > { %v3785_v56 = vpop.permute.xlu1 %3784  ;;  %4842 = vmatprep.mubr.msk.f32.mxu0 %vm4087_vm0, %v4046_v6 }
 0x599   : > { %v4077_v60 = vsel %vm4045_vm15, %v4044_v4, %v3785_v56 }
 0x59a   : > { %4888 = vmatmul.mubr.msk.f32.gmra.mxu1 %vm4087_vm0, %v4077_v60  ;;  %v3725_v29 = vpop.permute.xlu0 %3724 }
 0x59b   : > { %v4047_v15 = vsel %vm4045_vm15, %v4014_v0, %v3725_v29 }
 0x59c   : > { %4843 = vmatmul.mubr.msk.f32.vlgmr.msra.gmra.mxu0 %vm4087_vm0, %v4047_v15  ;;  %v4862_v48 = vpop.f32.mrf.mxu1 }
 0x59d   : > { %v4429_v39 = vmul.f32 %v4862_v48, %v7982_v26 }
 0x59e   : > { %v4310_v59 = vpop.f32.mrf.mxu1 }
 0x59f   : > { %v4468_v38 = vadd.f32 %v7991_v17, %v4429_v39  ;;  %v4428_v40 = vmul.f32 %v7982_v26, %v4310_v59 }
 0x5a1   : > { %v4500_v3 = vmax.f32 %v4468_v38, 0.0  ;;  %v4467_v49 = vadd.f32 %v7991_v17, %v4428_v40 }
 0x5a3   : > { %4532 = vst.msk [vmem:[%s8003_s13 + $0x68] sm:$0xff] %vm1745_vm2, %v4500_v3  ;;  %v4499_v33 = vmax.f32 %v4467_v49, 0.0 }
 0x5a5   : > { %4531 = vst.msk [vmem:[%s8003_s13 + $0x60] sm:$0xff] %vm1745_vm2, %v4499_v33 }
 0x5b0   : > { %v4865_v51 = vpop.f32.mrf.mxu1 }
 0x5b1   : > { %v4431_v44 = vmul.f32 %v4865_v51, %v7982_v26 }
 0x5b2   : > { %v4320_v63 = vpop.f32.mrf.mxu1 }
 0x5b3   : > { %v4470_v47 = vadd.f32 %v7991_v17, %v4431_v44  ;;  %v4430_v10 = vmul.f32 %v7982_v26, %v4320_v63 }
 0x5b5   : > { %v4502_v35 = vmax.f32 %v4470_v47, 0.0  ;;  %v4469_v61 = vadd.f32 %v7991_v17, %v4430_v10 }
 0x5b7   : > { %4534 = vst.msk [vmem:[%s8003_s13 + $0x78] sm:$0xff] %vm1745_vm2, %v4502_v35  ;;  %v4501_v36 = vmax.f32 %v4469_v61, 0.0 }
 0x5b9   : > { %4533 = vst.msk [vmem:[%s8003_s13 + $0x70] sm:$0xff] %vm1745_vm2, %v4501_v36 }
 0x5c4   : > { %v4868_v53 = vpop.f32.mrf.mxu1 }
 0x5c5   : > { %v4433_v25 = vmul.f32 %v4868_v53, %v7982_v26 }
 0x5c6   : > { %v4330_v19 = vpop.f32.mrf.mxu1 }
 0x5c7   : > { %v4472_v41 = vadd.f32 %v7991_v17, %v4433_v25  ;;  %v4432_v34 = vmul.f32 %v7982_v26, %v4330_v19 }
 0x5c9   : > { %v4504_v46 = vmax.f32 %v4472_v41, 0.0  ;;  %v4471_v13 = vadd.f32 %v7991_v17, %v4432_v34 }
 0x5cb   : > { %4536 = vst.msk [vmem:[%s8003_s13 + $0x88] sm:$0xff] %vm1745_vm2, %v4504_v46  ;;  %v4503_v52 = vmax.f32 %v4471_v13, 0.0 }
 0x5cd   : > { %4535 = vst.msk [vmem:[%s8003_s13 + $0x80] sm:$0xff] %vm1745_vm2, %v4503_v52 }
 0x5d8   : > { %v4871_v30 = vpop.f32.mrf.mxu1 }
 0x5d9   : > { %v4435_v28 = vmul.f32 %v4871_v30, %v7982_v26 }
 0x5da   : > { %v4340_v21 = vpop.f32.mrf.mxu1 }
 0x5db   : > { %v4474_v23 = vadd.f32 %v7991_v17, %v4435_v28  ;;  %v4434_v32 = vmul.f32 %v7982_v26, %v4340_v21 }
 0x5dd   : > { %v4506_v16 = vmax.f32 %v4474_v23, 0.0  ;;  %v4473_v24 = vadd.f32 %v7991_v17, %v4434_v32 }
 0x5df   : > { %4538 = vst.msk [vmem:[%s8003_s13 + $0x98] sm:$0xff] %vm1745_vm2, %v4506_v16  ;;  %v4505_v55 = vmax.f32 %v4473_v24, 0.0 }
 0x5e1   : > { %4537 = vst.msk [vmem:[%s8003_s13 + $0x90] sm:$0xff] %vm1745_vm2, %v4505_v55 }
 0x5ec   : > { %v4874_v2 = vpop.f32.mrf.mxu1 }
 0x5ed   : > { %v4437_v1 = vmul.f32 %v4874_v2, %v7982_v26 }
 0x5ee   : > { %v4350_v5 = vpop.f32.mrf.mxu1 }
 0x5ef   : > { %v4476_v8 = vadd.f32 %v7991_v17, %v4437_v1  ;;  %v4436_v37 = vmul.f32 %v7982_v26, %v4350_v5 }
 0x5f1   : > { %v4508_v54 = vmax.f32 %v4476_v8, 0.0  ;;  %v4475_v7 = vadd.f32 %v7991_v17, %v4436_v37 }
 0x5f3   : > { %4540 = vst.msk [vmem:[%s8003_s13 + $0xa8] sm:$0xff] %vm1745_vm2, %v4508_v54  ;;  %v4507_v22 = vmax.f32 %v4475_v7, 0.0 }
 0x5f5   : > { %4539 = vst.msk [vmem:[%s8003_s13 + $0xa0] sm:$0xff] %vm1745_vm2, %v4507_v22 }
 0x600   : > { %v4877_v58 = vpop.f32.mrf.mxu1 }
 0x601   : > { %v4439_v14 = vmul.f32 %v4877_v58, %v7982_v26 }
 0x602   : > { %v4360_v43 = vpop.f32.mrf.mxu1 }
 0x603   : > { %v4478_v45 = vadd.f32 %v7991_v17, %v4439_v14  ;;  %v4438_v62 = vmul.f32 %v7982_v26, %v4360_v43 }
 0x605   : > { %v4510_v27 = vmax.f32 %v4478_v45, 0.0  ;;  %v4477_v57 = vadd.f32 %v7991_v17, %v4438_v62 }
 0x607   : > { %4542 = vst.msk [vmem:[%s8003_s13 + $0xb8] sm:$0xff] %vm1745_vm2, %v4510_v27  ;;  %v4509_v11 = vmax.f32 %v4477_v57, 0.0 }
 0x609   : > { %4541 = vst.msk [vmem:[%s8003_s13 + $0xb0] sm:$0xff] %vm1745_vm2, %v4509_v11 }
 0x614   : > { %v4880_v20 = vpop.f32.mrf.mxu1 }
 0x615   : > { %v4441_v50 = vmul.f32 %v4880_v20, %v7982_v26 }
 0x616   : > { %v4370_v18 = vpop.f32.mrf.mxu1 }
 0x617   : > { %v4480_v9 = vadd.f32 %v7991_v17, %v4441_v50  ;;  %v4440_v42 = vmul.f32 %v7982_v26, %v4370_v18 }
 0x619   : > { %v4512_v6 = vmax.f32 %v4480_v9, 0.0  ;;  %v4479_v12 = vadd.f32 %v7991_v17, %v4440_v42 }
 0x61b   : > { %4544 = vst.msk [vmem:[%s8003_s13 + $0xc8] sm:$0xff] %vm1745_vm2, %v4512_v6  ;;  %v4511_v4 = vmax.f32 %v4479_v12, 0.0 }
 0x61d   : > { %4543 = vst.msk [vmem:[%s8003_s13 + $0xc0] sm:$0xff] %vm1745_vm2, %v4511_v4 }
 0x628   : > { %v4883_v56 = vpop.f32.mrf.mxu1 }
 0x629   : > { %v4443_v31 = vmul.f32 %v4883_v56, %v7982_v26 }
 0x62a   : > { %v4380_v60 = vpop.f32.mrf.mxu1 }
 0x62b   : > { %v4482_v0 = vadd.f32 %v7991_v17, %v4443_v31  ;;  %v4442_v29 = vmul.f32 %v7982_v26, %v4380_v60 }
 0x62d   : > { %v4514_v15 = vmax.f32 %v4482_v0, 0.0  ;;  %v4481_v48 = vadd.f32 %v7991_v17, %v4442_v29 }
 0x62f   : > { %4546 = vst.msk [vmem:[%s8003_s13 + $0xd8] sm:$0xff] %vm1745_vm2, %v4514_v15  ;;  %v4513_v39 = vmax.f32 %v4481_v48, 0.0 }
 0x631   : > { %4545 = vst.msk [vmem:[%s8003_s13 + $0xd0] sm:$0xff] %vm1745_vm2, %v4513_v39 }
 0x63e   : > { %v4886_v59 = vpop.f32.mrf.mxu1 }
 0x63f   : > { %v4445_v38 = vmul.f32 %v4886_v59, %v7982_v26 }
 0x640   : > { %v4390_v40 = vpop.f32.mrf.mxu1 }
 0x641   : > { %v4484_v3 = vadd.f32 %v7991_v17, %v4445_v38  ;;  %v4444_v49 = vmul.f32 %v7982_v26, %v4390_v40 }
 0x643   : > { %v4516_v33 = vmax.f32 %v4484_v3, 0.0  ;;  %v4483_v51 = vadd.f32 %v7991_v17, %v4444_v49 }
 0x645   : > { %4548 = vst.msk [vmem:[%s8003_s13 + $0xe8] sm:$0xff] %vm1745_vm2, %v4516_v33  ;;  %v4515_v44 = vmax.f32 %v4483_v51, 0.0 }
 0x647   : > { %4547 = vst.msk [vmem:[%s8003_s13 + $0xe0] sm:$0xff] %vm1745_vm2, %v4515_v44 }
 0x65a   : > { %v4889_v63 = vpop.f32.mrf.mxu1 }
 0x65b   : > { %v4447_v47 = vmul.f32 %v4889_v63, %v7982_v26 }
 0x65c   : > { %v4844_v10 = vpop.f32.mrf.mxu0  ;;  %v4400_v35 = vpop.f32.mrf.mxu1 }
 0x65d   : > { %v4486_v61 = vadd.f32 %v7991_v17, %v4447_v47  ;;  %v4417_v36 = vmul.f32 %v4844_v10, %v7982_v26  ;;  %v4446_v53 = vmul.f32 %v7982_v26, %v4400_v35 }
 0x65e   : > { %v4250_v25 = vpop.f32.mrf.mxu0 }
 0x65f   : > { %v4518_v19 = vmax.f32 %v4486_v61, 0.0  ;;  %v4456_v41 = vadd.f32 %v7991_v17, %v4417_v36  ;;  %v4485_v34 = vadd.f32 %v7991_v17, %v4446_v53  ;;  %v4416_v46 = vmul.f32 %v7982_v26, %v4250_v25 }
 0x661   : > { %4550 = vst.msk [vmem:[%s8003_s13 + $0xf8] sm:$0xff] %vm1745_vm2, %v4518_v19  ;;  %v4488_v13 = vmax.f32 %v4456_v41, 0.0  ;;  %v4517_v52 = vmax.f32 %v4485_v34, 0.0  ;;  %v4455_v30 = vadd.f32 %v7991_v17, %v4416_v46 }
 0x663   : > { %4520 = vst.msk [vmem:[%s8003_s13 + $0x8] sm:$0xff] %vm1745_vm2, %v4488_v13  ;;  %4549 = vst.msk [vmem:[%s8003_s13 + $0xf0] sm:$0xff] %vm1745_vm2, %v4517_v52  ;;  %v4487_v28 = vmax.f32 %v4455_v30, 0.0 }
 0x665   : > { %4519 = vst.msk [vmem:[%s8003_s13] sm:$0xff] %vm1745_vm2, %v4487_v28 }
 0x666 PF: > { %s17_s24 = sadd.s32 1, %s4982_s24  }
 0x667   : > { %p14_p4 = scmp.ge.s32.totalorder %s17_s24, 4  }
 0x669   :  { %16 = sbr.rel (!%p14_p4) target bundleno = 1 (0x1), region = 82 }

</bundles_post_ra>
